<compile_context>
chip_gen: v5e
topology: v5e:2x2
jax: 0.10.0
libtpu: 0.0.40
codegen_flags: <defaults>
</compile_context>

<pallas_src>
import numpy as np
import jax
import jax.numpy as jnp
from jax.experimental import pallas as pl
from jax.experimental.pallas import tpu as pltpu


C_OUT = 32            # conv output channels
HW = 28               # input spatial size implied by fc1 (32 * 14 * 14)
PH = HW + 2           # padded spatial size (padding=1)
PO = HW // 2          # pooled spatial size (14)
LANES = PO * C_OUT    # 448: pooled (j, c) packed into the lane dim
N_CLS = 10


# ----------------------------- Pallas kernel -------------------------------

def _fused_cnn_kernel(xe_ref, xo_ref, tmat_ref, cbias_ref, fcw_ref, fcb_ref,
                      out_ref):
    """conv3x3(pad=1) + bias + ReLU + 2x2 maxpool + fc for one batch item."""
    xe = xe_ref[0]                      # (15, 30) even padded rows 0,2,...,28
    xo = xo_ref[0]                      # (15, 30) odd  padded rows 1,3,...,29
    # rows[s][i, :] = padded input row (2*i + s), s in [0, 4)
    rows = (xe[0:PO, :], xo[0:PO, :], xe[1:PO + 1, :], xo[1:PO + 1, :])
    tmats = [tmat_ref[t] for t in range(6)]           # each (30, 448)

    # Conv as banded matmuls: quarter (hp, wp) holds the conv output at
    # (h, w) = (2i+hp, 2j+wp) laid out as (i, j*32 + c) -> (14, 448), so the
    # 2x2 max-pool is an elementwise max over the four quarters.
    pooled = None
    for hp in range(2):
        for wp in range(2):
            acc = jnp.dot(rows[hp], tmats[wp * 3],
                          preferred_element_type=jnp.float32)
            for kh in (1, 2):
                acc = acc + jnp.dot(rows[hp + kh], tmats[wp * 3 + kh],
                                    preferred_element_type=jnp.float32)
            pooled = acc if pooled is None else jnp.maximum(pooled, acc)
    # bias + ReLU commute with the window max (bias is constant per channel).
    pooled = jnp.maximum(pooled + cbias_ref[...], 0.0)          # (14, 448)

    # fc: contract both dims of pooled (14, 448) against fcw (14, 448, 10);
    # the NCHW flatten permutation is already baked into fcw.
    logits = fcb_ref[...]                                        # (1, 10)
    for i in range(PO):
        logits = logits + jnp.dot(pooled[i:i + 1, :], fcw_ref[i],
                                  preferred_element_type=jnp.float32)
    out_ref[0] = logits


# ------------------------------- wrapper ------------------------------------

def onelayer_cnn_forward(kparams, x_nchw):
    bsz = x_nchw.shape[0]
    x = x_nchw.reshape(bsz, HW, HW)                    # Cin == 1
    xp = jnp.pad(x, ((0, 0), (1, 1), (1, 1)))          # (B, 30, 30), padding=1
    x_even = xp[:, 0::2, :]                            # (B, 15, 30)
    x_odd = xp[:, 1::2, :]                             # (B, 15, 30)

    out = pl.pallas_call(
        _fused_cnn_kernel,
        out_shape=jax.ShapeDtypeStruct((bsz, 1, N_CLS), jnp.float32),
        grid=(bsz,),
        in_specs=[
            pl.BlockSpec((1, PO + 1, PH), lambda b: (b, 0, 0)),       # x_even
            pl.BlockSpec((1, PO + 1, PH), lambda b: (b, 0, 0)),       # x_odd
            pl.BlockSpec((6, PH, LANES), lambda b: (0, 0, 0)),        # tmat
            pl.BlockSpec((1, LANES), lambda b: (0, 0)),               # conv bias
            pl.BlockSpec((PO, LANES, N_CLS), lambda b: (0, 0, 0)),    # fc weight
            pl.BlockSpec((1, N_CLS), lambda b: (0, 0)),               # fc bias
        ],
        out_specs=pl.BlockSpec((1, 1, N_CLS), lambda b: (b, 0, 0)),
        compiler_params=pltpu.CompilerParams(
            dimension_semantics=("parallel",)),
    )(x_even, x_odd, kparams["tmat"], kparams["cbias"],
      kparams["fcw"], kparams["fcb"])
    return out.reshape(bsz, N_CLS)


cnn_forward = jax.jit(onelayer_cnn_forward)


# -------------------------- parameter preparation ---------------------------

def init_torch_like_params(key):
    """Parameters with the same shapes/layout as the PyTorch OneLayerCNN."""
    k = jax.random.split(key, 4)
    fan_c = 1 * 3 * 3
    fan_f = C_OUT * PO * PO
    return {
        "conv_w": jax.random.uniform(k[0], (C_OUT, 1, 3, 3), jnp.float32,
                                     -1.0, 1.0) / np.sqrt(fan_c),
        "conv_b": jax.random.uniform(k[1], (C_OUT,), jnp.float32,
                                     -1.0, 1.0) / np.sqrt(fan_c),
        "fc_w": jax.random.uniform(k[2], (N_CLS, fan_f), jnp.float32,
                                   -1.0, 1.0) / np.sqrt(fan_f),
        "fc_b": jax.random.uniform(k[3], (N_CLS,), jnp.float32,
                                   -1.0, 1.0) / np.sqrt(fan_f),
    }


def prepare_kernel_params(p):
    """One-time repack of the PyTorch-layout weights for the fused kernel."""
    # conv weight (32, 1, 3, 3) -> W[kh, kw, c]
    w = jnp.transpose(p["conv_w"][:, 0, :, :], (1, 2, 0))            # (3,3,32)
    # tmat[wp*3+kh][w', j*32+c] = W[kh, w'-(2j+wp), c]  (0 elsewhere), so that
    # conv_out[2i+hp, 2j+wp, c] = sum_kh  x_pad[2i+hp+kh, :] @ tmat[wp*3+kh].
    wprime = jnp.arange(PH)[:, None, None]
    jj = jnp.arange(PO)[None, :, None]
    kw = jnp.arange(3)[None, None, :]
    mats = []
    for wp in range(2):
        sel = (wprime == 2 * jj + wp + kw).astype(jnp.float32)       # (30,14,3)
        for kh in range(3):
            mats.append(jnp.einsum("wjk,kc->wjc", sel, w[kh])        # (30,14,32)
                        .reshape(PH, LANES))
    tmat = jnp.stack(mats, axis=0)                                   # (6,30,448)
    cbias = jnp.tile(p["conv_b"], PO).reshape(1, LANES)              # (1,448)
    # fc weight (10, 32*14*14) with NCHW-flat columns -> [i, j*32+c, n]
    fcw = (p["fc_w"].reshape(N_CLS, C_OUT, PO, PO)
           .transpose(2, 3, 1, 0).reshape(PO, LANES, N_CLS))         # (14,448,10)
    fcb = p["fc_b"].reshape(1, N_CLS)
    return {"tmat": tmat, "cbias": cbias, "fcw": fcw, "fcb": fcb}


# ------------------------------ reference -----------------------------------

def reference_forward(p, x_nchw):
    """Plain-JAX mirror of the PyTorch OneLayerCNN forward (NCHW)."""
    bsz = x_nchw.shape[0]
    xp = jnp.pad(x_nchw[:, 0], ((0, 0), (1, 1), (1, 1)))             # (B,30,30)
    y = jnp.zeros((bsz, C_OUT, HW, HW), jnp.float32)
    for kh in range(3):
        for kw in range(3):
            y = y + (p["conv_w"][None, :, 0, kh, kw, None, None]
                     * xp[:, None, kh:kh + HW, kw:kw + HW])
    y = jax.nn.relu(y + p["conv_b"][None, :, None, None])
    y = y.reshape(bsz, C_OUT, PO, 2, PO, 2).max(axis=(3, 5))         # pool 2x2
    return y.reshape(bsz, C_OUT * PO * PO) @ p["fc_w"].T + p["fc_b"]


# --------------------------------- main --------------------------------------

if __name__ == "__main__":
    key = jax.random.PRNGKey(0)
    pkey, xkey = jax.random.split(key)
    raw = init_torch_like_params(pkey)
    kparams = prepare_kernel_params(raw)      # one-time weight repack
    # The fc layer (32*14*14) implies 28x28 single-channel inputs.
    x = jax.random.normal(xkey, (2, 1, HW, HW), jnp.float32)

    out = cnn_forward(kparams, x)
    jax.block_until_ready(out)
    assert out.shape == (2, N_CLS) and out.dtype == jnp.float32

    ref = reference_forward(raw, x)
    np.testing.assert_allclose(np.asarray(out), np.asarray(ref),
                               rtol=2e-2, atol=2e-2)
    print("KERNEL_OK")
</pallas_src>

<mosaic_0001>
module attributes {stable_mosaic.version = 11 : i64} {
  func.func @_fused_cnn_kernel(%arg0: i32, %arg1: memref<1x15x30xf32, #tpu.memory_space<vmem>>, %arg2: memref<1x15x30xf32, #tpu.memory_space<vmem>>, %arg3: memref<6x30x448xf32, #tpu.memory_space<vmem>>, %arg4: memref<1x448xf32, #tpu.memory_space<vmem>>, %arg5: memref<14x448x10xf32, #tpu.memory_space<vmem>>, %arg6: memref<1x10xf32, #tpu.memory_space<vmem>>, %arg7: memref<1x1x10xf32, #tpu.memory_space<vmem>>) attributes {dimension_semantics = [#tpu.dimension_semantics<parallel>], iteration_bounds = array<i64: 2>, scalar_prefetch = 0 : i64, scratch_operands = 0 : i64, tpu.core_type = #tpu.core_type<tc>, window_params = [{transform_indices = @transform_0, window_bounds = array<i64: 1, 15, 30>}, {transform_indices = @transform_1, window_bounds = array<i64: 1, 15, 30>}, {pipeline_mode = #tpu.pipeline_mode<synchronous>, transform_indices = @transform_2, window_bounds = array<i64: 6, 30, 448>}, {pipeline_mode = #tpu.pipeline_mode<synchronous>, transform_indices = @transform_3, window_bounds = array<i64: 1, 448>}, {pipeline_mode = #tpu.pipeline_mode<synchronous>, transform_indices = @transform_4, window_bounds = array<i64: 14, 448, 10>}, {pipeline_mode = #tpu.pipeline_mode<synchronous>, transform_indices = @transform_5, window_bounds = array<i64: 1, 10>}, {transform_indices = @transform_6, window_bounds = array<i64: 1, 1, 10>}]} {
    %c0 = arith.constant 0 : index
    %c0_0 = arith.constant 0 : index
    %c0_1 = arith.constant 0 : index
    %0 = vector.load %arg1[%c0, %c0_0, %c0_1] : memref<1x15x30xf32, #tpu.memory_space<vmem>>, vector<1x15x30xf32>
    %1 = vector.shape_cast %0 : vector<1x15x30xf32> to vector<15x30xf32>
    %c0_2 = arith.constant 0 : index
    %c0_3 = arith.constant 0 : index
    %c0_4 = arith.constant 0 : index
    %2 = vector.load %arg2[%c0_2, %c0_3, %c0_4] : memref<1x15x30xf32, #tpu.memory_space<vmem>>, vector<1x15x30xf32>
    %3 = vector.shape_cast %2 : vector<1x15x30xf32> to vector<15x30xf32>
    %4 = vector.extract_strided_slice %1 {offsets = [0, 0], sizes = [14, 30], strides = [1, 1]} : vector<15x30xf32> to vector<14x30xf32>
    %5 = vector.extract_strided_slice %3 {offsets = [0, 0], sizes = [14, 30], strides = [1, 1]} : vector<15x30xf32> to vector<14x30xf32>
    %6 = vector.extract_strided_slice %1 {offsets = [1, 0], sizes = [14, 30], strides = [1, 1]} : vector<15x30xf32> to vector<14x30xf32>
    %7 = vector.extract_strided_slice %3 {offsets = [1, 0], sizes = [14, 30], strides = [1, 1]} : vector<15x30xf32> to vector<14x30xf32>
    %c0_5 = arith.constant 0 : index
    %c0_6 = arith.constant 0 : index
    %c0_7 = arith.constant 0 : index
    %8 = vector.load %arg3[%c0_5, %c0_6, %c0_7] : memref<6x30x448xf32, #tpu.memory_space<vmem>>, vector<1x30x448xf32>
    %9 = vector.shape_cast %8 : vector<1x30x448xf32> to vector<30x448xf32>
    %c1 = arith.constant 1 : index
    %c0_8 = arith.constant 0 : index
    %c0_9 = arith.constant 0 : index
    %10 = vector.load %arg3[%c1, %c0_8, %c0_9] : memref<6x30x448xf32, #tpu.memory_space<vmem>>, vector<1x30x448xf32>
    %11 = vector.shape_cast %10 : vector<1x30x448xf32> to vector<30x448xf32>
    %c2 = arith.constant 2 : index
    %c0_10 = arith.constant 0 : index
    %c0_11 = arith.constant 0 : index
    %12 = vector.load %arg3[%c2, %c0_10, %c0_11] : memref<6x30x448xf32, #tpu.memory_space<vmem>>, vector<1x30x448xf32>
    %13 = vector.shape_cast %12 : vector<1x30x448xf32> to vector<30x448xf32>
    %c3 = arith.constant 3 : index
    %c0_12 = arith.constant 0 : index
    %c0_13 = arith.constant 0 : index
    %14 = vector.load %arg3[%c3, %c0_12, %c0_13] : memref<6x30x448xf32, #tpu.memory_space<vmem>>, vector<1x30x448xf32>
    %15 = vector.shape_cast %14 : vector<1x30x448xf32> to vector<30x448xf32>
    %c4 = arith.constant 4 : index
    %c0_14 = arith.constant 0 : index
    %c0_15 = arith.constant 0 : index
    %16 = vector.load %arg3[%c4, %c0_14, %c0_15] : memref<6x30x448xf32, #tpu.memory_space<vmem>>, vector<1x30x448xf32>
    %17 = vector.shape_cast %16 : vector<1x30x448xf32> to vector<30x448xf32>
    %c5 = arith.constant 5 : index
    %c0_16 = arith.constant 0 : index
    %c0_17 = arith.constant 0 : index
    %18 = vector.load %arg3[%c5, %c0_16, %c0_17] : memref<6x30x448xf32, #tpu.memory_space<vmem>>, vector<1x30x448xf32>
    %19 = vector.shape_cast %18 : vector<1x30x448xf32> to vector<30x448xf32>
    %cst = arith.constant dense<0.000000e+00> : vector<14x448xf32>
    %20 = tpu.matmul %4, %9, %cst {dimension_numbers = #tpu.dot_dimension_numbers<[1], [0], [0], [1], [0, 0, 1, 1], [], []>} : vector<14x30xf32>, vector<30x448xf32>, vector<14x448xf32> -> vector<14x448xf32>
    %cst_18 = arith.constant dense<0.000000e+00> : vector<14x448xf32>
    %21 = tpu.matmul %5, %11, %cst_18 {dimension_numbers = #tpu.dot_dimension_numbers<[1], [0], [0], [1], [0, 0, 1, 1], [], []>} : vector<14x30xf32>, vector<30x448xf32>, vector<14x448xf32> -> vector<14x448xf32>
    %22 = arith.addf %20, %21 : vector<14x448xf32>
    %cst_19 = arith.constant dense<0.000000e+00> : vector<14x448xf32>
    %23 = tpu.matmul %6, %13, %cst_19 {dimension_numbers = #tpu.dot_dimension_numbers<[1], [0], [0], [1], [0, 0, 1, 1], [], []>} : vector<14x30xf32>, vector<30x448xf32>, vector<14x448xf32> -> vector<14x448xf32>
    %24 = arith.addf %22, %23 : vector<14x448xf32>
    %cst_20 = arith.constant dense<0.000000e+00> : vector<14x448xf32>
    %25 = tpu.matmul %4, %15, %cst_20 {dimension_numbers = #tpu.dot_dimension_numbers<[1], [0], [0], [1], [0, 0, 1, 1], [], []>} : vector<14x30xf32>, vector<30x448xf32>, vector<14x448xf32> -> vector<14x448xf32>
    %cst_21 = arith.constant dense<0.000000e+00> : vector<14x448xf32>
    %26 = tpu.matmul %5, %17, %cst_21 {dimension_numbers = #tpu.dot_dimension_numbers<[1], [0], [0], [1], [0, 0, 1, 1], [], []>} : vector<14x30xf32>, vector<30x448xf32>, vector<14x448xf32> -> vector<14x448xf32>
    %27 = arith.addf %25, %26 : vector<14x448xf32>
    %cst_22 = arith.constant dense<0.000000e+00> : vector<14x448xf32>
    %28 = tpu.matmul %6, %19, %cst_22 {dimension_numbers = #tpu.dot_dimension_numbers<[1], [0], [0], [1], [0, 0, 1, 1], [], []>} : vector<14x30xf32>, vector<30x448xf32>, vector<14x448xf32> -> vector<14x448xf32>
    %29 = arith.addf %27, %28 : vector<14x448xf32>
    %30 = arith.maximumf %24, %29 : vector<14x448xf32>
    %cst_23 = arith.constant dense<0.000000e+00> : vector<14x448xf32>
    %31 = tpu.matmul %5, %9, %cst_23 {dimension_numbers = #tpu.dot_dimension_numbers<[1], [0], [0], [1], [0, 0, 1, 1], [], []>} : vector<14x30xf32>, vector<30x448xf32>, vector<14x448xf32> -> vector<14x448xf32>
    %cst_24 = arith.constant dense<0.000000e+00> : vector<14x448xf32>
    %32 = tpu.matmul %6, %11, %cst_24 {dimension_numbers = #tpu.dot_dimension_numbers<[1], [0], [0], [1], [0, 0, 1, 1], [], []>} : vector<14x30xf32>, vector<30x448xf32>, vector<14x448xf32> -> vector<14x448xf32>
    %33 = arith.addf %31, %32 : vector<14x448xf32>
    %cst_25 = arith.constant dense<0.000000e+00> : vector<14x448xf32>
    %34 = tpu.matmul %7, %13, %cst_25 {dimension_numbers = #tpu.dot_dimension_numbers<[1], [0], [0], [1], [0, 0, 1, 1], [], []>} : vector<14x30xf32>, vector<30x448xf32>, vector<14x448xf32> -> vector<14x448xf32>
    %35 = arith.addf %33, %34 : vector<14x448xf32>
    %36 = arith.maximumf %30, %35 : vector<14x448xf32>
    %cst_26 = arith.constant dense<0.000000e+00> : vector<14x448xf32>
    %37 = tpu.matmul %5, %15, %cst_26 {dimension_numbers = #tpu.dot_dimension_numbers<[1], [0], [0], [1], [0, 0, 1, 1], [], []>} : vector<14x30xf32>, vector<30x448xf32>, vector<14x448xf32> -> vector<14x448xf32>
    %cst_27 = arith.constant dense<0.000000e+00> : vector<14x448xf32>
    %38 = tpu.matmul %6, %17, %cst_27 {dimension_numbers = #tpu.dot_dimension_numbers<[1], [0], [0], [1], [0, 0, 1, 1], [], []>} : vector<14x30xf32>, vector<30x448xf32>, vector<14x448xf32> -> vector<14x448xf32>
    %39 = arith.addf %37, %38 : vector<14x448xf32>
    %cst_28 = arith.constant dense<0.000000e+00> : vector<14x448xf32>
    %40 = tpu.matmul %7, %19, %cst_28 {dimension_numbers = #tpu.dot_dimension_numbers<[1], [0], [0], [1], [0, 0, 1, 1], [], []>} : vector<14x30xf32>, vector<30x448xf32>, vector<14x448xf32> -> vector<14x448xf32>
    %41 = arith.addf %39, %40 : vector<14x448xf32>
    %42 = arith.maximumf %36, %41 : vector<14x448xf32>
    %c0_29 = arith.constant 0 : index
    %c0_30 = arith.constant 0 : index
    %43 = vector.load %arg4[%c0_29, %c0_30] : memref<1x448xf32, #tpu.memory_space<vmem>>, vector<1x448xf32>
    %44 = vector.broadcast %43 : vector<1x448xf32> to vector<14x448xf32>
    %45 = arith.addf %42, %44 : vector<14x448xf32>
    %cst_31 = arith.constant 0.000000e+00 : f32
    %46 = vector.broadcast %cst_31 : f32 to vector<14x448xf32>
    %47 = arith.maximumf %45, %46 : vector<14x448xf32>
    %c0_32 = arith.constant 0 : index
    %c0_33 = arith.constant 0 : index
    %48 = vector.load %arg6[%c0_32, %c0_33] : memref<1x10xf32, #tpu.memory_space<vmem>>, vector<1x10xf32>
    %49 = vector.extract_strided_slice %47 {offsets = [0, 0], sizes = [1, 448], strides = [1, 1]} : vector<14x448xf32> to vector<1x448xf32>
    %c0_34 = arith.constant 0 : index
    %c0_35 = arith.constant 0 : index
    %c0_36 = arith.constant 0 : index
    %50 = vector.load %arg5[%c0_34, %c0_35, %c0_36] : memref<14x448x10xf32, #tpu.memory_space<vmem>>, vector<1x448x10xf32>
    %51 = vector.shape_cast %50 : vector<1x448x10xf32> to vector<448x10xf32>
    %cst_37 = arith.constant dense<0.000000e+00> : vector<1x10xf32>
    %52 = tpu.matmul %49, %51, %cst_37 {dimension_numbers = #tpu.dot_dimension_numbers<[1], [0], [0], [1], [0, 0, 1, 1], [], []>} : vector<1x448xf32>, vector<448x10xf32>, vector<1x10xf32> -> vector<1x10xf32>
    %53 = arith.addf %48, %52 : vector<1x10xf32>
    %54 = vector.extract_strided_slice %47 {offsets = [1, 0], sizes = [1, 448], strides = [1, 1]} : vector<14x448xf32> to vector<1x448xf32>
    %c1_38 = arith.constant 1 : index
    %c0_39 = arith.constant 0 : index
    %c0_40 = arith.constant 0 : index
    %55 = vector.load %arg5[%c1_38, %c0_39, %c0_40] : memref<14x448x10xf32, #tpu.memory_space<vmem>>, vector<1x448x10xf32>
    %56 = vector.shape_cast %55 : vector<1x448x10xf32> to vector<448x10xf32>
    %cst_41 = arith.constant dense<0.000000e+00> : vector<1x10xf32>
    %57 = tpu.matmul %54, %56, %cst_41 {dimension_numbers = #tpu.dot_dimension_numbers<[1], [0], [0], [1], [0, 0, 1, 1], [], []>} : vector<1x448xf32>, vector<448x10xf32>, vector<1x10xf32> -> vector<1x10xf32>
    %58 = arith.addf %53, %57 : vector<1x10xf32>
    %59 = vector.extract_strided_slice %47 {offsets = [2, 0], sizes = [1, 448], strides = [1, 1]} : vector<14x448xf32> to vector<1x448xf32>
    %c2_42 = arith.constant 2 : index
    %c0_43 = arith.constant 0 : index
    %c0_44 = arith.constant 0 : index
    %60 = vector.load %arg5[%c2_42, %c0_43, %c0_44] : memref<14x448x10xf32, #tpu.memory_space<vmem>>, vector<1x448x10xf32>
    %61 = vector.shape_cast %60 : vector<1x448x10xf32> to vector<448x10xf32>
    %cst_45 = arith.constant dense<0.000000e+00> : vector<1x10xf32>
    %62 = tpu.matmul %59, %61, %cst_45 {dimension_numbers = #tpu.dot_dimension_numbers<[1], [0], [0], [1], [0, 0, 1, 1], [], []>} : vector<1x448xf32>, vector<448x10xf32>, vector<1x10xf32> -> vector<1x10xf32>
    %63 = arith.addf %58, %62 : vector<1x10xf32>
    %64 = vector.extract_strided_slice %47 {offsets = [3, 0], sizes = [1, 448], strides = [1, 1]} : vector<14x448xf32> to vector<1x448xf32>
    %c3_46 = arith.constant 3 : index
    %c0_47 = arith.constant 0 : index
    %c0_48 = arith.constant 0 : index
    %65 = vector.load %arg5[%c3_46, %c0_47, %c0_48] : memref<14x448x10xf32, #tpu.memory_space<vmem>>, vector<1x448x10xf32>
    %66 = vector.shape_cast %65 : vector<1x448x10xf32> to vector<448x10xf32>
    %cst_49 = arith.constant dense<0.000000e+00> : vector<1x10xf32>
    %67 = tpu.matmul %64, %66, %cst_49 {dimension_numbers = #tpu.dot_dimension_numbers<[1], [0], [0], [1], [0, 0, 1, 1], [], []>} : vector<1x448xf32>, vector<448x10xf32>, vector<1x10xf32> -> vector<1x10xf32>
    %68 = arith.addf %63, %67 : vector<1x10xf32>
    %69 = vector.extract_strided_slice %47 {offsets = [4, 0], sizes = [1, 448], strides = [1, 1]} : vector<14x448xf32> to vector<1x448xf32>
    %c4_50 = arith.constant 4 : index
    %c0_51 = arith.constant 0 : index
    %c0_52 = arith.constant 0 : index
    %70 = vector.load %arg5[%c4_50, %c0_51, %c0_52] : memref<14x448x10xf32, #tpu.memory_space<vmem>>, vector<1x448x10xf32>
    %71 = vector.shape_cast %70 : vector<1x448x10xf32> to vector<448x10xf32>
    %cst_53 = arith.constant dense<0.000000e+00> : vector<1x10xf32>
    %72 = tpu.matmul %69, %71, %cst_53 {dimension_numbers = #tpu.dot_dimension_numbers<[1], [0], [0], [1], [0, 0, 1, 1], [], []>} : vector<1x448xf32>, vector<448x10xf32>, vector<1x10xf32> -> vector<1x10xf32>
    %73 = arith.addf %68, %72 : vector<1x10xf32>
    %74 = vector.extract_strided_slice %47 {offsets = [5, 0], sizes = [1, 448], strides = [1, 1]} : vector<14x448xf32> to vector<1x448xf32>
    %c5_54 = arith.constant 5 : index
    %c0_55 = arith.constant 0 : index
    %c0_56 = arith.constant 0 : index
    %75 = vector.load %arg5[%c5_54, %c0_55, %c0_56] : memref<14x448x10xf32, #tpu.memory_space<vmem>>, vector<1x448x10xf32>
    %76 = vector.shape_cast %75 : vector<1x448x10xf32> to vector<448x10xf32>
    %cst_57 = arith.constant dense<0.000000e+00> : vector<1x10xf32>
    %77 = tpu.matmul %74, %76, %cst_57 {dimension_numbers = #tpu.dot_dimension_numbers<[1], [0], [0], [1], [0, 0, 1, 1], [], []>} : vector<1x448xf32>, vector<448x10xf32>, vector<1x10xf32> -> vector<1x10xf32>
    %78 = arith.addf %73, %77 : vector<1x10xf32>
    %79 = vector.extract_strided_slice %47 {offsets = [6, 0], sizes = [1, 448], strides = [1, 1]} : vector<14x448xf32> to vector<1x448xf32>
    %c6 = arith.constant 6 : index
    %c0_58 = arith.constant 0 : index
    %c0_59 = arith.constant 0 : index
    %80 = vector.load %arg5[%c6, %c0_58, %c0_59] : memref<14x448x10xf32, #tpu.memory_space<vmem>>, vector<1x448x10xf32>
    %81 = vector.shape_cast %80 : vector<1x448x10xf32> to vector<448x10xf32>
    %cst_60 = arith.constant dense<0.000000e+00> : vector<1x10xf32>
    %82 = tpu.matmul %79, %81, %cst_60 {dimension_numbers = #tpu.dot_dimension_numbers<[1], [0], [0], [1], [0, 0, 1, 1], [], []>} : vector<1x448xf32>, vector<448x10xf32>, vector<1x10xf32> -> vector<1x10xf32>
    %83 = arith.addf %78, %82 : vector<1x10xf32>
    %84 = vector.extract_strided_slice %47 {offsets = [7, 0], sizes = [1, 448], strides = [1, 1]} : vector<14x448xf32> to vector<1x448xf32>
    %c7 = arith.constant 7 : index
    %c0_61 = arith.constant 0 : index
    %c0_62 = arith.constant 0 : index
    %85 = vector.load %arg5[%c7, %c0_61, %c0_62] : memref<14x448x10xf32, #tpu.memory_space<vmem>>, vector<1x448x10xf32>
    %86 = vector.shape_cast %85 : vector<1x448x10xf32> to vector<448x10xf32>
    %cst_63 = arith.constant dense<0.000000e+00> : vector<1x10xf32>
    %87 = tpu.matmul %84, %86, %cst_63 {dimension_numbers = #tpu.dot_dimension_numbers<[1], [0], [0], [1], [0, 0, 1, 1], [], []>} : vector<1x448xf32>, vector<448x10xf32>, vector<1x10xf32> -> vector<1x10xf32>
    %88 = arith.addf %83, %87 : vector<1x10xf32>
    %89 = vector.extract_strided_slice %47 {offsets = [8, 0], sizes = [1, 448], strides = [1, 1]} : vector<14x448xf32> to vector<1x448xf32>
    %c8 = arith.constant 8 : index
    %c0_64 = arith.constant 0 : index
    %c0_65 = arith.constant 0 : index
    %90 = vector.load %arg5[%c8, %c0_64, %c0_65] : memref<14x448x10xf32, #tpu.memory_space<vmem>>, vector<1x448x10xf32>
    %91 = vector.shape_cast %90 : vector<1x448x10xf32> to vector<448x10xf32>
    %cst_66 = arith.constant dense<0.000000e+00> : vector<1x10xf32>
    %92 = tpu.matmul %89, %91, %cst_66 {dimension_numbers = #tpu.dot_dimension_numbers<[1], [0], [0], [1], [0, 0, 1, 1], [], []>} : vector<1x448xf32>, vector<448x10xf32>, vector<1x10xf32> -> vector<1x10xf32>
    %93 = arith.addf %88, %92 : vector<1x10xf32>
    %94 = vector.extract_strided_slice %47 {offsets = [9, 0], sizes = [1, 448], strides = [1, 1]} : vector<14x448xf32> to vector<1x448xf32>
    %c9 = arith.constant 9 : index
    %c0_67 = arith.constant 0 : index
    %c0_68 = arith.constant 0 : index
    %95 = vector.load %arg5[%c9, %c0_67, %c0_68] : memref<14x448x10xf32, #tpu.memory_space<vmem>>, vector<1x448x10xf32>
    %96 = vector.shape_cast %95 : vector<1x448x10xf32> to vector<448x10xf32>
    %cst_69 = arith.constant dense<0.000000e+00> : vector<1x10xf32>
    %97 = tpu.matmul %94, %96, %cst_69 {dimension_numbers = #tpu.dot_dimension_numbers<[1], [0], [0], [1], [0, 0, 1, 1], [], []>} : vector<1x448xf32>, vector<448x10xf32>, vector<1x10xf32> -> vector<1x10xf32>
    %98 = arith.addf %93, %97 : vector<1x10xf32>
    %99 = vector.extract_strided_slice %47 {offsets = [10, 0], sizes = [1, 448], strides = [1, 1]} : vector<14x448xf32> to vector<1x448xf32>
    %c10 = arith.constant 10 : index
    %c0_70 = arith.constant 0 : index
    %c0_71 = arith.constant 0 : index
    %100 = vector.load %arg5[%c10, %c0_70, %c0_71] : memref<14x448x10xf32, #tpu.memory_space<vmem>>, vector<1x448x10xf32>
    %101 = vector.shape_cast %100 : vector<1x448x10xf32> to vector<448x10xf32>
    %cst_72 = arith.constant dense<0.000000e+00> : vector<1x10xf32>
    %102 = tpu.matmul %99, %101, %cst_72 {dimension_numbers = #tpu.dot_dimension_numbers<[1], [0], [0], [1], [0, 0, 1, 1], [], []>} : vector<1x448xf32>, vector<448x10xf32>, vector<1x10xf32> -> vector<1x10xf32>
    %103 = arith.addf %98, %102 : vector<1x10xf32>
    %104 = vector.extract_strided_slice %47 {offsets = [11, 0], sizes = [1, 448], strides = [1, 1]} : vector<14x448xf32> to vector<1x448xf32>
    %c11 = arith.constant 11 : index
    %c0_73 = arith.constant 0 : index
    %c0_74 = arith.constant 0 : index
    %105 = vector.load %arg5[%c11, %c0_73, %c0_74] : memref<14x448x10xf32, #tpu.memory_space<vmem>>, vector<1x448x10xf32>
    %106 = vector.shape_cast %105 : vector<1x448x10xf32> to vector<448x10xf32>
    %cst_75 = arith.constant dense<0.000000e+00> : vector<1x10xf32>
    %107 = tpu.matmul %104, %106, %cst_75 {dimension_numbers = #tpu.dot_dimension_numbers<[1], [0], [0], [1], [0, 0, 1, 1], [], []>} : vector<1x448xf32>, vector<448x10xf32>, vector<1x10xf32> -> vector<1x10xf32>
    %108 = arith.addf %103, %107 : vector<1x10xf32>
    %109 = vector.extract_strided_slice %47 {offsets = [12, 0], sizes = [1, 448], strides = [1, 1]} : vector<14x448xf32> to vector<1x448xf32>
    %c12 = arith.constant 12 : index
    %c0_76 = arith.constant 0 : index
    %c0_77 = arith.constant 0 : index
    %110 = vector.load %arg5[%c12, %c0_76, %c0_77] : memref<14x448x10xf32, #tpu.memory_space<vmem>>, vector<1x448x10xf32>
    %111 = vector.shape_cast %110 : vector<1x448x10xf32> to vector<448x10xf32>
    %cst_78 = arith.constant dense<0.000000e+00> : vector<1x10xf32>
    %112 = tpu.matmul %109, %111, %cst_78 {dimension_numbers = #tpu.dot_dimension_numbers<[1], [0], [0], [1], [0, 0, 1, 1], [], []>} : vector<1x448xf32>, vector<448x10xf32>, vector<1x10xf32> -> vector<1x10xf32>
    %113 = arith.addf %108, %112 : vector<1x10xf32>
    %114 = vector.extract_strided_slice %47 {offsets = [13, 0], sizes = [1, 448], strides = [1, 1]} : vector<14x448xf32> to vector<1x448xf32>
    %c13 = arith.constant 13 : index
    %c0_79 = arith.constant 0 : index
    %c0_80 = arith.constant 0 : index
    %115 = vector.load %arg5[%c13, %c0_79, %c0_80] : memref<14x448x10xf32, #tpu.memory_space<vmem>>, vector<1x448x10xf32>
    %116 = vector.shape_cast %115 : vector<1x448x10xf32> to vector<448x10xf32>
    %cst_81 = arith.constant dense<0.000000e+00> : vector<1x10xf32>
    %117 = tpu.matmul %114, %116, %cst_81 {dimension_numbers = #tpu.dot_dimension_numbers<[1], [0], [0], [1], [0, 0, 1, 1], [], []>} : vector<1x448xf32>, vector<448x10xf32>, vector<1x10xf32> -> vector<1x10xf32>
    %118 = arith.addf %113, %117 : vector<1x10xf32>
    %c0_82 = arith.constant 0 : index
    %c0_83 = arith.constant 0 : index
    %c0_84 = arith.constant 0 : index
    %119 = vector.load %arg7[%c0_82, %c0_83, %c0_84] : memref<1x1x10xf32, #tpu.memory_space<vmem>>, vector<1x1x10xf32>
    %120 = vector.shape_cast %119 : vector<1x1x10xf32> to vector<1x10xf32>
    %121 = vector.shape_cast %118 : vector<1x10xf32> to vector<1x1x10xf32>
    tpu.vector_store %arg7[%c0_82, %c0_83, %c0_84], %121 {strides = array<i32>} : memref<1x1x10xf32, #tpu.memory_space<vmem>>, vector<1x1x10xf32>,
    return
  }
  func.func @transform_0(%arg0: i32) -> (i32, i32, i32) {
    %c0_i32 = arith.constant 0 : i32
    %c0_i32_0 = arith.constant 0 : i32
    %c0_i32_1 = arith.constant 0 : i32
    return %arg0, %c0_i32, %c0_i32_0 : i32, i32, i32
  }
  func.func @transform_1(%arg0: i32) -> (i32, i32, i32) {
    %c0_i32 = arith.constant 0 : i32
    %c0_i32_0 = arith.constant 0 : i32
    %c0_i32_1 = arith.constant 0 : i32
    return %arg0, %c0_i32, %c0_i32_0 : i32, i32, i32
  }
  func.func @transform_2(%arg0: i32) -> (i32, i32, i32) {
    %c0_i32 = arith.constant 0 : i32
    %c0_i32_0 = arith.constant 0 : i32
    %c0_i32_1 = arith.constant 0 : i32
    %c0_i32_2 = arith.constant 0 : i32
    return %c0_i32, %c0_i32_0, %c0_i32_1 : i32, i32, i32
  }
  func.func @transform_3(%arg0: i32) -> (i32, i32) {
    %c0_i32 = arith.constant 0 : i32
    %c0_i32_0 = arith.constant 0 : i32
    %c0_i32_1 = arith.constant 0 : i32
    return %c0_i32, %c0_i32_0 : i32, i32
  }
  func.func @transform_4(%arg0: i32) -> (i32, i32, i32) {
    %c0_i32 = arith.constant 0 : i32
    %c0_i32_0 = arith.constant 0 : i32
    %c0_i32_1 = arith.constant 0 : i32
    %c0_i32_2 = arith.constant 0 : i32
    return %c0_i32, %c0_i32_0, %c0_i32_1 : i32, i32, i32
  }
  func.func @transform_5(%arg0: i32) -> (i32, i32) {
    %c0_i32 = arith.constant 0 : i32
    %c0_i32_0 = arith.constant 0 : i32
    %c0_i32_1 = arith.constant 0 : i32
    return %c0_i32, %c0_i32_0 : i32, i32
  }
  func.func @transform_6(%arg0: i32) -> (i32, i32, i32) {
    %c0_i32 = arith.constant 0 : i32
    %c0_i32_0 = arith.constant 0 : i32
    %c0_i32_1 = arith.constant 0 : i32
    return %arg0, %c0_i32, %c0_i32_0 : i32, i32, i32
  }
}

</mosaic_0001>

<bundles_post_ra>
// kernel: onelayer_cnn_forward.1
= control target key start
LH: loop header
LB: loop body
LE: loop exit
PB: predicated region body
PF: predicated region fallthrough
CT: control target
= control target key end

     0   :  { %11 = vsyncpa [#allocation3], 0  ;;  %s8676_s0 = inlined_call_operand.vmem [shape: f32[2,15,30], index: 0, kind: input, shape index: {}]   ;;  %s8677_s1 = inlined_call_operand.vmem [shape: f32[2,15,30], index: 1, kind: input, shape index: {}]   ;;  %s8678_s2 = inlined_call_operand.vmem [shape: f32[6,30,448], index: 2, kind: input, shape index: {}]   ;;  %s8679_s3 = inlined_call_operand.vmem [shape: f32[1,448], index: 3, kind: input, shape index: {}]   ;;  %s8680_s4 = inlined_call_operand.vmem [shape: f32[14,448,10], index: 4, kind: input, shape index: {}]   ;;  %s8681_s5 = inlined_call_operand.vmem [shape: f32[1,10], index: 5, kind: input, shape index: {}]   ;;  %s8682_s6 = inlined_call_operand.hbm [shape: f32[2,1,10], index: 6, kind: output, shape index: {}]  }
   0x1   :  { %13 = vsyncpa [#allocation3 + $0x1], 0  ;;  %s4920_s21 = smov 0   ;;  %s4922_s22 = smov 0  }
   0x2   :  { %s4924_s23 = smov 0   ;;  %s4926_s24 = smov 0  }
   0x3 LB: > { %s4941_s25 = sadd.s32 4294967295, %s4883_s24   ;;  %s3796_s26 = sadd.s32 4294967294, %s4883_s24   ;;  %s4883_s24 = sphi %s4926_s24, %s8812_s24   ;;  %s4879_s23 = sphi %s4924_s23, %s8811_s23   ;;  %s4875_s22 = sphi %s4922_s22, %s8810_s22   ;;  %s4871_s21 = sphi %s4920_s21, %s8809_s21  }
   0x4   : > { %s4945_s27 = sadd.s32 1, %s4883_s24   ;;  %s162_s28 = sadd.s32 1, %s4879_s23 }
   0x5   : > { %s159_s29 = ssub.s32 %s4883_s24, %s4945_s27  ;;  %p172_p0 = scmp.ne.s32.totalorder %s4879_s23, %s4875_s22 }
   0x6   : > { %p160_p1 = scmp.eq.s32.totalorder %s159_s29, 0  ;;  %p173_p2 = scmp.eq.s32.totalorder %s4941_s25, 1 }
   0x7   : > { %p178_p3 = scmp.ne.s32.totalorder %s4875_s22, %s4871_s21  ;;  %p179_p4 = scmp.eq.s32.totalorder %s3796_s26, 1 }
   0x8   : > { %s4956_s30 = scalar_select %p160_p1, %s4879_s23, %s162_s28  }
   0x9   : > { %p4958_p5 = por %p173_p2, %p172_p0  ;;  %p4962_p6 = por %p179_p4, %p178_p3 }
   0xa   : > { %p3799_p7 = scmp.ge.s32.totalorder %s4883_s24, 1  ;;  %p225_p8 = scmp.lt.s32.totalorder %s4883_s24, 3 }
   0xc   : > { %p226_p9 = pnand %p3799_p7, %p225_p8 }
   0xe   : > { %229 = sbr.rel (%p226_p9) target bundleno = 857 (0x359), region = 44 }
  0x13   : > { %v4971_v0 = vld [vmem:[%s8678_s2 + $0xe0] sm:$0x3f]  ;;  %vm381_vm0 = vcmask 1045504   ;;  %v4976_v1 = vld [vmem:[%s8678_s2 + $0xe8] sm:$0x3f]  ;;  %p259_p10 = scmp.lt.s32.totalorder %s4941_s25, 1  ;;  %s3725_s20 = scalar_lea.hbm %s8682_s6, %s4941_s25 }
  0x14   : > { %v4981_v2 = vld [vmem:[%s8678_s2 + $0xc0] sm:$0xff]  ;;  %3884 = vmatpush.msk.msra.mxu0 %vm381_vm0, %v4971_v0  ;;  %4774 = vmatpush.msk.msra.mxu2 %vm381_vm0, %v4971_v0  ;;  %v4990_v3 = vld [vmem:[%s8678_s2 + $0xc8] sm:$0xff]  ;;  %vm374_vm1 = vcmask 244736   ;;  %v5045_v10 = vld [vmem:[%s8678_s2 + $0xf0] sm:$0x3f]  ;;  %vm596_vm2 = vcmask 1046528  }
  0x15   : > { %3887 = vmatpush.msk.msra.mxu1 %vm381_vm0, %v4976_v1  ;;  %4778 = vmatpush.msk.msra.mxu3 %vm381_vm0, %v4976_v1  ;;  %v5000_v4 = vld [vmem:[%s8678_s2 + $0xa0] sm:$0xff]  ;;  %v5007_v5 = vld [vmem:[%s8678_s2 + $0xa8] sm:$0xff]  ;;  %s5010_s26 = scalar_select %p259_p10, %s4941_s25, 1  ;;  %v5050_v11 = vld [vmem:[%s8678_s2 + $0xf8] sm:$0x3f]  ;;  %vm1718_vm3 = vcmask 523264  }
  0x16   : > { %407 = vmatpush.msra.mxu0 %v4981_v2  ;;  %4775 = vmatpush.msra.mxu2 %v4981_v2  ;;  %v5017_v6 = vld [vmem:[%s8678_s2 + $0x80] sm:$0xff]  ;;  %v5024_v7 = vld [vmem:[%s8678_s2 + $0x88] sm:$0xff]  ;;  %v5073_v14 = vld [vmem:[%s8678_s2 + $0xd0] sm:$0xff]  ;;  %s257_s16 = sand.u32 1, %s4875_s22   ;;  %s3729_s9 = sshll.u32 %s3725_s20, 4  ;;  %vm3714_vm4 = vcmask 73728   ;;  %s3730_s9 = int_to_ptr.hbm [resolvable:$true] %s3729_s9 }
  0x17   : > { %430 = vmatpush.msra.mxu1 %v4990_v3  ;;  %4779 = vmatpush.msra.mxu3 %v4990_v3  ;;  %s4772_s11 = sshll.u32 %s5010_s26, 4  ;;  %v5059_v12 = vld [vmem:[%s8678_s2 + $0x60] sm:$0x3f]  ;;  %v5064_v13 = vld [vmem:[%s8678_s2 + $0x68] sm:$0x3f]  ;;  %v5078_v15 = vld [vmem:[%s8678_s2 + $0xd8] sm:$0xff] }
  0x18   : > { %408 = vmatpush.msra.mxu0 %v5000_v4  ;;  %4776 = vmatpush.msra.mxu2 %v5000_v4  ;;  %s268_s14 = scalar_lea.vmem %s8677_s1, %s4772_s11  ;;  %v5087_v16 = vld [vmem:[%s8678_s2 + $0x40] sm:$0xff]  ;;  %v5092_v17 = vld [vmem:[%s8678_s2 + $0x48] sm:$0xff]  ;;  %v5101_v18 = vld [vmem:[%s8678_s2 + $0xb0] sm:$0xff]  ;;  %s5137_s19 = scalar_lea.vmem %s8676_s0, %s4772_s11 }
  0x19   : > { %431 = vmatpush.msra.mxu1 %v5007_v5  ;;  %4780 = vmatpush.msra.mxu3 %v5007_v5  ;;  %v5036_v8 = vld [vmem:[%s268_s14] sm:$0xff]  ;;  %v5038_v9 = vld [vmem:[%s268_s14 + $0x8] sm:$0x7f]  ;;  %v5106_v19 = vld [vmem:[%s8678_s2 + $0xb8] sm:$0xff]  ;;  %s258_s28 = scalar_lea.vmem [#allocation2], %s257_s16  ;;  %s4835_s26 = sshra.s32 %s3730_s9, 4  ;;  %s4836_s26 = int_to_ptr.hbm [resolvable:$true] %s4835_s26 }
  0x1a   : > { %409 = vmatpush.msra.mxu0 %v5017_v6  ;;  %4777 = vmatpush.msra.mxu2 %v5017_v6  ;;  %v5113_v20 = vld [vmem:[%s8678_s2 + $0x20] sm:$0xff]  ;;  %v5118_v21 = vld [vmem:[%s8678_s2 + $0x28] sm:$0xff]  ;;  %v5125_v22 = vld [vmem:[%s8678_s2 + $0x90] sm:$0xff]  ;;  %s3727_s29 = sshll.u32 %s258_s28, 4  ;;  %s4837_s11 = scalar_lea.hbm %s4836_s26, 1  ;;  %s3728_s29 = int_to_ptr.vmem [resolvable:$true] %s3727_s29 }
  0x1b   : > { %432 = vmatpush.msra.mxu1 %v5024_v7  ;;  %4781 = vmatpush.msra.mxu3 %v5024_v7  ;;  %v5130_v23 = vld [vmem:[%s8678_s2 + $0x98] sm:$0xff]  ;;  %v5144_v24 = vld [vmem:[%s8678_s2] sm:$0xff]  ;;  %v5149_v25 = vld [vmem:[%s8678_s2 + $0x8] sm:$0xff]  ;;  %p4838_p11 = scmp.ne.s32.totalorder %s4836_s26, %s4837_s11  ;;  %s4841_s12 = scalar_lea.hbm %s8682_s6, 2 }
  0x1c   : > { %3885 = vmatmul.msk.f32.vlgmr.msra.gmra.mxu0 %vm374_vm1, %v5036_v8  ;;  %3886 = vmatmul.msk.f32.vlgmr.msra.gmra.mxu2 %vm374_vm1, %v5038_v9  ;;  %v5156_v26 = vld [vmem:[%s5137_s19] sm:$0xff]  ;;  %v5163_v27 = vld [vmem:[%s8678_s2 + $0x70] sm:$0x3f]  ;;  %v5168_v28 = vld [vmem:[%s8678_s2 + $0x78] sm:$0x3f]  ;;  %p4842_p0 = scmp.lt.s32.totalorder %s4836_s26, %s8682_s6  ;;  %p4843_p1 = scmp.lt.s32.totalorder %s4841_s12, %s4837_s11 }
  0x1d   : > { %3888 = vmatmul.msk.f32.vlgmr.msra.gmra.mxu1 %vm374_vm1, %v5036_v8  ;;  %3889 = vmatmul.msk.f32.vlgmr.msra.gmra.mxu3 %vm374_vm1, %v5038_v9  ;;  %v5177_v29 = vld [vmem:[%s8678_s2 + $0x160] sm:$0x3f]  ;;  %v5182_v30 = vld [vmem:[%s8678_s2 + $0x168] sm:$0x3f]  ;;  %v5191_v31 = vld [vmem:[%s8678_s2 + $0x50] sm:$0xff]  ;;  %v597_v46 = vrot.slane %v5156_v26, 1  ;;  %p4839_p12 = pnand %p4838_p11, %p4958_p5 }
  0x1e   : > { %3890 = vmatpush.msk.msrb.mxu2 %vm381_vm0, %v5045_v10  ;;  %3893 = vmatpush.msk.msrb.mxu3 %vm381_vm0, %v5050_v11  ;;  %v5196_v32 = vld [vmem:[%s8678_s2 + $0x58] sm:$0xff]  ;;  %v5205_v33 = vld [vmem:[%s8678_s2 + $0x140] sm:$0xff]  ;;  %v5210_v34 = vld [vmem:[%s8678_s2 + $0x148] sm:$0xff]  ;;  %p4844_p2 = por %p4843_p1, %p4842_p0 }
  0x1f   : > { %3896 = vmatpush.msk.msrb.mxu0 %vm381_vm0, %v5059_v12  ;;  %3899 = vmatpush.msk.msrb.mxu1 %vm381_vm0, %v5064_v13  ;;  %v5219_v35 = vld [vmem:[%s8678_s2 + $0x30] sm:$0xff]  ;;  %v5224_v36 = vld [vmem:[%s8678_s2 + $0x38] sm:$0xff]  ;;  %v5231_v37 = vld [vmem:[%s8678_s2 + $0x120] sm:$0xff]  ;;  %p4840_p13 = pneg %p4839_p12 }
  0x20   : > { %453 = vmatpush.msrb.mxu2 %v5073_v14  ;;  %476 = vmatpush.msrb.mxu3 %v5078_v15  ;;  %v5236_v38 = vld [vmem:[%s8678_s2 + $0x128] sm:$0xff]  ;;  %v5250_v40 = vld [vmem:[%s8678_s2 + $0x10] sm:$0xff]  ;;  %v5255_v41 = vld [vmem:[%s8678_s2 + $0x18] sm:$0xff] }
  0x21   : > { %517 = vmatpush.msrb.mxu0 %v5087_v16  ;;  %540 = vmatpush.msrb.mxu1 %v5092_v17  ;;  %v5241_v39 = vld [vmem:[%s5137_s19 + $0x8] sm:$0x7f]  ;;  %v5264_v42 = vld [vmem:[%s8678_s2 + $0x100] sm:$0xff]  ;;  %v5278_v44 = vld [vmem:[%s8678_s2 + $0x170] sm:$0x3f]  ;;  %s3717_s19 = scalar_lea.sflag [#allocation3], %s257_s16  ;;  %p4845_p3 = pnand %p4844_p2, %p4840_p13 }
  0x22   : > { %454 = vmatpush.msrb.mxu2 %v5101_v18  ;;  %477 = vmatpush.msrb.mxu3 %v5106_v19  ;;  %v5269_v43 = vld [vmem:[%s8678_s2 + $0x108] sm:$0xff]  ;;  %v5283_v45 = vld [vmem:[%s8678_s2 + $0x178] sm:$0x3f]  ;;  %v5287_v47 = vrot.slane %v5241_v39, 1  ;;  %v5294_v48 = vld [vmem:[%s8678_s2 + $0x260] sm:$0x3f] }
  0x23   : > { %518 = vmatpush.msrb.mxu0 %v5113_v20  ;;  %541 = vmatpush.msrb.mxu1 %v5118_v21  ;;  %v5299_v49 = vld [vmem:[%s8678_s2 + $0x268] sm:$0x3f]  ;;  %v5306_v50 = vld [vmem:[%s8678_s2 + $0x150] sm:$0xff]  ;;  %v5311_v51 = vld [vmem:[%s8678_s2 + $0x158] sm:$0xff] }
  0x24   : > { %455 = vmatpush.msrb.mxu2 %v5125_v22  ;;  %478 = vmatpush.msrb.mxu3 %v5130_v23  ;;  %v5320_v52 = vld [vmem:[%s8678_s2 + $0x240] sm:$0xff]  ;;  %v5325_v53 = vld [vmem:[%s8678_s2 + $0x248] sm:$0xff]  ;;  %v5333_v54 = vsel %vm596_vm2, %v597_v46, %v5287_v47  ;;  %v5342_v55 = vld [vmem:[%s8678_s2 + $0x130] sm:$0xff] }
  0x25   : > { %519 = vmatpush.msrb.mxu0 %v5144_v24  ;;  %542 = vmatpush.msrb.mxu1 %v5149_v25  ;;  %v5347_v56 = vld [vmem:[%s8678_s2 + $0x138] sm:$0xff]  ;;  %v5356_v57 = vld [vmem:[%s8678_s2 + $0x220] sm:$0xff]  ;;  %v5361_v58 = vld [vmem:[%s8678_s2 + $0x228] sm:$0xff] }
  0x26   : > { %3891 = vmatmul.msk.f32.vlgmr.msrb.gmra.mxu2 %vm374_vm1, %v5036_v8  ;;  %3894 = vmatmul.msk.f32.vlgmr.msrb.gmra.mxu3 %vm374_vm1, %v5036_v8  ;;  %8721 = vst [vmem:[#allocation5_spill] sm:$0xff] %v5356_v57  ;;  %v5370_v59 = vld [vmem:[%s8678_s2 + $0x110] sm:$0xff]  ;;  %v5375_v60 = vld [vmem:[%s8678_s2 + $0x118] sm:$0xff]  ;;  %v5382_v61 = vld [vmem:[%s8678_s2 + $0x200] sm:$0xff] }
  0x27   : > { %3897 = vmatmul.msk.f32.vlgmr.msrb.gmra.mxu0 %vm374_vm1, %v5156_v26  ;;  %3900 = vmatmul.msk.f32.vlgmr.msrb.gmra.mxu1 %vm374_vm1, %v5156_v26  ;;  %8722 = vst [vmem:[#allocation6_spill] sm:$0xff] %v5361_v58  ;;  %v5387_v62 = vld [vmem:[%s8678_s2 + $0x208] sm:$0xff]  ;;  %v5394_v63 = vld [vmem:[%s8678_s2 + $0x270] sm:$0x3f]  ;;  %v5399_v46 = vld [vmem:[%s8678_s2 + $0x278] sm:$0x3f] }
  0x28   : > { %3902 = vmatpush.msk.msra.mxu2 %vm381_vm0, %v5163_v27  ;;  %3905 = vmatpush.msk.msra.mxu3 %vm381_vm0, %v5168_v28  ;;  %8723 = vst [vmem:[#allocation7_spill] sm:$0xff] %v5370_v59 }
  0x29   : > { %3908 = vmatpush.msk.msra.mxu0 %vm381_vm0, %v5177_v29  ;;  %3911 = vmatpush.msk.msra.mxu1 %vm381_vm0, %v5182_v30  ;;  %8724 = vst [vmem:[#allocation8_spill] sm:$0xff] %v5375_v60 }
  0x2a   : > { %563 = vmatpush.msra.mxu2 %v5191_v31  ;;  %586 = vmatpush.msra.mxu3 %v5196_v32  ;;  %8725 = vst [vmem:[#allocation9_spill] sm:$0xff] %v5382_v61 }
  0x2b   : > { %629 = vmatpush.msra.mxu0 %v5205_v33  ;;  %652 = vmatpush.msra.mxu1 %v5210_v34  ;;  %8726 = vst [vmem:[#allocation10_spill] sm:$0xff] %v5387_v62 }
  0x2c   : > { %564 = vmatpush.msra.mxu2 %v5219_v35  ;;  %587 = vmatpush.msra.mxu3 %v5224_v36  ;;  %8727 = vst [vmem:[#allocation11_spill] sm:$0xff] %v5394_v63 }
  0x2d   : > { %630 = vmatpush.msra.mxu0 %v5231_v37  ;;  %653 = vmatpush.msra.mxu1 %v5236_v38  ;;  %8728 = vst [vmem:[#allocation12_spill] sm:$0xff] %v5399_v46 }
  0x2e   : > { %3892 = vmatmul.msk.f32.gmra.mxu2 %vm374_vm1, %v5038_v9  ;;  %3895 = vmatmul.msk.f32.gmra.mxu3 %vm374_vm1, %v5038_v9 }
  0x2f   : > { %3898 = vmatmul.msk.f32.gmra.mxu0 %vm374_vm1, %v5241_v39  ;;  %3901 = vmatmul.msk.f32.gmra.mxu1 %vm374_vm1, %v5241_v39 }
  0x30   : > { %565 = vmatpush.msra.mxu2 %v5250_v40  ;;  %588 = vmatpush.msra.mxu3 %v5255_v41 }
  0x31   : > { %631 = vmatpush.msra.mxu0 %v5264_v42  ;;  %654 = vmatpush.msra.mxu1 %v5269_v43 }
  0x32   : > { %3914 = vmatpush.msk.msrb.mxu2 %vm381_vm0, %v5278_v44  ;;  %3917 = vmatpush.msk.msrb.mxu3 %vm381_vm0, %v5283_v45 }
  0x33   : > { %3920 = vmatpush.msk.msrb.mxu0 %vm381_vm0, %v5294_v48  ;;  %3923 = vmatpush.msk.msrb.mxu1 %vm381_vm0, %v5299_v49 }
  0x34   : > { %675 = vmatpush.msrb.mxu2 %v5306_v50  ;;  %698 = vmatpush.msrb.mxu3 %v5311_v51 }
  0x35   : > { %741 = vmatpush.msrb.mxu0 %v5320_v52  ;;  %764 = vmatpush.msrb.mxu1 %v5325_v53 }
  0x36   : > { %3903 = vmatmul.msk.f32.vlgmr.msra.gmra.mxu2 %vm374_vm1, %v5156_v26  ;;  %3906 = vmatmul.msk.f32.vlgmr.msra.gmra.mxu3 %vm374_vm1, %v5156_v26 }
  0x37   : > { %3909 = vmatmul.msk.f32.vlgmr.msra.gmra.mxu0 %vm374_vm1, %v5333_v54  ;;  %3912 = vmatmul.msk.f32.vlgmr.msra.gmra.mxu1 %vm374_vm1, %v5333_v54 }
  0x38   : > { %676 = vmatpush.msrb.mxu2 %v5342_v55  ;;  %699 = vmatpush.msrb.mxu3 %v5347_v56 }
  0x39   : > { %742 = vmatpush.msrb.mxu0 %v5356_v57  ;;  %765 = vmatpush.msrb.mxu1 %v5361_v58  ;;  %v5406_v57 = vld [vmem:[%s8678_s2 + $0x1e0] sm:$0x3f]  ;;  %v5411_v58 = vld [vmem:[%s8678_s2 + $0x1e8] sm:$0x3f] }
  0x3a   : > { %677 = vmatpush.msrb.mxu2 %v5370_v59  ;;  %700 = vmatpush.msrb.mxu3 %v5375_v60  ;;  %8729 = vst [vmem:[#allocation13_spill] sm:$0xff] %v5406_v57  ;;  %v5426_v60 = vld [vmem:[%s8678_s2 + $0x250] sm:$0xff]  ;;  %v5471_v59 = vld [vmem:[%s8678_s2 + $0x1a8] sm:$0xff] }
  0x3b   : > { %8730 = vst [vmem:[#allocation14_spill] sm:$0xff] %v5411_v58  ;;  %743 = vmatpush.msrb.mxu0 %v5382_v61  ;;  %766 = vmatpush.msrb.mxu1 %v5387_v62  ;;  %v5431_v62 = vld [vmem:[%s8678_s2 + $0x258] sm:$0xff]  ;;  %v5466_v61 = vld [vmem:[%s8678_s2 + $0x1a0] sm:$0xff] }
  0x3c   : > { %3926 = vmatpush.msk.msra.mxu2 %vm381_vm0, %v5394_v63  ;;  %3929 = vmatpush.msk.msra.mxu3 %vm381_vm0, %v5399_v46  ;;  %8731 = vst [vmem:[#allocation15_spill] sm:$0xff] %v5426_v60  ;;  %v5454_v46 = vld [vmem:[%s8678_s2 + $0x230] sm:$0xff]  ;;  %v5459_v63 = vld [vmem:[%s8678_s2 + $0x238] sm:$0xff] }
  0x3d   : > { %3932 = vmatpush.msk.msra.mxu0 %vm381_vm0, %v5406_v57  ;;  %3935 = vmatpush.msk.msra.mxu1 %vm381_vm0, %v5411_v58  ;;  %8732 = vst [vmem:[#allocation16_spill] sm:$0xff] %v5431_v62  ;;  %v5440_v58 = vld [vmem:[%s8678_s2 + $0x1c0] sm:$0xff]  ;;  %v5445_v57 = vld [vmem:[%s8678_s2 + $0x1c8] sm:$0xff] }
  0x3e   : > { %3904 = vmatmul.msk.f32.gmra.mxu2 %vm374_vm1, %v5241_v39  ;;  %3907 = vmatmul.msk.f32.gmra.mxu3 %vm374_vm1, %v5241_v39  ;;  %8733 = vst [vmem:[#allocation17_spill] sm:$0xff] %v5440_v58 }
  0x3f   : > { %8734 = vst [vmem:[#allocation18_spill] sm:$0xff] %v5445_v57  ;;  %3910 = vmatmul.msk.f32.gmra.mxu0 %vm374_vm1, %v5287_v47  ;;  %3913 = vmatmul.msk.f32.gmra.mxu1 %vm374_vm1, %v5287_v47 }
  0x40   : > { %8735 = vst [vmem:[#allocation19_spill] sm:$0xff] %v5454_v46  ;;  %787 = vmatpush.msra.mxu2 %v5426_v60  ;;  %810 = vmatpush.msra.mxu3 %v5431_v62  ;;  %v5478_v60 = vld [vmem:[%s8678_s2 + $0x210] sm:$0xff]  ;;  %v5483_v62 = vld [vmem:[%s8678_s2 + $0x218] sm:$0xff] }
  0x41   : > { %8736 = vst [vmem:[#allocation20_spill] sm:$0xff] %v5459_v63  ;;  %845 = vmatpush.msra.mxu0 %v5440_v58  ;;  %868 = vmatpush.msra.mxu1 %v5445_v57  ;;  %v5490_v58 = vld [vmem:[%s8678_s2 + $0x180] sm:$0xff]  ;;  %v5495_v57 = vld [vmem:[%s8678_s2 + $0x188] sm:$0xff] }
  0x42   : > { %8737 = vst [vmem:[#allocation21_spill] sm:$0xff] %v5466_v61  ;;  %788 = vmatpush.msra.mxu2 %v5454_v46  ;;  %811 = vmatpush.msra.mxu3 %v5459_v63  ;;  %v5506_v63 = vld [vmem:[%s8678_s2 + $0x1f0] sm:$0x3f]  ;;  %v5511_v46 = vld [vmem:[%s8678_s2 + $0x1f8] sm:$0x3f] }
  0x43   : > { %8738 = vst [vmem:[#allocation22_spill] sm:$0xff] %v5471_v59  ;;  %846 = vmatpush.msra.mxu0 %v5466_v61  ;;  %869 = vmatpush.msra.mxu1 %v5471_v59  ;;  %v5548_v59 = vld [vmem:[%s8678_s2 + $0x2c0] sm:$0xff]  ;;  %v5553_v61 = vld [vmem:[%s8678_s2 + $0x2c8] sm:$0xff] }
  0x44   : > { %8739 = vst [vmem:[#allocation23_spill] sm:$0xff] %v5478_v60  ;;  %789 = vmatpush.msra.mxu2 %v5478_v60  ;;  %812 = vmatpush.msra.mxu3 %v5483_v62  ;;  %v5539_v60 = vld [vmem:[%s8678_s2 + $0x1d8] sm:$0xff] }
  0x45   : > { %8740 = vst [vmem:[#allocation24_spill] sm:$0xff] %v5483_v62  ;;  %847 = vmatpush.msra.mxu0 %v5490_v58  ;;  %870 = vmatpush.msra.mxu1 %v5495_v57  ;;  %v5534_v62 = vld [vmem:[%s8678_s2 + $0x1d0] sm:$0xff] }
  0x46   : > { %8741 = vst [vmem:[#allocation25_spill] sm:$0xff] %v5490_v58  ;;  %3915 = vmatmul.msk.f32.vlgmr.msrb.gmra.mxu2 %vm374_vm1, %v5333_v54  ;;  %3918 = vmatmul.msk.f32.vlgmr.msrb.gmra.mxu3 %vm374_vm1, %v5333_v54  ;;  %v5525_v58 = vld [vmem:[%s8678_s2 + $0x2e8] sm:$0x3f] }
  0x47   : > { %8742 = vst [vmem:[#allocation26_spill] sm:$0xff] %v5495_v57  ;;  %v5520_v57 = vld [vmem:[%s8678_s2 + $0x2e0] sm:$0x3f]  ;;  %3921 = vmatmul.msk.f32.vlgmr.msrb.gmra.mxu0 %vm374_vm1, %v5036_v8  ;;  %3924 = vmatmul.msk.f32.vlgmr.msrb.gmra.mxu1 %vm374_vm1, %v5036_v8 }
  0x48   : > { %8743 = vst [vmem:[#allocation27_spill] sm:$0xff] %v5506_v63  ;;  %3938 = vmatpush.msk.msrb.mxu2 %vm381_vm0, %v5506_v63  ;;  %3941 = vmatpush.msk.msrb.mxu3 %vm381_vm0, %v5511_v46  ;;  %v5567_v63 = vld [vmem:[%s8678_s2 + $0x1b8] sm:$0xff] }
  0x49   : > { %8744 = vst [vmem:[#allocation28_spill] sm:$0xff] %v5511_v46  ;;  %3944 = vmatpush.msk.msrb.mxu0 %vm381_vm0, %v5520_v57  ;;  %3947 = vmatpush.msk.msrb.mxu1 %vm381_vm0, %v5525_v58  ;;  %v5562_v46 = vld [vmem:[%s8678_s2 + $0x1b0] sm:$0xff] }
  0x4a   : > { %8745 = vst [vmem:[#allocation29_spill] sm:$0xff] %v5520_v57  ;;  %891 = vmatpush.msrb.mxu2 %v5534_v62  ;;  %914 = vmatpush.msrb.mxu3 %v5539_v60  ;;  %v5574_v57 = vld [vmem:[%s8678_s2 + $0x2a0] sm:$0xff] }
  0x4b   : > { %8746 = vst [vmem:[#allocation30_spill] sm:$0xff] %v5525_v58  ;;  %v5579_v58 = vld [vmem:[%s8678_s2 + $0x2a8] sm:$0xff]  ;;  %949 = vmatpush.msrb.mxu0 %v5548_v59  ;;  %972 = vmatpush.msrb.mxu1 %v5553_v61 }
  0x4c   : > { %8747 = vst [vmem:[#allocation31_spill] sm:$0xff] %v5534_v62  ;;  %892 = vmatpush.msrb.mxu2 %v5562_v46  ;;  %915 = vmatpush.msrb.mxu3 %v5567_v63  ;;  %v5595_v62 = vld [vmem:[%s8678_s2 + $0x198] sm:$0xff] }
  0x4d   : > { %8748 = vst [vmem:[#allocation32_spill] sm:$0xff] %v5539_v60  ;;  %950 = vmatpush.msrb.mxu0 %v5574_v57  ;;  %973 = vmatpush.msrb.mxu1 %v5579_v58  ;;  %v5590_v60 = vld [vmem:[%s8678_s2 + $0x190] sm:$0xff] }
  0x4e   : > { %8749 = vst [vmem:[#allocation33_spill] sm:$0xff] %v5562_v46  ;;  %3916 = vmatmul.msk.f32.gmra.mxu2 %vm374_vm1, %v5287_v47  ;;  %3919 = vmatmul.msk.f32.gmra.mxu3 %vm374_vm1, %v5287_v47  ;;  %v5627_v46 = vld [vmem:[%s8678_s2 + $0x2f8] sm:$0x3f] }
  0x4f   : > { %8750 = vst [vmem:[#allocation34_spill] sm:$0xff] %v5567_v63  ;;  %3922 = vmatmul.msk.f32.gmra.mxu0 %vm374_vm1, %v5038_v9  ;;  %3925 = vmatmul.msk.f32.gmra.mxu1 %vm374_vm1, %v5038_v9  ;;  %v5622_v63 = vld [vmem:[%s8678_s2 + $0x2f0] sm:$0x3f] }
  0x50   : > { %8751 = vst [vmem:[#allocation35_spill] sm:$0xff] %v5574_v57  ;;  %v5609_v57 = vld [vmem:[%s8678_s2 + $0x288] sm:$0xff]  ;;  %893 = vmatpush.msrb.mxu2 %v5590_v60  ;;  %916 = vmatpush.msrb.mxu3 %v5595_v62 }
  0x51   : > { %8752 = vst [vmem:[#allocation36_spill] sm:$0xff] %v5579_v58  ;;  %v5604_v58 = vld [vmem:[%s8678_s2 + $0x280] sm:$0xff]  ;;  %974 = vmatpush.msrb.mxu1 %v5609_v57 }
  0x52   : > { %8753 = vst [vmem:[#allocation37_spill] sm:$0xff] %v5590_v60  ;;  %951 = vmatpush.msrb.mxu0 %v5604_v58  ;;  %v5663_v60 = vld [vmem:[%s8678_s2 + $0x2b8] sm:$0xff] }
  0x53   : > { %8754 = vst [vmem:[#allocation38_spill] sm:$0xff] %v5595_v62  ;;  %v5658_v62 = vld [vmem:[%s8678_s2 + $0x2b0] sm:$0xff] }
  0x54   : > { %8755 = vst [vmem:[#allocation39_spill] sm:$0xff] %v5604_v58  ;;  %v5645_v58 = vld [vmem:[%s8678_s2 + $0x2d8] sm:$0xff] }
  0x55   : > { %8756 = vst [vmem:[#allocation40_spill] sm:$0xff] %v5609_v57  ;;  %v5640_v57 = vld [vmem:[%s8678_s2 + $0x2d0] sm:$0xff] }
  0x56   : > { %3927 = vmatmul.msk.f32.vlgmr.msra.gmra.mxu2 %vm374_vm1, %v5036_v8  ;;  %3930 = vmatmul.msk.f32.vlgmr.msra.gmra.mxu3 %vm374_vm1, %v5036_v8 }
  0x57   : > { %3933 = vmatmul.msk.f32.vlgmr.msra.gmra.mxu0 %vm374_vm1, %v5156_v26  ;;  %3936 = vmatmul.msk.f32.vlgmr.msra.gmra.mxu1 %vm374_vm1, %v5156_v26 }
  0x58   : > { %3950 = vmatpush.msk.msra.mxu2 %vm381_vm0, %v5622_v63  ;;  %3953 = vmatpush.msk.msra.mxu3 %vm381_vm0, %v5627_v46 }
  0x59   : > { %3956 = vmatpush.msk.msra.mxu0 %vm381_vm0, %v4971_v0  ;;  %3959 = vmatpush.msk.msra.mxu1 %vm381_vm0, %v4976_v1  ;;  %v5676_v0 = vld [vmem:[%s8678_s2 + $0x290] sm:$0xff]  ;;  %v5681_v1 = vld [vmem:[%s8678_s2 + $0x298] sm:$0xff] }
  0x5a   : > { %995 = vmatpush.msra.mxu2 %v5640_v57  ;;  %1018 = vmatpush.msra.mxu3 %v5645_v58 }
  0x5b   : > { %1057 = vmatpush.msra.mxu0 %v4981_v2  ;;  %1080 = vmatpush.msra.mxu1 %v4990_v3  ;;  %v8757_v2 = vld [vmem:[#allocation5_spill] sm:$0xff]  ;;  %v8758_v3 = vld [vmem:[#allocation6_spill] sm:$0xff] }
  0x5c   : > { %996 = vmatpush.msra.mxu2 %v5658_v62  ;;  %1019 = vmatpush.msra.mxu3 %v5663_v60 }
  0x5d   : > { %1058 = vmatpush.msra.mxu0 %v5000_v4  ;;  %1081 = vmatpush.msra.mxu1 %v5007_v5  ;;  %v1228_v4 = vrot.slane %v5036_v8, 1  ;;  %v5801_v5 = vrot.slane %v5038_v9, 1 }
  0x5e   : > { %3928 = vmatmul.msk.f32.gmra.mxu2 %vm374_vm1, %v5038_v9  ;;  %3931 = vmatmul.msk.f32.gmra.mxu3 %vm374_vm1, %v5038_v9 }
  0x5f   : > { %3934 = vmatmul.msk.f32.gmra.mxu0 %vm374_vm1, %v5241_v39  ;;  %3937 = vmatmul.msk.f32.gmra.mxu1 %vm374_vm1, %v5241_v39 }
  0x60   : > { %997 = vmatpush.msra.mxu2 %v5676_v0  ;;  %1020 = vmatpush.msra.mxu3 %v5681_v1 }
  0x61   : > { %1059 = vmatpush.msra.mxu0 %v5017_v6  ;;  %1082 = vmatpush.msra.mxu1 %v5024_v7  ;;  %v8759_v6 = vld [vmem:[#allocation7_spill] sm:$0xff]  ;;  %v8760_v7 = vld [vmem:[#allocation8_spill] sm:$0xff] }
  0x66   : > { %3939 = vmatmul.msk.f32.vlgmr.msrb.gmra.mxu2 %vm374_vm1, %v5156_v26  ;;  %3942 = vmatmul.msk.f32.vlgmr.msrb.gmra.mxu3 %vm374_vm1, %v5156_v26  ;;  %v8774_v26 = vld [vmem:[#allocation22_spill] sm:$0xff] }
  0x67   : > { %3945 = vmatmul.msk.f32.vlgmr.msrb.gmra.mxu0 %vm374_vm1, %v5333_v54  ;;  %3948 = vmatmul.msk.f32.vlgmr.msrb.gmra.mxu1 %vm374_vm1, %v5333_v54 }
  0x68   : > { %3962 = vmatpush.msk.msrb.mxu2 %vm381_vm0, %v5045_v10  ;;  %3965 = vmatpush.msk.msrb.mxu3 %vm381_vm0, %v5050_v11  ;;  %v8761_v10 = vld [vmem:[#allocation9_spill] sm:$0xff]  ;;  %v8762_v11 = vld [vmem:[#allocation10_spill] sm:$0xff] }
  0x69   : > { %3968 = vmatpush.msk.msrb.mxu0 %vm381_vm0, %v5059_v12  ;;  %3971 = vmatpush.msk.msrb.mxu1 %vm381_vm0, %v5064_v13  ;;  %v5809_v12 = vsel %vm596_vm2, %v1228_v4, %v5801_v5  ;;  %v8763_v13 = vld [vmem:[#allocation11_spill] sm:$0xff] }
  0x6a   : > { %1103 = vmatpush.msrb.mxu2 %v5073_v14  ;;  %1126 = vmatpush.msrb.mxu3 %v5078_v15  ;;  %v8764_v14 = vld [vmem:[#allocation12_spill] sm:$0xff]  ;;  %v8765_v15 = vld [vmem:[#allocation13_spill] sm:$0xff] }
  0x6b   : > { %1149 = vmatpush.msrb.mxu0 %v5087_v16  ;;  %1172 = vmatpush.msrb.mxu1 %v5092_v17  ;;  %v8766_v16 = vld [vmem:[#allocation14_spill] sm:$0xff] }
  0x6c   : > { %1104 = vmatpush.msrb.mxu2 %v5101_v18  ;;  %1127 = vmatpush.msrb.mxu3 %v5106_v19  ;;  %v8767_v19 = vld [vmem:[#allocation15_spill] sm:$0xff] }
  0x6d   : > { %1150 = vmatpush.msrb.mxu0 %v5113_v20  ;;  %1173 = vmatpush.msrb.mxu1 %v5118_v21  ;;  %v8768_v20 = vld [vmem:[#allocation16_spill] sm:$0xff]  ;;  %v8769_v21 = vld [vmem:[#allocation17_spill] sm:$0xff] }
  0x6e   : > { %3940 = vmatmul.msk.f32.gmra.mxu2 %vm374_vm1, %v5241_v39  ;;  %3943 = vmatmul.msk.f32.gmra.mxu3 %vm374_vm1, %v5241_v39  ;;  %v8781_v39 = vld [vmem:[#allocation29_spill] sm:$0xff] }
  0x6f   : > { %3946 = vmatmul.msk.f32.gmra.mxu0 %vm374_vm1, %v5287_v47  ;;  %3949 = vmatmul.msk.f32.gmra.mxu1 %vm374_vm1, %v5287_v47 }
  0x70   : > { %1105 = vmatpush.msrb.mxu2 %v5125_v22  ;;  %1128 = vmatpush.msrb.mxu3 %v5130_v23  ;;  %v8770_v22 = vld [vmem:[#allocation18_spill] sm:$0xff]  ;;  %v8771_v23 = vld [vmem:[#allocation19_spill] sm:$0xff] }
  0x71   : > { %1151 = vmatpush.msrb.mxu0 %v5144_v24  ;;  %1174 = vmatpush.msrb.mxu1 %v5149_v25  ;;  %v8772_v24 = vld [vmem:[#allocation20_spill] sm:$0xff]  ;;  %v8773_v25 = vld [vmem:[#allocation21_spill] sm:$0xff] }
  0x76   : > { %3951 = vmatmul.msk.f32.vlgmr.msra.gmra.mxu2 %vm374_vm1, %v5333_v54  ;;  %3954 = vmatmul.msk.f32.vlgmr.msra.gmra.mxu3 %vm374_vm1, %v5333_v54 }
  0x77   : > { %3957 = vmatmul.msk.f32.vlgmr.msra.gmra.mxu0 %vm374_vm1, %v5333_v54  ;;  %3960 = vmatmul.msk.f32.vlgmr.msra.gmra.mxu1 %vm374_vm1, %v5333_v54 }
  0x78   : > { %3974 = vmatpush.msk.msra.mxu2 %vm381_vm0, %v5163_v27  ;;  %3977 = vmatpush.msk.msra.mxu3 %vm381_vm0, %v5168_v28 }
  0x79   : > { %3980 = vmatpush.msk.msra.mxu0 %vm381_vm0, %v5177_v29  ;;  %3983 = vmatpush.msk.msra.mxu1 %vm381_vm0, %v5182_v30  ;;  %v8775_v29 = vld [vmem:[#allocation23_spill] sm:$0xff]  ;;  %v8776_v30 = vld [vmem:[#allocation24_spill] sm:$0xff] }
  0x7a   : > { %1195 = vmatpush.msra.mxu2 %v5191_v31  ;;  %1218 = vmatpush.msra.mxu3 %v5196_v32  ;;  %v8777_v31 = vld [vmem:[#allocation25_spill] sm:$0xff]  ;;  %v8778_v32 = vld [vmem:[#allocation26_spill] sm:$0xff] }
  0x7b   : > { %1248 = vmatpush.msra.mxu0 %v5205_v33  ;;  %1271 = vmatpush.msra.mxu1 %v5210_v34 }
  0x7c   : > { %1196 = vmatpush.msra.mxu2 %v5219_v35  ;;  %1219 = vmatpush.msra.mxu3 %v5224_v36  ;;  %v8779_v35 = vld [vmem:[#allocation27_spill] sm:$0xff]  ;;  %v8780_v36 = vld [vmem:[#allocation28_spill] sm:$0xff] }
  0x7d   : > { %1249 = vmatpush.msra.mxu0 %v5231_v37  ;;  %1272 = vmatpush.msra.mxu1 %v5236_v38 }
  0x7e   : > { %3952 = vmatmul.msk.f32.gmra.mxu2 %vm374_vm1, %v5287_v47  ;;  %3955 = vmatmul.msk.f32.gmra.mxu3 %vm374_vm1, %v5287_v47 }
  0x7f   : > { %3958 = vmatmul.msk.f32.gmra.mxu0 %vm374_vm1, %v5287_v47  ;;  %3961 = vmatmul.msk.f32.gmra.mxu1 %vm374_vm1, %v5287_v47 }
  0x80   : > { %1197 = vmatpush.msra.mxu2 %v5250_v40  ;;  %1220 = vmatpush.msra.mxu3 %v5255_v41  ;;  %v8782_v40 = vld [vmem:[#allocation30_spill] sm:$0xff]  ;;  %v8783_v41 = vld [vmem:[#allocation31_spill] sm:$0xff] }
  0x81   : > { %1250 = vmatpush.msra.mxu0 %v5264_v42  ;;  %1273 = vmatpush.msra.mxu1 %v5269_v43  ;;  %v8784_v42 = vld [vmem:[#allocation32_spill] sm:$0xff] }
  0x86   : > { %3963 = vmatmul.msk.f32.vlgmr.msrb.gmra.mxu2 %vm374_vm1, %v5333_v54  ;;  %3966 = vmatmul.msk.f32.vlgmr.msrb.gmra.mxu3 %vm374_vm1, %v5333_v54 }
  0x87   : > { %3969 = vmatmul.msk.f32.vlgmr.msrb.gmra.mxu0 %vm374_vm1, %v5036_v8  ;;  %3972 = vmatmul.msk.f32.vlgmr.msrb.gmra.mxu1 %vm374_vm1, %v5036_v8 }
  0x88   : > { %3986 = vmatpush.msk.msrb.mxu2 %vm381_vm0, %v5278_v44  ;;  %3989 = vmatpush.msk.msrb.mxu3 %vm381_vm0, %v5283_v45  ;;  %v8785_v45 = vld [vmem:[#allocation33_spill] sm:$0xff] }
  0x89   : > { %3992 = vmatpush.msk.msrb.mxu0 %vm381_vm0, %v5294_v48  ;;  %3995 = vmatpush.msk.msrb.mxu1 %vm381_vm0, %v5299_v49  ;;  %v8786_v48 = vld [vmem:[#allocation34_spill] sm:$0xff]  ;;  %v8787_v49 = vld [vmem:[#allocation35_spill] sm:$0xff] }
  0x8a   : > { %1294 = vmatpush.msrb.mxu2 %v5306_v50  ;;  %1317 = vmatpush.msrb.mxu3 %v5311_v51  ;;  %v8788_v50 = vld [vmem:[#allocation36_spill] sm:$0xff]  ;;  %v8789_v51 = vld [vmem:[#allocation37_spill] sm:$0xff] }
  0x8b   : > { %1356 = vmatpush.msrb.mxu0 %v5320_v52  ;;  %1379 = vmatpush.msrb.mxu1 %v5325_v53  ;;  %v8790_v52 = vld [vmem:[#allocation38_spill] sm:$0xff] }
  0x8c   : > { %1295 = vmatpush.msrb.mxu2 %v5342_v55  ;;  %1318 = vmatpush.msrb.mxu3 %v5347_v56  ;;  %v8793_v56 = vld [vmem:[#allocation39_spill] sm:$0xff] }
  0x8d   : > { %1357 = vmatpush.msrb.mxu0 %v8757_v2  ;;  %1380 = vmatpush.msrb.mxu1 %v8758_v3 }
  0x8e   : > { %3964 = vmatmul.msk.f32.gmra.mxu2 %vm374_vm1, %v5287_v47  ;;  %3967 = vmatmul.msk.f32.gmra.mxu3 %vm374_vm1, %v5287_v47 }
  0x8f   : > { %3970 = vmatmul.msk.f32.gmra.mxu0 %vm374_vm1, %v5038_v9  ;;  %3973 = vmatmul.msk.f32.gmra.mxu1 %vm374_vm1, %v5038_v9 }
  0x90   : > { %1296 = vmatpush.msrb.mxu2 %v8759_v6  ;;  %1319 = vmatpush.msrb.mxu3 %v8760_v7 }
  0x91   : > { %1358 = vmatpush.msrb.mxu0 %v8761_v10  ;;  %1381 = vmatpush.msrb.mxu1 %v8762_v11 }
  0x96   : > { %3975 = vmatmul.msk.f32.vlgmr.msra.gmra.mxu2 %vm374_vm1, %v5036_v8  ;;  %3978 = vmatmul.msk.f32.vlgmr.msra.gmra.mxu3 %vm374_vm1, %v5036_v8 }
  0x97   : > { %3981 = vmatmul.msk.f32.vlgmr.msra.gmra.mxu0 %vm374_vm1, %v5809_v12  ;;  %3984 = vmatmul.msk.f32.vlgmr.msra.gmra.mxu1 %vm374_vm1, %v5809_v12 }
  0x98   : > { %3998 = vmatpush.msk.msra.mxu2 %vm381_vm0, %v8763_v13  ;;  %4001 = vmatpush.msk.msra.mxu3 %vm381_vm0, %v8764_v14 }
  0x99   : > { %4004 = vmatpush.msk.msra.mxu0 %vm381_vm0, %v8765_v15  ;;  %4007 = vmatpush.msk.msra.mxu1 %vm381_vm0, %v8766_v16  ;;  %v5827_v17 = vpop.f32.mrf.mxu0 }
  0x9a   : > { %v5829_v18 = vpop.f32.mrf.mxu1  ;;  %1402 = vmatpush.msra.mxu2 %v8767_v19  ;;  %1425 = vmatpush.msra.mxu3 %v8768_v20 }
  0x9b   : > { %1448 = vmatpush.msra.mxu0 %v8769_v21  ;;  %1471 = vmatpush.msra.mxu1 %v8770_v22 }
  0x9c   : > { %1403 = vmatpush.msra.mxu2 %v8771_v23  ;;  %1426 = vmatpush.msra.mxu3 %v8772_v24  ;;  %v1676_v24 = vld [vmem:[%s8680_s4 + $0x70] sm:$0xff] }
  0x9d   : > { %1449 = vmatpush.msra.mxu0 %v8773_v25  ;;  %1472 = vmatpush.msra.mxu1 %v8774_v26 }
  0x9e   : > { %3976 = vmatmul.msk.f32.gmra.mxu2 %vm374_vm1, %v5038_v9  ;;  %3979 = vmatmul.msk.f32.gmra.mxu3 %vm374_vm1, %v5038_v9 }
  0x9f   : > { %3982 = vmatmul.msk.f32.gmra.mxu0 %vm374_vm1, %v5801_v5  ;;  %3985 = vmatmul.msk.f32.gmra.mxu1 %vm374_vm1, %v5801_v5  ;;  %v5847_v27 = vpop.f32.mrf.mxu2 }
  0xa0   : > { %v5849_v28 = vpop.f32.mrf.mxu3  ;;  %1404 = vmatpush.msra.mxu2 %v8775_v29  ;;  %1427 = vmatpush.msra.mxu3 %v8776_v30  ;;  %v1675_v29 = vld [vmem:[%s8680_s4 + $0x68] sm:$0xff] }
  0xa1   : > { %1450 = vmatpush.msra.mxu0 %v8777_v31  ;;  %1473 = vmatpush.msra.mxu1 %v8778_v32  ;;  %v1674_v32 = vld [vmem:[%s8680_s4 + $0x60] sm:$0xff] }
  0xa4   : > { %v5855_v33 = vpop.f32.mrf.mxu0  ;;  %v5857_v34 = vpop.f32.mrf.mxu1 }
  0xa6   : > { %3987 = vmatmul.msk.f32.vlgmr.msrb.gmra.mxu2 %vm374_vm1, %v5809_v12  ;;  %3990 = vmatmul.msk.f32.vlgmr.msrb.gmra.mxu3 %vm374_vm1, %v5809_v12 }
  0xa7   : > { %3993 = vmatmul.msk.f32.vlgmr.msrb.gmra.mxu0 %vm374_vm1, %v5333_v54  ;;  %3996 = vmatmul.msk.f32.vlgmr.msrb.gmra.mxu1 %vm374_vm1, %v5333_v54 }
  0xa8   : > { %4010 = vmatpush.msk.msrb.mxu2 %vm381_vm0, %v8779_v35  ;;  %4013 = vmatpush.msk.msrb.mxu3 %vm381_vm0, %v8780_v36  ;;  %v1673_v35 = vld [vmem:[%s8680_s4 + $0x58] sm:$0xff] }
  0xa9   : > { %v5871_v37 = vpop.f32.mrf.mxu2  ;;  %v5873_v38 = vpop.f32.mrf.mxu3  ;;  %4016 = vmatpush.msk.msrb.mxu0 %vm381_vm0, %v8781_v39  ;;  %4019 = vmatpush.msk.msrb.mxu1 %vm381_vm0, %v8782_v40  ;;  %v1693_v36 = vld [vmem:[%s8680_s4 + $0xf8] sm:$0xff]  ;;  %v1672_v39 = vld [vmem:[%s8680_s4 + $0x50] sm:$0xff] }
  0xaa   : > { %1494 = vmatpush.msrb.mxu2 %v8783_v41  ;;  %1517 = vmatpush.msrb.mxu3 %v8784_v42  ;;  %v1692_v42 = vld [vmem:[%s8680_s4 + $0xf0] sm:$0xff] }
  0xab   : > { %1540 = vmatpush.msrb.mxu0 %v5548_v59  ;;  %1563 = vmatpush.msrb.mxu1 %v5553_v61  ;;  %v8794_v59 = vld [vmem:[#allocation40_spill] sm:$0xff] }
  0xac   : > { %v5883_v43 = vpop.f32.mrf.mxu0  ;;  %v5885_v44 = vpop.f32.mrf.mxu1  ;;  %1495 = vmatpush.msrb.mxu2 %v8785_v45  ;;  %1518 = vmatpush.msrb.mxu3 %v8786_v48  ;;  %v1671_v45 = vld [vmem:[%s8680_s4 + $0x48] sm:$0xff] }
  0xad   : > { %1541 = vmatpush.msrb.mxu0 %v8787_v49  ;;  %1564 = vmatpush.msrb.mxu1 %v8788_v50  ;;  %v1691_v48 = vld [vmem:[%s8680_s4 + $0xe8] sm:$0xff] }
  0xae   : > { %3988 = vmatmul.msk.f32.gmra.mxu2 %vm374_vm1, %v5801_v5  ;;  %3991 = vmatmul.msk.f32.gmra.mxu3 %vm374_vm1, %v5801_v5 }
  0xaf   : > { %3994 = vmatmul.msk.f32.gmra.mxu0 %vm374_vm1, %v5287_v47  ;;  %3997 = vmatmul.msk.f32.gmra.mxu1 %vm374_vm1, %v5287_v47 }
  0xb0   : > { %1496 = vmatpush.msrb.mxu2 %v8789_v51  ;;  %1519 = vmatpush.msrb.mxu3 %v8790_v52  ;;  %v1670_v51 = vld [vmem:[%s8680_s4 + $0x40] sm:$0xff] }
  0xb1   : > { %v5901_v53 = vpop.f32.mrf.mxu2  ;;  %v5903_v55 = vpop.f32.mrf.mxu3  ;;  %1542 = vmatpush.msrb.mxu0 %v8793_v56  ;;  %1565 = vmatpush.msrb.mxu1 %v8794_v59  ;;  %v1690_v52 = vld [vmem:[%s8680_s4 + $0xe0] sm:$0xff]  ;;  %v1669_v56 = vld [vmem:[%s8680_s4 + $0x38] sm:$0xff] }
  0xb2   : > { %8791 = vst [vmem:[#allocation5_spill] sm:$0xff] %v5901_v53  ;;  %v1689_v59 = vld [vmem:[%s8680_s4 + $0xd8] sm:$0xff] }
  0xb3   : > { %8792 = vst [vmem:[#allocation6_spill] sm:$0xff] %v5903_v55 }
  0xb4   : > { %v5907_v61 = vpop.f32.mrf.mxu0  ;;  %v5909_v2 = vpop.f32.mrf.mxu1 }
  0xb6   : > { %3999 = vmatmul.msk.f32.vlgmr.msra.gmra.mxu2 %vm374_vm1, %v5333_v54  ;;  %4002 = vmatmul.msk.f32.vlgmr.msra.gmra.mxu3 %vm374_vm1, %v5333_v54 }
  0xb7   : > { %4005 = vmatmul.msk.f32.vlgmr.msra.gmra.mxu0 %vm374_vm1, %v5036_v8  ;;  %4008 = vmatmul.msk.f32.vlgmr.msra.gmra.mxu1 %vm374_vm1, %v5036_v8 }
  0xb8   : > { %4022 = vmatpush.msk.msra.mxu2 %vm381_vm0, %v5622_v63  ;;  %4025 = vmatpush.msk.msra.mxu3 %vm381_vm0, %v5627_v46 }
  0xb9   : > { %v5923_v3 = vpop.f32.mrf.mxu2  ;;  %v5925_v4 = vpop.f32.mrf.mxu3  ;;  %1742 = vmatpush.msra.mxu1 %v1693_v36  ;;  %v1687_v36 = vld [vmem:[%s8680_s4 + $0xc8] sm:$0xff] }
  0xba   : > { %1586 = vmatpush.msra.mxu2 %v5640_v57  ;;  %1609 = vmatpush.msra.mxu3 %v5645_v58 }
  0xbb   : > { %1743 = vmatpush.msra.mxu1 %v1692_v42 }
  0xbc   : > { %v5929_v54 = vpop.f32.mrf.mxu0  ;;  %v5931_v6 = vpop.f32.mrf.mxu1  ;;  %1587 = vmatpush.msra.mxu2 %v5658_v62  ;;  %1610 = vmatpush.msra.mxu3 %v5663_v60 }
  0xbd   : > { %1744 = vmatpush.msra.mxu1 %v1691_v48  ;;  %v1686_v48 = vld [vmem:[%s8680_s4 + $0xc0] sm:$0xff] }
  0xbe   : > { %4000 = vmatmul.msk.f32.gmra.mxu2 %vm374_vm1, %v5287_v47  ;;  %4003 = vmatmul.msk.f32.gmra.mxu3 %vm374_vm1, %v5287_v47 }
  0xbf   : > { %4006 = vmatmul.msk.f32.gmra.mxu0 %vm374_vm1, %v5038_v9  ;;  %4009 = vmatmul.msk.f32.gmra.mxu1 %vm374_vm1, %v5038_v9 }
  0xc0   : > { %1588 = vmatpush.msra.mxu2 %v5676_v0  ;;  %1611 = vmatpush.msra.mxu3 %v5681_v1 }
  0xc1   : > { %v5945_v57 = vpop.f32.mrf.mxu2  ;;  %v5947_v58 = vpop.f32.mrf.mxu3  ;;  %1745 = vmatpush.msra.mxu1 %v1690_v52  ;;  %v1685_v52 = vld [vmem:[%s8680_s4 + $0xb8] sm:$0xff] }
  0xc2   : > { %8795 = vst [vmem:[#allocation7_spill] sm:$0xff] %v5945_v57 }
  0xc3   : > { %8796 = vst [vmem:[#allocation8_spill] sm:$0xff] %v5947_v58  ;;  %1746 = vmatpush.msra.mxu1 %v1689_v59 }
  0xc4   : > { %v5949_v60 = vpop.f32.mrf.mxu0  ;;  %v5951_v62 = vpop.f32.mrf.mxu1 }
  0xc6   : > { %4011 = vmatmul.msk.f32.vlgmr.msrb.gmra.mxu2 %vm374_vm1, %v5036_v8  ;;  %4014 = vmatmul.msk.f32.vlgmr.msrb.gmra.mxu3 %vm374_vm1, %v5036_v8 }
  0xc7   : > { %4017 = vmatmul.msk.f32.vlgmr.msrb.gmra.mxu0 %vm374_vm1, %v5809_v12  ;;  %4020 = vmatmul.msk.f32.vlgmr.msrb.gmra.mxu1 %vm374_vm1, %v5809_v12 }
  0xc9   : > { %v5961_v47 = vpop.f32.mrf.mxu2  ;;  %v5963_v63 = vpop.f32.mrf.mxu3 }
  0xcc   : > { %v5965_v46 = vpop.f32.mrf.mxu0  ;;  %v5967_v0 = vpop.f32.mrf.mxu1 }
  0xce   : > { %4012 = vmatmul.msk.f32.gmra.mxu2 %vm374_vm1, %v5038_v9  ;;  %4015 = vmatmul.msk.f32.gmra.mxu3 %vm374_vm1, %v5038_v9 }
  0xcf   : > { %4018 = vmatmul.msk.f32.gmra.mxu0 %vm374_vm1, %v5801_v5  ;;  %4021 = vmatmul.msk.f32.gmra.mxu1 %vm374_vm1, %v5801_v5 }
  0xd1   : > { %v5977_v8 = vpop.f32.mrf.mxu2  ;;  %v5979_v1 = vpop.f32.mrf.mxu3 }
  0xd2   : > { %8797 = vst [vmem:[#allocation9_spill] sm:$0xff] %v5977_v8  ;;  %v4058_v8 = vld [vmem:[%s8680_s4 + $0x2a8] sm:$0xff] }
  0xd3   : > { %8798 = vst [vmem:[#allocation10_spill] sm:$0xff] %v5979_v1 }
  0xd4   : > { %v5981_v7 = vpop.f32.mrf.mxu0  ;;  %v5983_v10 = vpop.f32.mrf.mxu1 }
  0xd6   : > { %4023 = vmatmul.msk.f32.vlgmr.msra.gmra.mxu2 %vm374_vm1, %v5809_v12  ;;  %4026 = vmatmul.msk.f32.vlgmr.msra.gmra.mxu3 %vm374_vm1, %v5809_v12 }
  0xd9   : > { %v5989_v9 = vpop.f32.mrf.mxu2  ;;  %v5991_v11 = vpop.f32.mrf.mxu3 }
  0xdc   : > { %v5993_v13 = vpop.f32.mrf.mxu0  ;;  %v5995_v14 = vpop.f32.mrf.mxu1 }
  0xdd   : > { %v853_v58 = vadd.f32 %v5993_v13, %v5965_v46  ;;  %v1707_v46 = vld [vmem:[%s8680_s4 + $0x168] sm:$0xff] }
  0xde   : > { %4024 = vmatmul.msk.f32.gmra.mxu2 %vm374_vm1, %v5801_v5  ;;  %4027 = vmatmul.msk.f32.gmra.mxu3 %vm374_vm1, %v5801_v5  ;;  %v1677_v5 = vld [vmem:[%s8680_s4 + $0x78] sm:$0xff]  ;;  %v1715_v13 = vld [vmem:[%s8680_s4 + $0x1a8] sm:$0xff] }
  0xdf   : > { %1722 = vmatpush.msra.mxu0 %v1677_v5  ;;  %v1668_v5 = vld [vmem:[%s8680_s4 + $0x30] sm:$0xff] }
  0xe1   : > { %v6001_v15 = vpop.f32.mrf.mxu2  ;;  %v6003_v16 = vpop.f32.mrf.mxu3  ;;  %1723 = vmatpush.msra.mxu0 %v1676_v24 }
  0xe3   : > { %1724 = vmatpush.msra.mxu0 %v1675_v29 }
  0xe4   : > { %v6005_v19 = vpop.f32.mrf.mxu0  ;;  %v6007_v12 = vpop.f32.mrf.mxu1 }
  0xe5   : > { %1725 = vmatpush.msra.mxu0 %v1674_v32  ;;  %v1688_v32 = vld [vmem:[%s8680_s4 + $0xd0] sm:$0xff] }
  0xe6   : > { %1747 = vmatpush.msra.mxu1 %v1688_v32  ;;  %v1684_v32 = vld [vmem:[%s8680_s4 + $0xb0] sm:$0xff] }
  0xe7   : > { %1726 = vmatpush.msra.mxu0 %v1673_v35  ;;  %v1667_v35 = vld [vmem:[%s8680_s4 + $0x28] sm:$0xff] }
  0xe8   : > { %1748 = vmatpush.msra.mxu1 %v1687_v36  ;;  %v1683_v36 = vld [vmem:[%s8680_s4 + $0xa8] sm:$0xff] }
  0xe9   : > { %v6009_v20 = vpop.f32.mrf.mxu2  ;;  %v6011_v21 = vpop.f32.mrf.mxu3  ;;  %1727 = vmatpush.msra.mxu0 %v1672_v39 }
  0xea   : > { %1749 = vmatpush.msra.mxu1 %v1686_v48 }
  0xeb   : > { %1728 = vmatpush.msra.mxu0 %v1671_v45  ;;  %v1666_v45 = vld [vmem:[%s8680_s4 + $0x20] sm:$0xff] }
  0xec   : > { %v6013_v22 = vpop.f32.mrf.mxu0  ;;  %v6015_v23 = vpop.f32.mrf.mxu1  ;;  %1750 = vmatpush.msra.mxu1 %v1685_v52  ;;  %v1682_v52 = vld [vmem:[%s8680_s4 + $0xa0] sm:$0xff] }
  0xed   : > { %1729 = vmatpush.msra.mxu0 %v1670_v51  ;;  %v1665_v51 = vld [vmem:[%s8680_s4 + $0x18] sm:$0xff] }
  0xee   : > { %1751 = vmatpush.msra.mxu1 %v1684_v32  ;;  %v1681_v32 = vld [vmem:[%s8680_s4 + $0x98] sm:$0xff] }
  0xef   : > { %1730 = vmatpush.msra.mxu0 %v1669_v56  ;;  %v1664_v56 = vld [vmem:[%s8680_s4 + $0x10] sm:$0xff] }
  0xf0   : > { %1752 = vmatpush.msra.mxu1 %v1683_v36 }
  0xf1   : > { %v6023_v25 = vpop.f32.mrf.mxu2  ;;  %v6025_v26 = vpop.f32.mrf.mxu3  ;;  %1731 = vmatpush.msra.mxu0 %v1668_v5 }
  0xf2   : > { %1753 = vmatpush.msra.mxu1 %v1682_v52  ;;  %v1679_v52 = vld [vmem:[%s8680_s4 + $0x88] sm:$0xff] }
  0xf3   : > { %1732 = vmatpush.msra.mxu0 %v1667_v35  ;;  %v1663_v35 = vld [vmem:[%s8680_s4 + $0x8] sm:$0xff] }
  0xf4   : > { %v6030_v30 = vpop.f32.mrf.mxu0  ;;  %v6032_v31 = vpop.f32.mrf.mxu1  ;;  %1754 = vmatpush.msra.mxu1 %v1681_v32 }
  0xf5   : > { %1733 = vmatpush.msra.mxu0 %v1666_v45 }
  0xf7   : > { %1734 = vmatpush.msra.mxu0 %v1665_v51  ;;  %v1662_v51 = vld [vmem:[%s8680_s4] sm:$0xff] }
  0xf9   : > { %v6046_v40 = vpop.f32.mrf.mxu2  ;;  %v6048_v41 = vpop.f32.mrf.mxu3  ;;  %1735 = vmatpush.msra.mxu0 %v1664_v56  ;;  %v4060_v56 = vld [vmem:[%s8680_s4 + $0x2b8] sm:$0xff] }
  0xfb   : > { %1736 = vmatpush.msra.mxu0 %v1663_v35  ;;  %v4059_v35 = vld [vmem:[%s8680_s4 + $0x2b0] sm:$0xff] }
  0xfc   : > { %v6059_v49 = vpop.f32.mrf.mxu0  ;;  %v6061_v50 = vpop.f32.mrf.mxu1 }
  0xfd   : > { %1737 = vmatpush.msra.mxu0 %v1662_v51  ;;  %v1680_v51 = vld [vmem:[%s8680_s4 + $0x90] sm:$0xff] }
  0xfe   : > { %1755 = vmatpush.msra.mxu1 %v1680_v51  ;;  %v876_v51 = vadd.f32 %v5995_v14, %v5967_v0  ;;  %v1716_v0 = vld [vmem:[%s8680_s4 + $0x1b0] sm:$0xff]  ;;  %v4076_v14 = vld [vmem:[%s8680_s4 + $0x338] sm:$0xff] }
  0xff   : > { %1892 = vmatpush.msrb.mxu0 %v4060_v56  ;;  %v4057_v56 = vld [vmem:[%s8680_s4 + $0x2a0] sm:$0xff] }
 0x100   : > { %1756 = vmatpush.msra.mxu1 %v1679_v52  ;;  %v4056_v52 = vld [vmem:[%s8680_s4 + $0x298] sm:$0xff] }
 0x101   : > { %v6078_v24 = vpop.f32.mrf.mxu2  ;;  %v6080_v29 = vpop.f32.mrf.mxu3  ;;  %1893 = vmatpush.msrb.mxu0 %v4059_v35 }
 0x102   : > { %8799 = vst [vmem:[#allocation11_spill] sm:$0xff] %v6078_v24  ;;  %v1678_v24 = vld [vmem:[%s8680_s4 + $0x80] sm:$0xff] }
 0x103   : > { %8800 = vst [vmem:[#allocation12_spill] sm:$0xff] %v6080_v29  ;;  %1894 = vmatpush.msrb.mxu0 %v4058_v8  ;;  %v1709_v29 = vld [vmem:[%s8680_s4 + $0x178] sm:$0xff]  ;;  %1757 = vmatpush.msra.mxu1 %v1678_v24  ;;  %v4075_v24 = vld [vmem:[%s8680_s4 + $0x330] sm:$0xff] }
 0x104   : > { %v6091_v39 = vpop.f32.mrf.mxu0  ;;  %v6093_v42 = vpop.f32.mrf.mxu1  ;;  %v1717_v8 = vld [vmem:[%s8680_s4 + $0x1b8] sm:$0xff]  ;;  %1762 = vmatpush.msrb.mxu2 %v1709_v29  ;;  %v4055_v29 = vld [vmem:[%s8680_s4 + $0x290] sm:$0xff] }
 0x105   : > { %1895 = vmatpush.msrb.mxu0 %v4057_v56  ;;  %1790 = vmatpush.msrb.mxu3 %v1717_v8  ;;  %v1708_v56 = vld [vmem:[%s8680_s4 + $0x170] sm:$0xff]  ;;  %v525_v8 = vadd.f32 %v5883_v43, %v5847_v27  ;;  %v4054_v27 = vld [vmem:[%s8680_s4 + $0x288] sm:$0xff]  ;;  %v1706_v43 = vld [vmem:[%s8680_s4 + $0x160] sm:$0xff] }
 0x106   : > { %1763 = vmatpush.msrb.mxu2 %v1708_v56  ;;  %1912 = vmatpush.msrb.mxu1 %v4076_v14  ;;  %v548_v56 = vadd.f32 %v5885_v44, %v5849_v28  ;;  %v1714_v28 = vld [vmem:[%s8680_s4 + $0x1a0] sm:$0xff]  ;;  %v1705_v14 = vld [vmem:[%s8680_s4 + $0x158] sm:$0xff] }
 0x107   : > { %1896 = vmatpush.msrb.mxu0 %v4056_v52  ;;  %1791 = vmatpush.msrb.mxu3 %v1716_v0  ;;  %v1032_v52 = vadd.f32 %v6013_v22, %v853_v58  ;;  %v1033_v0 = vadd.f32 %v6015_v23, %v876_v51  ;;  %v712_v44 = vadd.f32 %v5929_v54, %v525_v8  ;;  %v4074_v58 = vld [vmem:[%s8680_s4 + $0x328] sm:$0xff]  ;;  %v1712_v8 = vld [vmem:[%s8680_s4 + $0x190] sm:$0xff] }
 0x108   : > { %1764 = vmatpush.msrb.mxu2 %v1707_v46  ;;  %1913 = vmatpush.msrb.mxu1 %v4075_v24  ;;  %v713_v22 = vadd.f32 %v5931_v6, %v548_v56  ;;  %v1713_v6 = vld [vmem:[%s8680_s4 + $0x198] sm:$0xff]  ;;  %v1704_v24 = vld [vmem:[%s8680_s4 + $0x150] sm:$0xff]  ;;  %v1703_v56 = vld [vmem:[%s8680_s4 + $0x148] sm:$0xff] }
 0x109   : > { %v6110_v59 = vpop.f32.mrf.mxu2  ;;  %v6112_v5 = vpop.f32.mrf.mxu3  ;;  %1897 = vmatpush.msrb.mxu0 %v4055_v29  ;;  %1792 = vmatpush.msrb.mxu3 %v1715_v13  ;;  %v4052_v13 = vld [vmem:[%s8680_s4 + $0x278] sm:$0xff] }
 0x10a   : > { %1765 = vmatpush.msrb.mxu2 %v1706_v43  ;;  %1914 = vmatpush.msrb.mxu1 %v4074_v58  ;;  %v1711_v43 = vld [vmem:[%s8680_s4 + $0x188] sm:$0xff] }
 0x10b   : > { %1898 = vmatpush.msrb.mxu0 %v4054_v27  ;;  %1793 = vmatpush.msrb.mxu3 %v1714_v28  ;;  %v4071_v28 = vld [vmem:[%s8680_s4 + $0x310] sm:$0xff] }
 0x10c   : > { %v6123_v45 = vpop.f32.mrf.mxu0  ;;  %v1179_v48 = vpop.f32.mrf.mxu1  ;;  %1766 = vmatpush.msrb.mxu2 %v1705_v14 }
 0x10d   : > { %v1180_v55 = vadd.f32 %v1179_v48, %v6061_v50  ;;  %v1157_v23 = vadd.f32 %v6123_v45, %v6059_v49  ;;  %v4053_v50 = vld [vmem:[%s8680_s4 + $0x280] sm:$0xff]  ;;  %v1040_v48 = vmax.f32 %v712_v44, %v1032_v52  ;;  %v1041_v45 = vmax.f32 %v713_v22, %v1033_v0  ;;  %1794 = vmatpush.msrb.mxu3 %v1713_v6  ;;  %v4051_v52 = vld [vmem:[%s8680_s4 + $0x270] sm:$0xff]  ;;  %v4050_v22 = vld [vmem:[%s8680_s4 + $0x268] sm:$0xff] }
 0x10e   : > { %1899 = vmatpush.msrb.mxu0 %v4053_v50  ;;  %v4073_v49 = vld [vmem:[%s8680_s4 + $0x320] sm:$0xff]  ;;  %1767 = vmatpush.msrb.mxu2 %v1704_v24  ;;  %v4068_v24 = vld [vmem:[%s8680_s4 + $0x2f8] sm:$0xff] }
 0x10f   : > { %1915 = vmatpush.msrb.mxu1 %v4073_v49  ;;  %1795 = vmatpush.msrb.mxu3 %v1712_v8  ;;  %v1710_v50 = vld [vmem:[%s8680_s4 + $0x180] sm:$0xff]  ;;  %v1701_v49 = vld [vmem:[%s8680_s4 + $0x138] sm:$0xff]  ;;  %v4042_v8 = vld [vmem:[%s8680_s4 + $0x228] sm:$0xff] }
 0x110   : > { %1900 = vmatpush.msrb.mxu0 %v4052_v13  ;;  %1768 = vmatpush.msrb.mxu2 %v1703_v56  ;;  %v1700_v13 = vld [vmem:[%s8680_s4 + $0x130] sm:$0xff] }
 0x111   : > { %v6140_v36 = vpop.f32.mrf.mxu2  ;;  %v6142_v1 = vpop.f32.mrf.mxu3  ;;  %1796 = vmatpush.msrb.mxu3 %v1711_v43  ;;  %v4067_v56 = vld [vmem:[%s8680_s4 + $0x2f0] sm:$0xff] }
 0x112   : > { %1901 = vmatpush.msrb.mxu0 %v4051_v52  ;;  %v1699_v52 = vld [vmem:[%s8680_s4 + $0x128] sm:$0xff] }
 0x113   : > { %1797 = vmatpush.msrb.mxu3 %v1710_v50  ;;  %v1698_v50 = vld [vmem:[%s8680_s4 + $0x120] sm:$0xff] }
 0x114   : > { %v6156_v32 = vpop.f32.mrf.mxu0  ;;  %v6158_v35 = vpop.f32.mrf.mxu1  ;;  %1902 = vmatpush.msrb.mxu0 %v4050_v22  ;;  %v4041_v22 = vld [vmem:[%s8680_s4 + $0x220] sm:$0xff] }
 0x119   : > { %v6204_v57 = vpop.f32.mrf.mxu2  ;;  %v6206_v53 = vpop.f32.mrf.mxu3 }
 0x11c   : > { %v1255_v51 = vpop.f32.mrf.mxu0  ;;  %v1278_v54 = vpop.f32.mrf.mxu1 }
 0x11d   : > { %v1331_v29 = vadd.f32 %v1255_v51, %v1157_v23  ;;  %v1332_v46 = vadd.f32 %v1278_v54, %v1180_v55  ;;  %v4072_v55 = vld [vmem:[%s8680_s4 + $0x318] sm:$0xff]  ;;  %v1702_v23 = vld [vmem:[%s8680_s4 + $0x140] sm:$0xff] }
 0x11e   : > { %1916 = vmatpush.msrb.mxu1 %v4072_v55  ;;  %1769 = vmatpush.msrb.mxu2 %v1702_v23  ;;  %v4044_v51 = vld [vmem:[%s8680_s4 + $0x238] sm:$0xff]  ;;  %v4049_v54 = vld [vmem:[%s8680_s4 + $0x260] sm:$0xff]  ;;  %v4047_v55 = vld [vmem:[%s8680_s4 + $0x250] sm:$0xff] }
 0x11f   : > { %v6254_v0 = vmax.f32 %v1040_v48, %v1331_v29  ;;  %v6256_v27 = vmax.f32 %v1041_v45, %v1332_v46  ;;  %v4070_v48 = vld [vmem:[%s8680_s4 + $0x308] sm:$0xff]  ;;  %1872 = vmatpush.msra.mxu3 %v4044_v51  ;;  %v4069_v45 = vld [vmem:[%s8680_s4 + $0x300] sm:$0xff]  ;;  %1903 = vmatpush.msrb.mxu0 %v4049_v54  ;;  %v4043_v29 = vld [vmem:[%s8680_s4 + $0x230] sm:$0xff] }
 0x120   : > { %1917 = vmatpush.msrb.mxu1 %v4071_v28  ;;  %1770 = vmatpush.msrb.mxu2 %v1701_v49  ;;  %v4048_v46 = vld [vmem:[%s8680_s4 + $0x258] sm:$0xff]  ;;  %v4046_v23 = vld [vmem:[%s8680_s4 + $0x248] sm:$0xff]  ;;  %v4045_v54 = vld [vmem:[%s8680_s4 + $0x240] sm:$0xff] }
 0x121   : > { %v6264_v44 = vpop.f32.mrf.mxu2  ;;  %v6266_v58 = vpop.f32.mrf.mxu3  ;;  %1873 = vmatpush.msra.mxu3 %v4043_v29  ;;  %1904 = vmatpush.msrb.mxu0 %v4048_v46  ;;  %v4040_v51 = vld [vmem:[%s8680_s4 + $0x218] sm:$0xff]  ;;  %v4065_v46 = vld [vmem:[%s8680_s4 + $0x2e0] sm:$0xff] }
 0x122   : > { %1918 = vmatpush.msrb.mxu1 %v4070_v48  ;;  %1771 = vmatpush.msrb.mxu2 %v1700_v13  ;;  %v4066_v48 = vld [vmem:[%s8680_s4 + $0x2e8] sm:$0xff]  ;;  %v1697_v29 = vld [vmem:[%s8680_s4 + $0x118] sm:$0xff]  ;;  %v4039_v13 = vld [vmem:[%s8680_s4 + $0x210] sm:$0xff] }
 0x123   : > { %1874 = vmatpush.msra.mxu3 %v4042_v8  ;;  %1905 = vmatpush.msrb.mxu0 %v4047_v55  ;;  %v4064_v8 = vld [vmem:[%s8680_s4 + $0x2d8] sm:$0xff]  ;;  %v1203_v55 = vadd.f32 %v6264_v44, %v6140_v36  ;;  %v4063_v36 = vld [vmem:[%s8680_s4 + $0x2d0] sm:$0xff] }
 0x124   : > { %v6286_v14 = vpop.f32.mrf.mxu0  ;;  %v6288_v6 = vpop.f32.mrf.mxu1  ;;  %1919 = vmatpush.msrb.mxu1 %v4069_v45  ;;  %1772 = vmatpush.msrb.mxu2 %v1699_v52  ;;  %v1226_v52 = vadd.f32 %v6266_v58, %v6142_v1  ;;  %v4037_v58 = vld [vmem:[%s8680_s4 + $0x200] sm:$0xff] }
 0x125   : > { %1875 = vmatpush.msra.mxu3 %v4041_v22  ;;  %1906 = vmatpush.msrb.mxu0 %v4046_v23 }
 0x126   : > { %1920 = vmatpush.msrb.mxu1 %v4068_v24  ;;  %1773 = vmatpush.msrb.mxu2 %v1698_v50  ;;  %v1696_v24 = vld [vmem:[%s8680_s4 + $0x110] sm:$0xff]  ;;  %v1695_v50 = vld [vmem:[%s8680_s4 + $0x108] sm:$0xff] }
 0x127   : > { %1876 = vmatpush.msra.mxu3 %v4040_v51  ;;  %1907 = vmatpush.msrb.mxu0 %v4045_v54  ;;  %v4062_v51 = vld [vmem:[%s8680_s4 + $0x2c8] sm:$0xff] }
 0x128   : > { %1921 = vmatpush.msrb.mxu1 %v4067_v56  ;;  %1774 = vmatpush.msrb.mxu2 %v1697_v29  ;;  %v4038_v56 = vld [vmem:[%s8680_s4 + $0x208] sm:$0xff] }
 0x129   : > { %v6320_v43 = vpop.f32.mrf.mxu2  ;;  %v6322_v28 = vpop.f32.mrf.mxu3  ;;  %1877 = vmatpush.msra.mxu3 %v4039_v13  ;;  %v4084_v13 = vld [vmem:[%s8680_s4 + $0x378] sm:$0xff] }
 0x12a   : > { %1922 = vmatpush.msrb.mxu1 %v4066_v48  ;;  %1775 = vmatpush.msrb.mxu2 %v1696_v24  ;;  %v1694_v48 = vld [vmem:[%s8680_s4 + $0x100] sm:$0xff] }
 0x12b   : > { %1878 = vmatpush.msra.mxu3 %v4038_v56  ;;  %v4061_v24 = vld [vmem:[%s8680_s4 + $0x2c0] sm:$0xff]  ;;  %v4082_v56 = vld [vmem:[%s8680_s4 + $0x368] sm:$0xff] }
 0x12c   : > { %v6342_v49 = vpop.f32.mrf.mxu0  ;;  %v6344_v45 = vpop.f32.mrf.mxu1  ;;  %1923 = vmatpush.msrb.mxu1 %v4065_v46  ;;  %1776 = vmatpush.msrb.mxu2 %v1695_v50  ;;  %v4036_v46 = vld [vmem:[%s8680_s4 + $0x1f8] sm:$0xff]  ;;  %v873_v50 = vadd.f32 %v5983_v10, %v5951_v62  ;;  %v1177_v62 = vadd.f32 %v6093_v42, %v6032_v31  ;;  %v4079_v31 = vld [vmem:[%s8680_s4 + $0x350] sm:$0xff] }
 0x12d   : > { %1879 = vmatpush.msra.mxu3 %v4037_v58  ;;  %v4081_v58 = vld [vmem:[%s8680_s4 + $0x360] sm:$0xff] }
 0x12e   : > { %1924 = vmatpush.msrb.mxu1 %v4064_v8  ;;  %1777 = vmatpush.msrb.mxu2 %v1694_v48  ;;  %v4035_v8 = vld [vmem:[%s8680_s4 + $0x1f0] sm:$0xff]  ;;  %v522_v48 = vadd.f32 %v5855_v33, %v5827_v17 }
 0x12f   : > { %1880 = vmatpush.msra.mxu3 %v4036_v46  ;;  %v850_v46 = vadd.f32 %v5981_v7, %v5949_v60  ;;  %v1154_v60 = vadd.f32 %v6091_v39, %v6030_v30  ;;  %v4031_v7 = vld [vmem:[%s8680_s4 + $0x1d0] sm:$0xff]  ;;  %v4030_v30 = vld [vmem:[%s8680_s4 + $0x1c8] sm:$0xff] }
 0x130   : > { %1925 = vmatpush.msrb.mxu1 %v4063_v36  ;;  %1940 = vmatpush.msra.mxu2 %v4084_v13  ;;  %v4033_v36 = vld [vmem:[%s8680_s4 + $0x1e0] sm:$0xff]  ;;  %v708_v42 = vadd.f32 %v5907_v61, %v522_v48  ;;  %v4078_v39 = vld [vmem:[%s8680_s4 + $0x348] sm:$0xff] }
 0x131   : > { %v1301_v22 = vpop.f32.mrf.mxu2  ;;  %v1324_v23 = vpop.f32.mrf.mxu3  ;;  %1881 = vmatpush.msra.mxu3 %v4035_v8  ;;  %v4080_v8 = vld [vmem:[%s8680_s4 + $0x358] sm:$0xff]  ;;  %v1028_v33 = vadd.f32 %v6005_v19, %v850_v46  ;;  %v1327_v19 = vadd.f32 %v6156_v32, %v1154_v60  ;;  %v6460_v32 = vld [vmem:[%s8679_s3] sm:$0xf] }
 0x132   : > { %v6374_v44 = vadd.f32 %v1301_v22, %v1203_v55  ;;  %v6376_v1 = vadd.f32 %v1324_v23, %v1226_v52  ;;  %1926 = vmatpush.msrb.mxu1 %v4062_v51  ;;  %v4083_v55 = vld [vmem:[%s8680_s4 + $0x370] sm:$0xff]  ;;  %v4034_v52 = vld [vmem:[%s8680_s4 + $0x1e8] sm:$0xff]  ;;  %v545_v51 = vadd.f32 %v5857_v34, %v5829_v18  ;;  %v1029_v34 = vadd.f32 %v6007_v12, %v873_v50 }
 0x133   : > { %1941 = vmatpush.msra.mxu2 %v4083_v55  ;;  %1882 = vmatpush.msra.mxu3 %v4034_v52  ;;  %v1328_v12 = vadd.f32 %v6158_v35, %v1177_v62  ;;  %v1036_v61 = vmax.f32 %v708_v42, %v1028_v33  ;;  %v4029_v35 = vld [vmem:[%s8680_s4 + $0x1c0] sm:$0xff]  ;;  %v1638_v62 = vperm.slane %v6460_v32, 1 }
 0x134   : > { %v1452_v54 = vpop.f32.mrf.mxu0  ;;  %v1475_v29 = vpop.f32.mrf.mxu1  ;;  %1927 = vmatpush.msrb.mxu1 %v4061_v24  ;;  %v4032_v24 = vld [vmem:[%s8680_s4 + $0x1d8] sm:$0xff] }
 0x135   : > { %1942 = vmatpush.msra.mxu2 %v4082_v56  ;;  %1883 = vmatpush.msra.mxu3 %v4033_v36  ;;  %v4077_v56 = vld [vmem:[%s8680_s4 + $0x340] sm:$0xff] }
 0x137   : > { %1943 = vmatpush.msra.mxu2 %v4081_v58  ;;  %1884 = vmatpush.msra.mxu3 %v4032_v24 }
 0x139   : > { %v6408_v22 = vpop.f32.mrf.mxu2  ;;  %v6410_v23 = vpop.f32.mrf.mxu3  ;;  %1944 = vmatpush.msra.mxu2 %v4080_v8  ;;  %1885 = vmatpush.msra.mxu3 %v4031_v7  ;;  %v4141_v7 = vld [vmem:[%s8680_s4 + $0x538] sm:$0xff] }
 0x13b   : > { %1945 = vmatpush.msra.mxu2 %v4079_v31  ;;  %1886 = vmatpush.msra.mxu3 %v4030_v30  ;;  %v4140_v30 = vld [vmem:[%s8680_s4 + $0x530] sm:$0xff] }
 0x13c   : > { %v1455_v10 = vpop.f32.mrf.mxu0  ;;  %v1478_v13 = vpop.f32.mrf.mxu1 }
 0x13d   : > { %v1456_v17 = vadd.f32 %v1455_v10, %v6342_v49  ;;  %v1479_v18 = vadd.f32 %v1478_v13, %v6344_v45  ;;  %v709_v49 = vadd.f32 %v5909_v2, %v545_v51  ;;  %v1476_v45 = vadd.f32 %v1475_v29, %v6288_v6  ;;  %1946 = vmatpush.msra.mxu2 %v4078_v39 }
 0x13e   : > { %v1453_v6 = vadd.f32 %v1452_v54, %v6286_v14  ;;  %1887 = vmatpush.msra.mxu3 %v4029_v35  ;;  %v1335_v29 = vmax.f32 %v1036_v61, %v1327_v19  ;;  %v1637_v51 = vperm.slane %v6460_v32, 0  ;;  %v4133_v54 = vld [vmem:[%s8680_s4 + $0x4f8] sm:$0xff]  ;;  %v568_v61 = vadd.f32 %v5923_v3, %v5871_v37  ;;  %v4130_v37 = vld [vmem:[%s8680_s4 + $0x4e0] sm:$0xff] }
 0x13f   : > { %v1037_v2 = vmax.f32 %v709_v49, %v1029_v34  ;;  %1947 = vmatpush.msra.mxu2 %v4077_v56  ;;  %v4138_v3 = vld [vmem:[%s8680_s4 + $0x520] sm:$0xff] }
 0x141   : > { %v1409_v55 = vpop.f32.mrf.mxu2  ;;  %v1432_v52 = vpop.f32.mrf.mxu3  ;;  %v1336_v50 = vmax.f32 %v1037_v2, %v1328_v12  ;;  %v4132_v12 = vld [vmem:[%s8680_s4 + $0x4f0] sm:$0xff]  ;;  %v896_v2 = vadd.f32 %v6009_v20, %v5989_v9  ;;  %v1200_v20 = vadd.f32 %v6204_v57, %v6110_v59 }
 0x142   : > { %v4128_v59 = vld [vmem:[%s8680_s4 + $0x4d0] sm:$0xff] }
 0x143   : > { %v1030_v9 = vadd.f32 %v6046_v40, %v896_v2  ;;  %v4129_v40 = vld [vmem:[%s8680_s4 + $0x4d8] sm:$0xff]  ;;  %v1329_v57 = vadd.f32 %v6320_v43, %v1200_v20 }
 0x144   : > { %v1544_v36 = vpop.f32.mrf.mxu0  ;;  %v1567_v58 = vpop.f32.mrf.mxu1 }
 0x145   : > { %v1619_v48 = vadd.f32 %v1544_v36, %v1453_v6  ;;  %v1620_v46 = vadd.f32 %v1567_v58, %v1476_v45 }
 0x147   : > { %v1627_v10 = vmax.f32 %v1335_v29, %v1619_v48  ;;  %v1628_v13 = vmax.f32 %v1336_v50, %v1620_v46  ;;  %v899_v48 = vadd.f32 %v6023_v25, %v6001_v15  ;;  %v1640_v25 = vperm.slane %v6460_v32, 3 }
 0x149   : > { %v1645_v24 = vadd.f32 %v1637_v51, %v1627_v10  ;;  %v1646_v8 = vadd.f32 %v1638_v62, %v1628_v13  ;;  %v1498_v33 = vpop.f32.mrf.mxu2  ;;  %v1521_v34 = vpop.f32.mrf.mxu3 }
 0x14a   : > { %v1499_v43 = vadd.f32 %v1498_v33, %v6408_v22  ;;  %v4134_v22 = vld [vmem:[%s8680_s4 + $0x500] sm:$0xff] }
 0x14b   : > { %v6471_v60 = vmax.f32 %v1645_v24, 0.0  ;;  %v6473_v14 = vmax.f32 %v1646_v8, 0.0  ;;  %v4126_v24 = vld [vmem:[%s8680_s4 + $0x4c0] sm:$0xff]  ;;  %v1639_v8 = vperm.slane %v6460_v32, 2 }
 0x14c   : > { %v1547_v31 = vpop.f32.mrf.mxu0  ;;  %v1570_v42 = vpop.f32.mrf.mxu1  ;;  %v8807_v32 = vld [vmem:[#allocation9_spill] sm:$0xff] }
 0x14d   : > { %v1623_v49 = vadd.f32 %v1547_v31, %v1456_v17  ;;  %v1624_v19 = vadd.f32 %v1570_v42, %v1479_v18  ;;  %1738 = vmatmul.f32.vlgmr.msra.gmra.mxu0 %v6471_v60  ;;  %1758 = vmatmul.f32.vlgmr.msra.gmra.mxu1 %v6473_v14  ;;  %v4131_v17 = vld [vmem:[%s8680_s4 + $0x4e8] sm:$0xff]  ;;  %v1864_v50 = vrot.slane %v6473_v14, 1  ;;  %v8805_v31 = vld [vmem:[#allocation11_spill] sm:$0xff] }
 0x14e   : > { %2059 = vmatpush.msra.mxu0 %v4133_v54  ;;  %2087 = vmatpush.msra.mxu1 %v4141_v7  ;;  %v4139_v18 = vld [vmem:[%s8680_s4 + $0x528] sm:$0xff]  ;;  %v8804_v54 = vld [vmem:[#allocation8_spill] sm:$0xff]  ;;  %v1034_v42 = vadd.f32 %v8805_v31, %v899_v48  ;;  %v4153_v31 = vld [vmem:[%s8680_s4 + $0x590] sm:$0xff] }
 0x14f   : > { %v1631_v39 = vmax.f32 %v6254_v0, %v1623_v49  ;;  %v1632_v45 = vmax.f32 %v6256_v27, %v1624_v19  ;;  %v591_v0 = vadd.f32 %v5925_v4, %v5873_v38  ;;  %v919_v27 = vadd.f32 %v6011_v21, %v5991_v11  ;;  %v4125_v49 = vld [vmem:[%s8680_s4 + $0x4b8] sm:$0xff]  ;;  %v4114_v48 = vld [vmem:[%s8680_s4 + $0x460] sm:$0xff] }
 0x150   : > { %2060 = vmatpush.msra.mxu0 %v4132_v12  ;;  %2088 = vmatpush.msra.mxu1 %v4140_v30  ;;  %v1223_v21 = vadd.f32 %v6206_v53, %v6112_v5  ;;  %v4136_v5 = vld [vmem:[%s8680_s4 + $0x510] sm:$0xff]  ;;  %v8806_v19 = vld [vmem:[#allocation12_spill] sm:$0xff] }
 0x151   : > { %v6505_v35 = vadd.f32 %v1637_v51, %v1631_v39  ;;  %v6507_v56 = vadd.f32 %v1638_v62, %v1632_v45  ;;  %v1501_v6 = vpop.f32.mrf.mxu2  ;;  %v1524_v29 = vpop.f32.mrf.mxu3  ;;  %v1031_v11 = vadd.f32 %v6048_v41, %v919_v27  ;;  %v710_v41 = vadd.f32 %v5961_v47, %v568_v61  ;;  %v4127_v47 = vld [vmem:[%s8680_s4 + $0x4c8] sm:$0xff] }
 0x152   : > { %2061 = vmatpush.msra.mxu0 %v4131_v17  ;;  %v6516_v38 = vadd.f32 %v1501_v6, %v1409_v55  ;;  %v6518_v4 = vadd.f32 %v1524_v29, %v1432_v52  ;;  %2089 = vmatpush.msra.mxu1 %v4139_v18  ;;  %v4137_v55 = vld [vmem:[%s8680_s4 + $0x518] sm:$0xff]  ;;  %v711_v52 = vadd.f32 %v5963_v63, %v591_v0  ;;  %v4135_v63 = vld [vmem:[%s8680_s4 + $0x508] sm:$0xff]  ;;  %v4124_v17 = vld [vmem:[%s8680_s4 + $0x4b0] sm:$0xff] }
 0x153   : > { %v1330_v53 = vadd.f32 %v6322_v28, %v1223_v21  ;;  %v1038_v36 = vmax.f32 %v710_v41, %v1030_v9  ;;  %v1522_v28 = vadd.f32 %v1521_v34, %v6410_v23  ;;  %v922_v51 = vadd.f32 %v6025_v26, %v6003_v16  ;;  %v8801_v16 = vld [vmem:[#allocation5_spill] sm:$0xff]  ;;  %v8802_v26 = vld [vmem:[#allocation7_spill] sm:$0xff]  ;;  %v8803_v34 = vld [vmem:[#allocation6_spill] sm:$0xff] }
 0x154   : > { %2062 = vmatpush.msra.mxu0 %v4130_v37  ;;  %2090 = vmatpush.msra.mxu1 %v4138_v3  ;;  %v1039_v58 = vmax.f32 %v711_v52, %v1031_v11  ;;  %v571_v33 = vadd.f32 %v8802_v26, %v8801_v16  ;;  %v594_v7 = vadd.f32 %v8804_v54, %v8803_v34  ;;  %v8808_v18 = vld [vmem:[#allocation10_spill] sm:$0xff]  ;;  %v4101_v9 = vld [vmem:[%s8680_s4 + $0x3f8] sm:$0xff] }
 0x155   : > { %1908 = vmatmul.f32.vlgmr.msrb.gmra.mxu0 %v1864_v50  ;;  %v1337_v46 = vmax.f32 %v1038_v36, %v1329_v57  ;;  %v1035_v12 = vadd.f32 %v8806_v19, %v922_v51  ;;  %v4123_v6 = vld [vmem:[%s8680_s4 + $0x4a8] sm:$0xff]  ;;  %v4117_v50 = vld [vmem:[%s8680_s4 + $0x478] sm:$0xff]  ;;  %v4100_v57 = vld [vmem:[%s8680_s4 + $0x3f0] sm:$0xff] }
 0x156   : > { %2063 = vmatpush.msra.mxu0 %v4129_v40  ;;  %2091 = vmatpush.msra.mxu1 %v4137_v55  ;;  %v1338_v62 = vmax.f32 %v1039_v58, %v1330_v53  ;;  %v714_v45 = vadd.f32 %v8807_v32, %v571_v33  ;;  %v715_v61 = vadd.f32 %v8808_v18, %v594_v7  ;;  %v4122_v40 = vld [vmem:[%s8680_s4 + $0x4a0] sm:$0xff]  ;;  %v4115_v36 = vld [vmem:[%s8680_s4 + $0x468] sm:$0xff]  ;;  %v4120_v58 = vld [vmem:[%s8680_s4 + $0x490] sm:$0xff] }
 0x157   : > { %v4119_v51 = vld [vmem:[%s8680_s4 + $0x488] sm:$0xff]  ;;  %v4112_v16 = vld [vmem:[%s8680_s4 + $0x450] sm:$0xff]  ;;  %v4154_v33 = vld [vmem:[%s8680_s4 + $0x598] sm:$0xff] }
 0x158   : > { %2064 = vmatpush.msra.mxu0 %v4128_v59  ;;  %2092 = vmatpush.msra.mxu1 %v4136_v5  ;;  %v1042_v27 = vmax.f32 %v714_v45, %v1034_v42  ;;  %v1043_v29 = vmax.f32 %v715_v61, %v1035_v12  ;;  %v4158_v59 = vld [vmem:[%s8680_s4 + $0x5b8] sm:$0xff]  ;;  %v4099_v5 = vld [vmem:[%s8680_s4 + $0x3e8] sm:$0xff]  ;;  %v4197_v34 = vld [vmem:[%s8680_s4 + $0x6f0] sm:$0xff] }
 0x159   : > { %v1590_v10 = vpop.f32.mrf.mxu2  ;;  %v1613_v13 = vpop.f32.mrf.mxu3  ;;  %v4095_v54 = vld [vmem:[%s8680_s4 + $0x3c8] sm:$0xff]  ;;  %v4110_v19 = vld [vmem:[%s8680_s4 + $0x440] sm:$0xff]  ;;  %v4109_v32 = vld [vmem:[%s8680_s4 + $0x438] sm:$0xff] }
 0x15a   : > { %2065 = vmatpush.msra.mxu0 %v4127_v47  ;;  %v1621_v23 = vadd.f32 %v1590_v10, %v1499_v43  ;;  %v1622_v15 = vadd.f32 %v1613_v13, %v1522_v28  ;;  %2093 = vmatpush.msra.mxu1 %v4135_v63  ;;  %v1341_v11 = vmax.f32 %v1042_v27, %v6374_v44  ;;  %v4157_v43 = vld [vmem:[%s8680_s4 + $0x5b0] sm:$0xff]  ;;  %v4098_v28 = vld [vmem:[%s8680_s4 + $0x3e0] sm:$0xff]  ;;  %v4113_v10 = vld [vmem:[%s8680_s4 + $0x458] sm:$0xff] }
 0x15b   : > { %v1342_v55 = vmax.f32 %v1043_v29, %v6376_v1  ;;  %v4116_v1 = vld [vmem:[%s8680_s4 + $0x470] sm:$0xff]  ;;  %v4111_v7 = vld [vmem:[%s8680_s4 + $0x448] sm:$0xff]  ;;  %v4151_v45 = vld [vmem:[%s8680_s4 + $0x580] sm:$0xff] }
 0x15c   : > { %v1629_v30 = vmax.f32 %v1337_v46, %v1621_v23  ;;  %v1630_v39 = vmax.f32 %v1338_v62, %v1622_v15  ;;  %2066 = vmatpush.msra.mxu0 %v4126_v24  ;;  %2094 = vmatpush.msra.mxu1 %v4134_v22  ;;  %v4156_v46 = vld [vmem:[%s8680_s4 + $0x5a8] sm:$0xff]  ;;  %v1863_v62 = vrot.slane %v6471_v60, 1  ;;  %v4097_v24 = vld [vmem:[%s8680_s4 + $0x3d8] sm:$0xff]  ;;  %v4118_v22 = vld [vmem:[%s8680_s4 + $0x480] sm:$0xff] }
 0x15d   : > { %v4155_v23 = vld [vmem:[%s8680_s4 + $0x5a0] sm:$0xff]  ;;  %v4198_v15 = vld [vmem:[%s8680_s4 + $0x6f8] sm:$0xff]  ;;  %v4196_v42 = vld [vmem:[%s8680_s4 + $0x6e8] sm:$0xff] }
 0x15e   : > { %v1647_v2 = vadd.f32 %v1639_v8, %v1629_v30  ;;  %v1648_v0 = vadd.f32 %v1640_v25, %v1630_v39  ;;  %2067 = vmatpush.msra.mxu0 %v4125_v49  ;;  %v4094_v49 = vld [vmem:[%s8680_s4 + $0x3c0] sm:$0xff]  ;;  %v4152_v12 = vld [vmem:[%s8680_s4 + $0x588] sm:$0xff]  ;;  %v4093_v39 = vld [vmem:[%s8680_s4 + $0x3b8] sm:$0xff] }
 0x15f   : > { %v4195_v30 = vld [vmem:[%s8680_s4 + $0x6e0] sm:$0xff]  ;;  %v4092_v18 = vld [vmem:[%s8680_s4 + $0x3b0] sm:$0xff]  ;;  %v4091_v27 = vld [vmem:[%s8680_s4 + $0x3a8] sm:$0xff] }
 0x160   : > { %v6579_v37 = vmax.f32 %v1647_v2, 0.0  ;;  %v6581_v3 = vmax.f32 %v1648_v0, 0.0  ;;  %2068 = vmatpush.msra.mxu0 %v4124_v17  ;;  %v4194_v17 = vld [vmem:[%s8680_s4 + $0x6d8] sm:$0xff]  ;;  %v4108_v61 = vld [vmem:[%s8680_s4 + $0x430] sm:$0xff] }
 0x161   : > { %v1593_v20 = vpop.f32.mrf.mxu2  ;;  %v1616_v21 = vpop.f32.mrf.mxu3  ;;  %v4150_v2 = vld [vmem:[%s8680_s4 + $0x578] sm:$0xff]  ;;  %v4193_v0 = vld [vmem:[%s8680_s4 + $0x6d0] sm:$0xff] }
 0x162   : > { %2069 = vmatpush.msra.mxu0 %v4123_v6  ;;  %v1625_v41 = vadd.f32 %v1593_v20, %v6516_v38  ;;  %v1626_v52 = vadd.f32 %v1616_v21, %v6518_v4  ;;  %1778 = vmatmul.f32.vlgmr.msrb.gmra.mxu2 %v6579_v37  ;;  %v1865_v44 = vrot.slane %v6579_v37, 1  ;;  %v4121_v38 = vld [vmem:[%s8680_s4 + $0x498] sm:$0xff]  ;;  %v1866_v13 = vrot.slane %v6581_v3, 1  ;;  %v4107_v6 = vld [vmem:[%s8680_s4 + $0x428] sm:$0xff]  ;;  %v4149_v29 = vld [vmem:[%s8680_s4 + $0x570] sm:$0xff] }
 0x163   : > { %4028 = vmatmul.msk.f32.vlgmr.msrb.gmra.mxu3 %vm1718_vm3, %v6581_v3  ;;  %2019 = vmatpush.msrb.mxu2 %v4101_v9  ;;  %v2013_v26 = vrot.slane %v6581_v3, 2  ;;  %v4192_v9 = vld [vmem:[%s8680_s4 + $0x6c8] sm:$0xff]  ;;  %v4106_v20 = vld [vmem:[%s8680_s4 + $0x420] sm:$0xff] }
 0x164   : > { %v1633_v4 = vmax.f32 %v1341_v11, %v1625_v41  ;;  %v1634_v53 = vmax.f32 %v1342_v55, %v1626_v52  ;;  %2039 = vmatpush.msrb.mxu3 %v4117_v50  ;;  %2070 = vmatpush.msra.mxu0 %v4122_v40  ;;  %v4090_v11 = vld [vmem:[%s8680_s4 + $0x3a0] sm:$0xff]  ;;  %v4148_v21 = vld [vmem:[%s8680_s4 + $0x568] sm:$0xff]  ;;  %v4089_v40 = vld [vmem:[%s8680_s4 + $0x398] sm:$0xff]  ;;  %v2160_v52 = vrot.slane %v6581_v3, 3 }
 0x165   : > { %1928 = vmatmul.f32.vlgmr.msrb.gmra.mxu1 %v1865_v44  ;;  %2020 = vmatpush.msrb.mxu2 %v4100_v57  ;;  %v4191_v50 = vld [vmem:[%s8680_s4 + $0x6c0] sm:$0xff]  ;;  %v4105_v55 = vld [vmem:[%s8680_s4 + $0x418] sm:$0xff]  ;;  %v4088_v57 = vld [vmem:[%s8680_s4 + $0x390] sm:$0xff] }
 0x166   : > { %v6621_v47 = vadd.f32 %v1639_v8, %v1633_v4  ;;  %v6623_v63 = vadd.f32 %v1640_v25, %v1634_v53  ;;  %2040 = vmatpush.msrb.mxu3 %v4116_v1  ;;  %2071 = vmatpush.msra.mxu0 %v4121_v38  ;;  %v2012_v8 = vrot.slane %v6579_v37, 2  ;;  %v4096_v25 = vld [vmem:[%s8680_s4 + $0x3d0] sm:$0xff]  ;;  %v4147_v41 = vld [vmem:[%s8680_s4 + $0x560] sm:$0xff]  ;;  %v4215_v44 = vld [vmem:[%s8680_s4 + $0x778] sm:$0xff] }
 0x167   : > { %2166 = vmatpush.msrb.mxu1 %v4158_v59  ;;  %2021 = vmatpush.msrb.mxu2 %v4099_v5  ;;  %v4104_v1 = vld [vmem:[%s8680_s4 + $0x410] sm:$0xff]  ;;  %v4146_v38 = vld [vmem:[%s8680_s4 + $0x558] sm:$0xff]  ;;  %v4087_v53 = vld [vmem:[%s8680_s4 + $0x388] sm:$0xff] }
 0x168   : > { %2041 = vmatpush.msrb.mxu3 %v4115_v36  ;;  %2072 = vmatpush.msra.mxu0 %v4120_v58  ;;  %v4214_v4 = vld [vmem:[%s8680_s4 + $0x770] sm:$0xff]  ;;  %v4103_v59 = vld [vmem:[%s8680_s4 + $0x408] sm:$0xff]  ;;  %v4086_v58 = vld [vmem:[%s8680_s4 + $0x380] sm:$0xff] }
 0x169   : > { %2167 = vmatpush.msrb.mxu1 %v4157_v43  ;;  %2022 = vmatpush.msrb.mxu2 %v4098_v28  ;;  %v4145_v5 = vld [vmem:[%s8680_s4 + $0x550] sm:$0xff]  ;;  %v4213_v36 = vld [vmem:[%s8680_s4 + $0x768] sm:$0xff]  ;;  %v4102_v43 = vld [vmem:[%s8680_s4 + $0x400] sm:$0xff] }
 0x16a   : > { %2042 = vmatpush.msrb.mxu3 %v4114_v48  ;;  %2073 = vmatpush.msra.mxu0 %v4119_v51  ;;  %v4144_v28 = vld [vmem:[%s8680_s4 + $0x548] sm:$0xff]  ;;  %v4212_v48 = vld [vmem:[%s8680_s4 + $0x760] sm:$0xff]  ;;  %v2010_v51 = vrot.slane %v6471_v60, 2 }
 0x16b   : > { %2168 = vmatpush.msrb.mxu1 %v4156_v46  ;;  %1888 = vmatmul.f32.vlgmr.msra.gmra.mxu3 %v1863_v62  ;;  %v4174_v46 = vld [vmem:[%s8680_s4 + $0x638] sm:$0xff]  ;;  %v2011_v62 = vrot.slane %v6473_v14, 2 }
 0x16c   : > { %4085 = vmatmul.msk.f32.vlgmr.msra.gmra.mxu2 %vm1718_vm3, %v1866_v13  ;;  %2043 = vmatpush.msrb.mxu3 %v4113_v10  ;;  %v4190_v10 = vld [vmem:[%s8680_s4 + $0x6b8] sm:$0xff]  ;;  %v4143_v13 = vld [vmem:[%s8680_s4 + $0x540] sm:$0xff] }
 0x16d   : > { %2023 = vmatpush.msrb.mxu2 %v4097_v24  ;;  %2074 = vmatpush.msra.mxu0 %v4118_v22  ;;  %v4211_v24 = vld [vmem:[%s8680_s4 + $0x758] sm:$0xff]  ;;  %v2157_v22 = vrot.slane %v6471_v60, 3 }
 0x16e   : > { %2169 = vmatpush.msrb.mxu1 %v4155_v23  ;;  %2075 = vmatmul.f32.vlgmr.msra.gmra.mxu0 %v2012_v8  ;;  %v4173_v23 = vld [vmem:[%s8680_s4 + $0x630] sm:$0xff] }
 0x16f   : > { %2234 = vmatpush.msrb.mxu0 %v4198_v15  ;;  %2024 = vmatpush.msrb.mxu2 %v4096_v25  ;;  %v4189_v8 = vld [vmem:[%s8680_s4 + $0x6b0] sm:$0xff]  ;;  %v4231_v15 = vld [vmem:[%s8680_s4 + $0x7f8] sm:$0xff] }
 0x170   : > { %2044 = vmatpush.msrb.mxu3 %v4112_v16  ;;  %4142 = vmatmul.msk.f32.vlgmr.msra.gmra.mxu1 %vm1718_vm3, %v2013_v26  ;;  %v4210_v25 = vld [vmem:[%s8680_s4 + $0x750] sm:$0xff]  ;;  %v4172_v16 = vld [vmem:[%s8680_s4 + $0x628] sm:$0xff] }
 0x171   : > { %2170 = vmatpush.msrb.mxu1 %v4154_v33  ;;  %2235 = vmatpush.msrb.mxu0 %v4197_v34  ;;  %v4188_v26 = vld [vmem:[%s8680_s4 + $0x6a8] sm:$0xff]  ;;  %v4230_v33 = vld [vmem:[%s8680_s4 + $0x7f0] sm:$0xff] }
 0x172   : > { %2025 = vmatpush.msrb.mxu2 %v4095_v54  ;;  %2045 = vmatpush.msrb.mxu3 %v4111_v7  ;;  %v4209_v34 = vld [vmem:[%s8680_s4 + $0x748] sm:$0xff]  ;;  %v4171_v54 = vld [vmem:[%s8680_s4 + $0x620] sm:$0xff] }
 0x173   : > { %2171 = vmatpush.msrb.mxu1 %v4153_v31  ;;  %2236 = vmatpush.msrb.mxu0 %v4196_v42  ;;  %v4187_v7 = vld [vmem:[%s8680_s4 + $0x6a0] sm:$0xff]  ;;  %v4229_v31 = vld [vmem:[%s8680_s4 + $0x7e8] sm:$0xff] }
 0x174   : > { %2026 = vmatpush.msrb.mxu2 %v4094_v49  ;;  %2046 = vmatpush.msrb.mxu3 %v4110_v19  ;;  %v4208_v42 = vld [vmem:[%s8680_s4 + $0x740] sm:$0xff]  ;;  %v4170_v49 = vld [vmem:[%s8680_s4 + $0x618] sm:$0xff] }
 0x175   : > { %2172 = vmatpush.msrb.mxu1 %v4152_v12  ;;  %2237 = vmatpush.msrb.mxu0 %v4195_v30  ;;  %v4186_v19 = vld [vmem:[%s8680_s4 + $0x698] sm:$0xff]  ;;  %v4228_v12 = vld [vmem:[%s8680_s4 + $0x7e0] sm:$0xff] }
 0x176   : > { %2027 = vmatpush.msrb.mxu2 %v4093_v39  ;;  %2047 = vmatpush.msrb.mxu3 %v4109_v32  ;;  %v4207_v30 = vld [vmem:[%s8680_s4 + $0x738] sm:$0xff]  ;;  %v4169_v39 = vld [vmem:[%s8680_s4 + $0x610] sm:$0xff] }
 0x177   : > { %2173 = vmatpush.msrb.mxu1 %v4151_v45  ;;  %2238 = vmatpush.msrb.mxu0 %v4194_v17  ;;  %v4185_v32 = vld [vmem:[%s8680_s4 + $0x690] sm:$0xff]  ;;  %v4227_v45 = vld [vmem:[%s8680_s4 + $0x7d8] sm:$0xff] }
 0x178   : > { %2028 = vmatpush.msrb.mxu2 %v4092_v18  ;;  %2048 = vmatpush.msrb.mxu3 %v4108_v61  ;;  %v4206_v17 = vld [vmem:[%s8680_s4 + $0x730] sm:$0xff]  ;;  %v4168_v18 = vld [vmem:[%s8680_s4 + $0x608] sm:$0xff] }
 0x179   : > { %2174 = vmatpush.msrb.mxu1 %v4150_v2  ;;  %2239 = vmatpush.msrb.mxu0 %v4193_v0  ;;  %v4184_v61 = vld [vmem:[%s8680_s4 + $0x688] sm:$0xff]  ;;  %v4226_v2 = vld [vmem:[%s8680_s4 + $0x7d0] sm:$0xff] }
 0x17a   : > { %2029 = vmatpush.msrb.mxu2 %v4091_v27  ;;  %2049 = vmatpush.msrb.mxu3 %v4107_v6  ;;  %v4205_v0 = vld [vmem:[%s8680_s4 + $0x728] sm:$0xff]  ;;  %v4167_v27 = vld [vmem:[%s8680_s4 + $0x600] sm:$0xff] }
 0x17b   : > { %2175 = vmatpush.msrb.mxu1 %v4149_v29  ;;  %2240 = vmatpush.msrb.mxu0 %v4192_v9  ;;  %v4183_v6 = vld [vmem:[%s8680_s4 + $0x680] sm:$0xff]  ;;  %v4225_v29 = vld [vmem:[%s8680_s4 + $0x7c8] sm:$0xff] }
 0x17c   : > { %2030 = vmatpush.msrb.mxu2 %v4090_v11  ;;  %2050 = vmatpush.msrb.mxu3 %v4106_v20  ;;  %v4204_v9 = vld [vmem:[%s8680_s4 + $0x720] sm:$0xff]  ;;  %v4166_v11 = vld [vmem:[%s8680_s4 + $0x5f8] sm:$0xff] }
 0x17d   : > { %2176 = vmatpush.msrb.mxu1 %v4148_v21  ;;  %2241 = vmatpush.msrb.mxu0 %v4191_v50  ;;  %v4182_v20 = vld [vmem:[%s8680_s4 + $0x678] sm:$0xff]  ;;  %v4224_v21 = vld [vmem:[%s8680_s4 + $0x7c0] sm:$0xff] }
 0x17e   : > { %2031 = vmatpush.msrb.mxu2 %v4089_v40  ;;  %2051 = vmatpush.msrb.mxu3 %v4105_v55  ;;  %v4203_v50 = vld [vmem:[%s8680_s4 + $0x718] sm:$0xff]  ;;  %v4165_v40 = vld [vmem:[%s8680_s4 + $0x5f0] sm:$0xff] }
 0x17f   : > { %2177 = vmatpush.msrb.mxu1 %v4147_v41  ;;  %4199 = vmatmul.msk.f32.vlgmr.msrb.gmra.mxu0 %vm1718_vm3, %v2160_v52  ;;  %v4181_v55 = vld [vmem:[%s8680_s4 + $0x670] sm:$0xff]  ;;  %v4223_v41 = vld [vmem:[%s8680_s4 + $0x7b8] sm:$0xff] }
 0x180   : > { %2313 = vmatpush.msra.mxu0 %v4215_v44  ;;  %2032 = vmatpush.msrb.mxu2 %v4088_v57  ;;  %v4202_v52 = vld [vmem:[%s8680_s4 + $0x710] sm:$0xff]  ;;  %v4164_v44 = vld [vmem:[%s8680_s4 + $0x5e8] sm:$0xff] }
 0x181   : > { %2052 = vmatpush.msrb.mxu3 %v4104_v1  ;;  %2178 = vmatpush.msrb.mxu1 %v4146_v38  ;;  %v4180_v57 = vld [vmem:[%s8680_s4 + $0x668] sm:$0xff]  ;;  %v4222_v1 = vld [vmem:[%s8680_s4 + $0x7b0] sm:$0xff] }
 0x182   : > { %2314 = vmatpush.msra.mxu0 %v4214_v4  ;;  %2033 = vmatpush.msrb.mxu2 %v4087_v53  ;;  %v4201_v38 = vld [vmem:[%s8680_s4 + $0x708] sm:$0xff]  ;;  %v4163_v4 = vld [vmem:[%s8680_s4 + $0x5e0] sm:$0xff] }
 0x183   : > { %2053 = vmatpush.msrb.mxu3 %v4103_v59  ;;  %2179 = vmatpush.msrb.mxu1 %v4145_v5  ;;  %v4179_v53 = vld [vmem:[%s8680_s4 + $0x660] sm:$0xff]  ;;  %v4221_v59 = vld [vmem:[%s8680_s4 + $0x7a8] sm:$0xff] }
 0x184   : > { %2315 = vmatpush.msra.mxu0 %v4213_v36  ;;  %2034 = vmatpush.msrb.mxu2 %v4086_v58  ;;  %v4200_v5 = vld [vmem:[%s8680_s4 + $0x700] sm:$0xff]  ;;  %v4162_v36 = vld [vmem:[%s8680_s4 + $0x5d8] sm:$0xff] }
 0x185   : > { %2054 = vmatpush.msrb.mxu3 %v4102_v43  ;;  %2180 = vmatpush.msrb.mxu1 %v4144_v28  ;;  %v4178_v58 = vld [vmem:[%s8680_s4 + $0x658] sm:$0xff]  ;;  %v4220_v43 = vld [vmem:[%s8680_s4 + $0x7a0] sm:$0xff]  ;;  %v2304_v28 = vrot.slane %v6471_v60, 4 }
 0x186   : > { %2316 = vmatpush.msra.mxu0 %v4212_v48  ;;  %2035 = vmatmul.f32.vlgmr.msrb.gmra.mxu2 %v2010_v51  ;;  %v4288_v48 = vld [vmem:[%s8680_s4 + $0x9b8] sm:$0xff]  ;;  %v4161_v51 = vld [vmem:[%s8680_s4 + $0x5d0] sm:$0xff] }
 0x187   : > { %2055 = vmatmul.f32.vlgmr.msrb.gmra.mxu3 %v2011_v62  ;;  %2186 = vmatpush.msra.mxu2 %v4174_v46  ;;  %v4177_v46 = vld [vmem:[%s8680_s4 + $0x650] sm:$0xff]  ;;  %v4219_v62 = vld [vmem:[%s8680_s4 + $0x798] sm:$0xff] }
 0x188   : > { %2206 = vmatpush.msra.mxu3 %v4190_v10  ;;  %2181 = vmatpush.msrb.mxu1 %v4143_v13  ;;  %v4287_v10 = vld [vmem:[%s8680_s4 + $0x9b0] sm:$0xff]  ;;  %v4160_v13 = vld [vmem:[%s8680_s4 + $0x5c8] sm:$0xff] }
 0x189   : > { %2317 = vmatpush.msra.mxu0 %v4211_v24  ;;  %2182 = vmatmul.f32.vlgmr.msrb.gmra.mxu1 %v2157_v22  ;;  %v4176_v24 = vld [vmem:[%s8680_s4 + $0x648] sm:$0xff]  ;;  %v4218_v22 = vld [vmem:[%s8680_s4 + $0x790] sm:$0xff] }
 0x18a   : > { %2187 = vmatpush.msra.mxu2 %v4173_v23  ;;  %2207 = vmatpush.msra.mxu3 %v4189_v8  ;;  %v4286_v23 = vld [vmem:[%s8680_s4 + $0x9a8] sm:$0xff]  ;;  %v4159_v8 = vld [vmem:[%s8680_s4 + $0x5c0] sm:$0xff] }
 0x18b   : > { %2333 = vmatpush.msra.mxu1 %v4231_v15  ;;  %2318 = vmatpush.msra.mxu0 %v4210_v25  ;;  %v4175_v15 = vld [vmem:[%s8680_s4 + $0x640] sm:$0xff]  ;;  %v4217_v25 = vld [vmem:[%s8680_s4 + $0x788] sm:$0xff] }
 0x18c   : > { %2188 = vmatpush.msra.mxu2 %v4172_v16  ;;  %2208 = vmatpush.msra.mxu3 %v4188_v26  ;;  %v4285_v16 = vld [vmem:[%s8680_s4 + $0x9a0] sm:$0xff]  ;;  %v2158_v26 = vrot.slane %v6473_v14, 3 }
 0x18d   : > { %2334 = vmatpush.msra.mxu1 %v4230_v33  ;;  %2319 = vmatpush.msra.mxu0 %v4209_v34  ;;  %v4247_v33 = vld [vmem:[%s8680_s4 + $0x878] sm:$0xff]  ;;  %v2159_v34 = vrot.slane %v6579_v37, 3 }
 0x18e   : > { %2189 = vmatpush.msra.mxu2 %v4171_v54  ;;  %2209 = vmatpush.msra.mxu3 %v4187_v7  ;;  %v4255_v54 = vld [vmem:[%s8680_s4 + $0x8b8] sm:$0xff]  ;;  %v4216_v7 = vld [vmem:[%s8680_s4 + $0x780] sm:$0xff] }
 0x18f   : > { %2335 = vmatpush.msra.mxu1 %v4229_v31  ;;  %2320 = vmatpush.msra.mxu0 %v4208_v42  ;;  %v4284_v31 = vld [vmem:[%s8680_s4 + $0x998] sm:$0xff]  ;;  %v2305_v42 = vrot.slane %v6473_v14, 4 }
 0x190   : > { %2190 = vmatpush.msra.mxu2 %v4170_v49  ;;  %2210 = vmatpush.msra.mxu3 %v4186_v19  ;;  %v4246_v49 = vld [vmem:[%s8680_s4 + $0x870] sm:$0xff] }
 0x191   : > { %2336 = vmatpush.msra.mxu1 %v4228_v12  ;;  %2321 = vmatpush.msra.mxu0 %v4207_v30  ;;  %v4254_v19 = vld [vmem:[%s8680_s4 + $0x8b0] sm:$0xff]  ;;  %v4304_v12 = vld [vmem:[%s8680_s4 + $0xa38] sm:$0xff] }
 0x192   : > { %2191 = vmatpush.msra.mxu2 %v4169_v39  ;;  %2211 = vmatpush.msra.mxu3 %v4185_v32  ;;  %v4283_v30 = vld [vmem:[%s8680_s4 + $0x990] sm:$0xff]  ;;  %v4245_v39 = vld [vmem:[%s8680_s4 + $0x868] sm:$0xff] }
 0x193   : > { %2337 = vmatpush.msra.mxu1 %v4227_v45  ;;  %2322 = vmatpush.msra.mxu0 %v4206_v17  ;;  %v4253_v32 = vld [vmem:[%s8680_s4 + $0x8a8] sm:$0xff]  ;;  %v4303_v45 = vld [vmem:[%s8680_s4 + $0xa30] sm:$0xff] }
 0x194   : > { %2192 = vmatpush.msra.mxu2 %v4168_v18  ;;  %2212 = vmatpush.msra.mxu3 %v4184_v61  ;;  %v4282_v17 = vld [vmem:[%s8680_s4 + $0x988] sm:$0xff]  ;;  %v4244_v18 = vld [vmem:[%s8680_s4 + $0x860] sm:$0xff] }
 0x195   : > { %2338 = vmatpush.msra.mxu1 %v4226_v2  ;;  %2323 = vmatpush.msra.mxu0 %v4205_v0  ;;  %v4252_v61 = vld [vmem:[%s8680_s4 + $0x8a0] sm:$0xff]  ;;  %v4302_v2 = vld [vmem:[%s8680_s4 + $0xa28] sm:$0xff] }
 0x196   : > { %2193 = vmatpush.msra.mxu2 %v4167_v27  ;;  %2213 = vmatpush.msra.mxu3 %v4183_v6  ;;  %v4281_v0 = vld [vmem:[%s8680_s4 + $0x980] sm:$0xff]  ;;  %v4243_v27 = vld [vmem:[%s8680_s4 + $0x858] sm:$0xff] }
 0x197   : > { %2339 = vmatpush.msra.mxu1 %v4225_v29  ;;  %2324 = vmatpush.msra.mxu0 %v4204_v9  ;;  %v4251_v6 = vld [vmem:[%s8680_s4 + $0x898] sm:$0xff]  ;;  %v4301_v29 = vld [vmem:[%s8680_s4 + $0xa20] sm:$0xff] }
 0x198   : > { %2194 = vmatpush.msra.mxu2 %v4166_v11  ;;  %2214 = vmatpush.msra.mxu3 %v4182_v20  ;;  %v4280_v9 = vld [vmem:[%s8680_s4 + $0x978] sm:$0xff]  ;;  %v4242_v11 = vld [vmem:[%s8680_s4 + $0x850] sm:$0xff] }
 0x199   : > { %2340 = vmatpush.msra.mxu1 %v4224_v21  ;;  %2325 = vmatpush.msra.mxu0 %v4203_v50  ;;  %v4250_v20 = vld [vmem:[%s8680_s4 + $0x890] sm:$0xff]  ;;  %v4300_v21 = vld [vmem:[%s8680_s4 + $0xa18] sm:$0xff] }
 0x19a   : > { %2195 = vmatpush.msra.mxu2 %v4165_v40  ;;  %2215 = vmatpush.msra.mxu3 %v4181_v55  ;;  %v4279_v50 = vld [vmem:[%s8680_s4 + $0x970] sm:$0xff]  ;;  %v4241_v40 = vld [vmem:[%s8680_s4 + $0x848] sm:$0xff] }
 0x19b   : > { %2341 = vmatpush.msra.mxu1 %v4223_v41  ;;  %2326 = vmatpush.msra.mxu0 %v4202_v52  ;;  %v4249_v55 = vld [vmem:[%s8680_s4 + $0x888] sm:$0xff]  ;;  %v4299_v41 = vld [vmem:[%s8680_s4 + $0xa10] sm:$0xff] }
 0x19c   : > { %2196 = vmatpush.msra.mxu2 %v4164_v44  ;;  %2216 = vmatpush.msra.mxu3 %v4180_v57  ;;  %v4278_v52 = vld [vmem:[%s8680_s4 + $0x968] sm:$0xff]  ;;  %v4240_v44 = vld [vmem:[%s8680_s4 + $0x840] sm:$0xff] }
 0x19d   : > { %2342 = vmatpush.msra.mxu1 %v4222_v1  ;;  %2327 = vmatpush.msra.mxu0 %v4201_v38  ;;  %v4248_v57 = vld [vmem:[%s8680_s4 + $0x880] sm:$0xff]  ;;  %v4298_v1 = vld [vmem:[%s8680_s4 + $0xa08] sm:$0xff]  ;;  %v2307_v38 = vrot.slane %v6581_v3, 4 }
 0x19e   : > { %2197 = vmatpush.msra.mxu2 %v4163_v4  ;;  %2217 = vmatpush.msra.mxu3 %v4179_v53  ;;  %v4272_v4 = vld [vmem:[%s8680_s4 + $0x938] sm:$0xff]  ;;  %v4277_v53 = vld [vmem:[%s8680_s4 + $0x960] sm:$0xff] }
 0x19f   : > { %2343 = vmatpush.msra.mxu1 %v4221_v59  ;;  %2328 = vmatpush.msra.mxu0 %v4200_v5  ;;  %v4239_v59 = vld [vmem:[%s8680_s4 + $0x838] sm:$0xff]  ;;  %v4297_v5 = vld [vmem:[%s8680_s4 + $0xa00] sm:$0xff] }
 0x1a0   : > { %2198 = vmatpush.msra.mxu2 %v4162_v36  ;;  %2218 = vmatpush.msra.mxu3 %v4178_v58  ;;  %v4271_v36 = vld [vmem:[%s8680_s4 + $0x930] sm:$0xff]  ;;  %v4276_v58 = vld [vmem:[%s8680_s4 + $0x958] sm:$0xff] }
 0x1a1   : > { %2329 = vmatmul.f32.vlgmr.msra.gmra.mxu0 %v2304_v28  ;;  %2344 = vmatpush.msra.mxu1 %v4220_v43  ;;  %v4238_v43 = vld [vmem:[%s8680_s4 + $0x830] sm:$0xff]  ;;  %v4296_v28 = vld [vmem:[%s8680_s4 + $0x9f8] sm:$0xff] }
 0x1a2   : > { %2480 = vmatpush.msrb.mxu0 %v4288_v48  ;;  %2199 = vmatpush.msra.mxu2 %v4161_v51  ;;  %v4270_v48 = vld [vmem:[%s8680_s4 + $0x928] sm:$0xff]  ;;  %v4275_v51 = vld [vmem:[%s8680_s4 + $0x950] sm:$0xff] }
 0x1a3   : > { %2219 = vmatpush.msra.mxu3 %v4177_v46  ;;  %2345 = vmatpush.msra.mxu1 %v4219_v62  ;;  %v4237_v46 = vld [vmem:[%s8680_s4 + $0x828] sm:$0xff]  ;;  %v4295_v62 = vld [vmem:[%s8680_s4 + $0x9f0] sm:$0xff] }
 0x1a4   : > { %2481 = vmatpush.msrb.mxu0 %v4287_v10  ;;  %2200 = vmatpush.msra.mxu2 %v4160_v13  ;;  %v4269_v10 = vld [vmem:[%s8680_s4 + $0x920] sm:$0xff]  ;;  %v4274_v13 = vld [vmem:[%s8680_s4 + $0x948] sm:$0xff] }
 0x1a5   : > { %2220 = vmatpush.msra.mxu3 %v4176_v24  ;;  %2346 = vmatpush.msra.mxu1 %v4218_v22  ;;  %v4236_v24 = vld [vmem:[%s8680_s4 + $0x820] sm:$0xff]  ;;  %v4294_v22 = vld [vmem:[%s8680_s4 + $0x9e8] sm:$0xff] }
 0x1a6   : > { %2482 = vmatpush.msrb.mxu0 %v4286_v23  ;;  %2201 = vmatpush.msra.mxu2 %v4159_v8  ;;  %v4268_v23 = vld [vmem:[%s8680_s4 + $0x918] sm:$0xff]  ;;  %v4273_v8 = vld [vmem:[%s8680_s4 + $0x940] sm:$0xff] }
 0x1a7   : > { %2221 = vmatpush.msra.mxu3 %v4175_v15  ;;  %2347 = vmatpush.msra.mxu1 %v4217_v25  ;;  %v4235_v15 = vld [vmem:[%s8680_s4 + $0x818] sm:$0xff]  ;;  %v2452_v25 = vrot.slane %v6473_v14, 5 }
 0x1a8   : > { %2483 = vmatpush.msrb.mxu0 %v4285_v16  ;;  %2202 = vmatmul.f32.vlgmr.msra.gmra.mxu2 %v2158_v26  ;;  %v4293_v16 = vld [vmem:[%s8680_s4 + $0x9e0] sm:$0xff]  ;;  %v4361_v26 = vld [vmem:[%s8680_s4 + $0xbf8] sm:$0xff] }
 0x1a9   : > { %2222 = vmatmul.f32.vlgmr.msra.gmra.mxu3 %v2159_v34  ;;  %2353 = vmatpush.msrb.mxu2 %v4247_v33  ;;  %v4267_v33 = vld [vmem:[%s8680_s4 + $0x910] sm:$0xff] }
 0x1aa   : > { %2381 = vmatpush.msrb.mxu3 %v4255_v54  ;;  %2348 = vmatpush.msra.mxu1 %v4216_v7  ;;  %v4234_v34 = vld [vmem:[%s8680_s4 + $0x810] sm:$0xff]  ;;  %v4292_v54 = vld [vmem:[%s8680_s4 + $0x9d8] sm:$0xff] }
 0x1ab   : > { %2484 = vmatpush.msrb.mxu0 %v4284_v31  ;;  %2349 = vmatmul.f32.vlgmr.msra.gmra.mxu1 %v2305_v42  ;;  %v4360_v7 = vld [vmem:[%s8680_s4 + $0xbf0] sm:$0xff]  ;;  %v4266_v31 = vld [vmem:[%s8680_s4 + $0x908] sm:$0xff] }
 0x1ac   : > { %2354 = vmatpush.msrb.mxu2 %v4246_v49  ;;  %2382 = vmatpush.msrb.mxu3 %v4254_v19  ;;  %v4233_v42 = vld [vmem:[%s8680_s4 + $0x808] sm:$0xff]  ;;  %v4291_v49 = vld [vmem:[%s8680_s4 + $0x9d0] sm:$0xff] }
 0x1ad   : > { %2500 = vmatpush.msrb.mxu1 %v4304_v12  ;;  %2485 = vmatpush.msrb.mxu0 %v4283_v30  ;;  %v4359_v19 = vld [vmem:[%s8680_s4 + $0xbe8] sm:$0xff]  ;;  %v4265_v12 = vld [vmem:[%s8680_s4 + $0x900] sm:$0xff] }
 0x1ae   : > { %2355 = vmatpush.msrb.mxu2 %v4245_v39  ;;  %2383 = vmatpush.msrb.mxu3 %v4253_v32  ;;  %v4232_v30 = vld [vmem:[%s8680_s4 + $0x800] sm:$0xff]  ;;  %v4290_v39 = vld [vmem:[%s8680_s4 + $0x9c8] sm:$0xff] }
 0x1af   : > { %2501 = vmatpush.msrb.mxu1 %v4303_v45  ;;  %2486 = vmatpush.msrb.mxu0 %v4282_v17  ;;  %v4358_v32 = vld [vmem:[%s8680_s4 + $0xbe0] sm:$0xff]  ;;  %v4264_v45 = vld [vmem:[%s8680_s4 + $0x8f8] sm:$0xff]  ;;  %v2306_v17 = vrot.slane %v6579_v37, 4 }
 0x1b0   : > { %2356 = vmatpush.msrb.mxu2 %v4244_v18  ;;  %2384 = vmatpush.msrb.mxu3 %v4252_v61  ;;  %v4312_v18 = vld [vmem:[%s8680_s4 + $0xa78] sm:$0xff]  ;;  %v4289_v61 = vld [vmem:[%s8680_s4 + $0x9c0] sm:$0xff] }
 0x1b1   : > { %2502 = vmatpush.msrb.mxu1 %v4302_v2  ;;  %2487 = vmatpush.msrb.mxu0 %v4281_v0  ;;  %v4357_v2 = vld [vmem:[%s8680_s4 + $0xbd8] sm:$0xff]  ;;  %v4263_v0 = vld [vmem:[%s8680_s4 + $0x8f0] sm:$0xff] }
 0x1b2   : > { %2357 = vmatpush.msrb.mxu2 %v4243_v27  ;;  %2385 = vmatpush.msrb.mxu3 %v4251_v6 }
 0x1b3   : > { %2503 = vmatpush.msrb.mxu1 %v4301_v29  ;;  %2488 = vmatpush.msrb.mxu0 %v4280_v9  ;;  %v4311_v29 = vld [vmem:[%s8680_s4 + $0xa70] sm:$0xff] }
 0x1b4   : > { %2358 = vmatpush.msrb.mxu2 %v4242_v11  ;;  %2386 = vmatpush.msrb.mxu3 %v4250_v20  ;;  %v2453_v11 = vrot.slane %v6579_v37, 5  ;;  %v4369_v20 = vld [vmem:[%s8680_s4 + $0xc38] sm:$0xff] }
 0x1b5   : > { %2504 = vmatpush.msrb.mxu1 %v4300_v21  ;;  %2489 = vmatpush.msrb.mxu0 %v4279_v50  ;;  %v4356_v21 = vld [vmem:[%s8680_s4 + $0xbd0] sm:$0xff]  ;;  %v4262_v50 = vld [vmem:[%s8680_s4 + $0x8e8] sm:$0xff] }
 0x1b6   : > { %2359 = vmatpush.msrb.mxu2 %v4241_v40  ;;  %2387 = vmatpush.msrb.mxu3 %v4249_v55  ;;  %v4310_v40 = vld [vmem:[%s8680_s4 + $0xa68] sm:$0xff]  ;;  %v4368_v55 = vld [vmem:[%s8680_s4 + $0xc30] sm:$0xff] }
 0x1b7   : > { %2505 = vmatpush.msrb.mxu1 %v4299_v41  ;;  %2490 = vmatpush.msrb.mxu0 %v4278_v52  ;;  %v4355_v41 = vld [vmem:[%s8680_s4 + $0xbc8] sm:$0xff]  ;;  %v4261_v52 = vld [vmem:[%s8680_s4 + $0x8e0] sm:$0xff] }
 0x1b8   : > { %2360 = vmatpush.msrb.mxu2 %v4240_v44  ;;  %2388 = vmatpush.msrb.mxu3 %v4248_v57  ;;  %v4309_v44 = vld [vmem:[%s8680_s4 + $0xa60] sm:$0xff]  ;;  %v4367_v57 = vld [vmem:[%s8680_s4 + $0xc28] sm:$0xff] }
 0x1b9   : > { %2506 = vmatpush.msrb.mxu1 %v4298_v1  ;;  %4256 = vmatmul.msk.f32.vlgmr.msrb.gmra.mxu3 %vm1718_vm3, %v2307_v38  ;;  %v4354_v1 = vld [vmem:[%s8680_s4 + $0xbc0] sm:$0xff]  ;;  %v4260_v38 = vld [vmem:[%s8680_s4 + $0x8d8] sm:$0xff] }
 0x1ba   : > { %2460 = vmatpush.msra.mxu3 %v4272_v4  ;;  %2491 = vmatpush.msrb.mxu0 %v4277_v53  ;;  %v4308_v4 = vld [vmem:[%s8680_s4 + $0xa58] sm:$0xff]  ;;  %v4366_v53 = vld [vmem:[%s8680_s4 + $0xc20] sm:$0xff] }
 0x1bb   : > { %2361 = vmatpush.msrb.mxu2 %v4239_v59  ;;  %2507 = vmatpush.msrb.mxu1 %v4297_v5  ;;  %v4353_v59 = vld [vmem:[%s8680_s4 + $0xbb8] sm:$0xff]  ;;  %v4259_v5 = vld [vmem:[%s8680_s4 + $0x8d0] sm:$0xff] }
 0x1bc   : > { %2461 = vmatpush.msra.mxu3 %v4271_v36  ;;  %2492 = vmatpush.msrb.mxu0 %v4276_v58  ;;  %v4307_v36 = vld [vmem:[%s8680_s4 + $0xa50] sm:$0xff]  ;;  %v4365_v58 = vld [vmem:[%s8680_s4 + $0xc18] sm:$0xff] }
 0x1bd   : > { %2362 = vmatpush.msrb.mxu2 %v4238_v43  ;;  %2508 = vmatpush.msrb.mxu1 %v4296_v28  ;;  %v4352_v43 = vld [vmem:[%s8680_s4 + $0xbb0] sm:$0xff]  ;;  %v4258_v28 = vld [vmem:[%s8680_s4 + $0x8c8] sm:$0xff] }
 0x1be   : > { %2462 = vmatpush.msra.mxu3 %v4270_v48  ;;  %2493 = vmatpush.msrb.mxu0 %v4275_v51  ;;  %v4306_v48 = vld [vmem:[%s8680_s4 + $0xa48] sm:$0xff]  ;;  %v4364_v51 = vld [vmem:[%s8680_s4 + $0xc10] sm:$0xff] }
 0x1bf   : > { %2363 = vmatpush.msrb.mxu2 %v4237_v46  ;;  %2509 = vmatpush.msrb.mxu1 %v4295_v62  ;;  %v4351_v46 = vld [vmem:[%s8680_s4 + $0xba8] sm:$0xff]  ;;  %v4257_v62 = vld [vmem:[%s8680_s4 + $0x8c0] sm:$0xff] }
 0x1c0   : > { %2463 = vmatpush.msra.mxu3 %v4269_v10  ;;  %2494 = vmatpush.msrb.mxu0 %v4274_v13  ;;  %v4305_v10 = vld [vmem:[%s8680_s4 + $0xa40] sm:$0xff]  ;;  %v4363_v13 = vld [vmem:[%s8680_s4 + $0xc08] sm:$0xff] }
 0x1c1   : > { %2364 = vmatpush.msrb.mxu2 %v4236_v24  ;;  %2510 = vmatpush.msrb.mxu1 %v4294_v22  ;;  %v2451_v24 = vrot.slane %v6471_v60, 5  ;;  %v4345_v22 = vld [vmem:[%s8680_s4 + $0xb78] sm:$0xff] }
 0x1c2   : > { %2464 = vmatpush.msra.mxu3 %v4268_v23  ;;  %2495 = vmatpush.msrb.mxu0 %v4273_v8  ;;  %v2454_v23 = vrot.slane %v6581_v3, 5  ;;  %v4329_v8 = vld [vmem:[%s8680_s4 + $0xaf8] sm:$0xff] }
 0x1c3   : > { %2365 = vmatpush.msrb.mxu2 %v4235_v15  ;;  %2496 = vmatmul.f32.vlgmr.msrb.gmra.mxu0 %v2452_v25  ;;  %v4350_v15 = vld [vmem:[%s8680_s4 + $0xba0] sm:$0xff] }
 0x1c4   : > { %2511 = vmatpush.msrb.mxu1 %v4293_v16  ;;  %2647 = vmatpush.msra.mxu0 %v4361_v26  ;;  %v4362_v25 = vld [vmem:[%s8680_s4 + $0xc00] sm:$0xff]  ;;  %v4344_v16 = vld [vmem:[%s8680_s4 + $0xb70] sm:$0xff] }
 0x1c5   : > { %2465 = vmatpush.msra.mxu3 %v4267_v33  ;;  %2366 = vmatpush.msrb.mxu2 %v4234_v34  ;;  %v4328_v26 = vld [vmem:[%s8680_s4 + $0xaf0] sm:$0xff]  ;;  %v4349_v33 = vld [vmem:[%s8680_s4 + $0xb98] sm:$0xff]  ;;  %v4343_v34 = vld [vmem:[%s8680_s4 + $0xb68] sm:$0xff] }
 0x1c6   : > { %2512 = vmatpush.msrb.mxu1 %v4292_v54  ;;  %2648 = vmatpush.msra.mxu0 %v4360_v7  ;;  %v2601_v54 = vrot.slane %v6581_v3, 6  ;;  %v4386_v7 = vld [vmem:[%s8680_s4 + $0xcb8] sm:$0xff] }
 0x1c7   : > { %2466 = vmatpush.msra.mxu3 %v4266_v31  ;;  %2367 = vmatpush.msrb.mxu2 %v4233_v42  ;;  %v4327_v31 = vld [vmem:[%s8680_s4 + $0xae8] sm:$0xff]  ;;  %v4348_v42 = vld [vmem:[%s8680_s4 + $0xb90] sm:$0xff] }
 0x1c8   : > { %2513 = vmatpush.msrb.mxu1 %v4291_v49  ;;  %2649 = vmatpush.msra.mxu0 %v4359_v19  ;;  %v4342_v49 = vld [vmem:[%s8680_s4 + $0xb60] sm:$0xff]  ;;  %v4385_v19 = vld [vmem:[%s8680_s4 + $0xcb0] sm:$0xff] }
 0x1c9   : > { %2467 = vmatpush.msra.mxu3 %v4265_v12  ;;  %2368 = vmatpush.msrb.mxu2 %v4232_v30  ;;  %v4326_v12 = vld [vmem:[%s8680_s4 + $0xae0] sm:$0xff]  ;;  %v4347_v30 = vld [vmem:[%s8680_s4 + $0xb88] sm:$0xff] }
 0x1ca   : > { %2514 = vmatpush.msrb.mxu1 %v4290_v39  ;;  %2650 = vmatpush.msra.mxu0 %v4358_v32  ;;  %v1739_v27 = vpop.f32.mrf.mxu0  ;;  %v1759_v6 = vpop.f32.mrf.mxu1  ;;  %v4341_v39 = vld [vmem:[%s8680_s4 + $0xb58] sm:$0xff]  ;;  %v4384_v32 = vld [vmem:[%s8680_s4 + $0xca8] sm:$0xff] }
 0x1cb   : > { %2369 = vmatmul.f32.vlgmr.msrb.gmra.mxu2 %v2306_v17  ;;  %2468 = vmatpush.msra.mxu3 %v4264_v45  ;;  %v7208_v9 = vadd.f32 %v1759_v6, %v1739_v27  ;;  %v4325_v45 = vld [vmem:[%s8680_s4 + $0xad8] sm:$0xff]  ;;  %v4346_v17 = vld [vmem:[%s8680_s4 + $0xb80] sm:$0xff]  ;;  %v4324_v27 = vld [vmem:[%s8680_s4 + $0xad0] sm:$0xff] }
 0x1cc   : > { %2528 = vmatpush.msra.mxu2 %v4312_v18  ;;  %2515 = vmatpush.msrb.mxu1 %v4289_v61  ;;  %v4340_v18 = vld [vmem:[%s8680_s4 + $0xb50] sm:$0xff]  ;;  %v4383_v61 = vld [vmem:[%s8680_s4 + $0xca0] sm:$0xff] }
 0x1cd   : > { %2651 = vmatpush.msra.mxu0 %v4357_v2  ;;  %2469 = vmatpush.msra.mxu3 %v4263_v0  ;;  %v2600_v2 = vrot.slane %v6579_v37, 6  ;;  %v4426_v0 = vld [vmem:[%s8680_s4 + $0xdf8] sm:$0xff] }
 0x1ce   : > { %2516 = vmatmul.f32.vlgmr.msrb.gmra.mxu1 %v2453_v11  ;;  %2529 = vmatpush.msra.mxu2 %v4311_v29  ;;  %v4382_v29 = vld [vmem:[%s8680_s4 + $0xc98] sm:$0xff]  ;;  %v4339_v11 = vld [vmem:[%s8680_s4 + $0xb48] sm:$0xff] }
 0x1cf   : > { %2675 = vmatpush.msra.mxu1 %v4369_v20  ;;  %2652 = vmatpush.msra.mxu0 %v4356_v21 }
 0x1d0   : > { %2470 = vmatpush.msra.mxu3 %v4262_v50  ;;  %2530 = vmatpush.msra.mxu2 %v4310_v40  ;;  %v4425_v50 = vld [vmem:[%s8680_s4 + $0xdf0] sm:$0xff]  ;;  %v4323_v40 = vld [vmem:[%s8680_s4 + $0xac8] sm:$0xff] }
 0x1d1   : > { %2676 = vmatpush.msra.mxu1 %v4368_v55  ;;  %2653 = vmatpush.msra.mxu0 %v4355_v41  ;;  %v4381_v55 = vld [vmem:[%s8680_s4 + $0xc90] sm:$0xff] }
 0x1d2   : > { %2471 = vmatpush.msra.mxu3 %v4261_v52  ;;  %2531 = vmatpush.msra.mxu2 %v4309_v44  ;;  %v4424_v52 = vld [vmem:[%s8680_s4 + $0xde8] sm:$0xff]  ;;  %v4322_v44 = vld [vmem:[%s8680_s4 + $0xac0] sm:$0xff] }
 0x1d3   : > { %2677 = vmatpush.msra.mxu1 %v4367_v57  ;;  %2654 = vmatpush.msra.mxu0 %v4354_v1  ;;  %v4380_v57 = vld [vmem:[%s8680_s4 + $0xc88] sm:$0xff]  ;;  %v4337_v1 = vld [vmem:[%s8680_s4 + $0xb38] sm:$0xff] }
 0x1d4   : > { %2472 = vmatpush.msra.mxu3 %v4260_v38  ;;  %2532 = vmatpush.msra.mxu2 %v4308_v4  ;;  %v4423_v38 = vld [vmem:[%s8680_s4 + $0xde0] sm:$0xff]  ;;  %v4321_v4 = vld [vmem:[%s8680_s4 + $0xab8] sm:$0xff] }
 0x1d5   : > { %2678 = vmatpush.msra.mxu1 %v4366_v53  ;;  %2655 = vmatpush.msra.mxu0 %v4353_v59  ;;  %v4379_v53 = vld [vmem:[%s8680_s4 + $0xc80] sm:$0xff]  ;;  %v4336_v59 = vld [vmem:[%s8680_s4 + $0xb30] sm:$0xff] }
 0x1d6   : > { %2473 = vmatpush.msra.mxu3 %v4259_v5  ;;  %2533 = vmatpush.msra.mxu2 %v4307_v36  ;;  %v4422_v5 = vld [vmem:[%s8680_s4 + $0xdd8] sm:$0xff]  ;;  %v4320_v36 = vld [vmem:[%s8680_s4 + $0xab0] sm:$0xff] }
 0x1d7   : > { %2679 = vmatpush.msra.mxu1 %v4365_v58  ;;  %2656 = vmatpush.msra.mxu0 %v4352_v43  ;;  %v1909_v58 = vpop.f32.mrf.mxu0  ;;  %v4378_v43 = vld [vmem:[%s8680_s4 + $0xc78] sm:$0xff] }
 0x1d8   : > { %2474 = vmatpush.msra.mxu3 %v4258_v28  ;;  %2534 = vmatpush.msra.mxu2 %v4306_v48  ;;  %v4335_v28 = vld [vmem:[%s8680_s4 + $0xb28] sm:$0xff] }
 0x1d9   : > { %2680 = vmatpush.msra.mxu1 %v4364_v51  ;;  %2657 = vmatpush.msra.mxu0 %v4351_v46  ;;  %v4421_v51 = vld [vmem:[%s8680_s4 + $0xdd0] sm:$0xff]  ;;  %v4319_v46 = vld [vmem:[%s8680_s4 + $0xaa8] sm:$0xff] }
 0x1da   : > { %2475 = vmatpush.msra.mxu3 %v4257_v62  ;;  %2535 = vmatpush.msra.mxu2 %v4305_v10 }
 0x1db   : > { %2681 = vmatpush.msra.mxu1 %v4363_v13  ;;  %2476 = vmatmul.f32.vlgmr.msra.gmra.mxu3 %v2451_v24  ;;  %v4377_v13 = vld [vmem:[%s8680_s4 + $0xc70] sm:$0xff]  ;;  %v4334_v24 = vld [vmem:[%s8680_s4 + $0xb20] sm:$0xff] }
 0x1dc   : > { %4313 = vmatmul.msk.f32.vlgmr.msra.gmra.mxu2 %vm1718_vm3, %v2454_v23  ;;  %2627 = vmatpush.msrb.mxu3 %v4345_v22  ;;  %v1661_v22 = vld [vmem:[%s8681_s5] sm:$0x1]  ;;  %v4420_v23 = vld [vmem:[%s8680_s4 + $0xdc8] sm:$0xff] }
 0x1dd   : > { %2607 = vmatpush.msrb.mxu2 %v4329_v8  ;;  %2658 = vmatpush.msra.mxu0 %v4350_v15  ;;  %v4318_v8 = vld [vmem:[%s8680_s4 + $0xaa0] sm:$0xff] }
 0x1de   : > { %2682 = vmatpush.msra.mxu1 %v4362_v25  ;;  %2628 = vmatpush.msrb.mxu3 %v4344_v16  ;;  %v4376_v25 = vld [vmem:[%s8680_s4 + $0xc68] sm:$0xff]  ;;  %v4333_v16 = vld [vmem:[%s8680_s4 + $0xb18] sm:$0xff] }
 0x1df   : > { %2608 = vmatpush.msrb.mxu2 %v4328_v26  ;;  %2659 = vmatpush.msra.mxu0 %v4349_v33 }
 0x1e0   : > { %4370 = vmatmul.msk.f32.vlgmr.msra.gmra.mxu1 %vm1718_vm3, %v2601_v54  ;;  %2629 = vmatpush.msrb.mxu3 %v4343_v34  ;;  %v4419_v34 = vld [vmem:[%s8680_s4 + $0xdc0] sm:$0xff]  ;;  %v4317_v54 = vld [vmem:[%s8680_s4 + $0xa98] sm:$0xff] }
 0x1e1   : > { %2754 = vmatpush.msrb.mxu1 %v4386_v7  ;;  %2609 = vmatpush.msrb.mxu2 %v4327_v31  ;;  %v4375_v31 = vld [vmem:[%s8680_s4 + $0xc60] sm:$0xff] }
 0x1e2   : > { %2660 = vmatpush.msra.mxu0 %v4348_v42  ;;  %2630 = vmatpush.msrb.mxu3 %v4342_v49  ;;  %v1929_v10 = vpop.f32.mrf.mxu1  ;;  %v2748_v42 = vrot.slane %v6581_v3, 7  ;;  %v4443_v49 = vld [vmem:[%s8680_s4 + $0xe78] sm:$0xff] }
 0x1e3   : > { %2755 = vmatpush.msrb.mxu1 %v4385_v19  ;;  %2610 = vmatpush.msrb.mxu2 %v4326_v12  ;;  %v4316_v19 = vld [vmem:[%s8680_s4 + $0xa90] sm:$0xff]  ;;  %v4374_v3 = vld [vmem:[%s8680_s4 + $0xc58] sm:$0xff] }
 0x1e4   : > { %2661 = vmatpush.msra.mxu0 %v4347_v30  ;;  %2631 = vmatpush.msrb.mxu3 %v4341_v39  ;;  %v4332_v30 = vld [vmem:[%s8680_s4 + $0xb10] sm:$0xff] }
 0x1e5   : > { %2756 = vmatpush.msrb.mxu1 %v4384_v32  ;;  %2611 = vmatpush.msrb.mxu2 %v4325_v45  ;;  %v1779_v6 = vpop.f32.mrf.mxu2  ;;  %v4442_v39 = vld [vmem:[%s8680_s4 + $0xe70] sm:$0xff]  ;;  %v4315_v32 = vld [vmem:[%s8680_s4 + $0xa88] sm:$0xff] }
 0x1e6   : > { %2662 = vmatpush.msra.mxu0 %v4346_v17  ;;  %2632 = vmatpush.msrb.mxu3 %v4340_v18  ;;  %v1780_v20 = vadd.f32 %v1779_v6, %v7208_v9  ;;  %v1799_v21 = vpop.f32.mrf.mxu3  ;;  %v4338_v9 = vld [vmem:[%s8680_s4 + $0xb40] sm:$0xff]  ;;  %v4331_v45 = vld [vmem:[%s8680_s4 + $0xb08] sm:$0xff]  ;;  %v4373_v17 = vld [vmem:[%s8680_s4 + $0xc50] sm:$0xff]  ;;  %v2598_v6 = vrot.slane %v6471_v60, 6 }
 0x1e7   : > { %2757 = vmatpush.msrb.mxu1 %v4383_v61  ;;  %2663 = vmatmul.f32.vlgmr.msra.gmra.mxu0 %v2600_v2  ;;  %v4441_v18 = vld [vmem:[%s8680_s4 + $0xe68] sm:$0xff]  ;;  %v4314_v61 = vld [vmem:[%s8680_s4 + $0xa80] sm:$0xff] }
 0x1e8   : > { %2822 = vmatpush.msrb.mxu0 %v4426_v0  ;;  %2612 = vmatpush.msrb.mxu2 %v4324_v27  ;;  %v1800_v41 = vadd.f32 %v1799_v21, %v1780_v20  ;;  %v4330_v2 = vld [vmem:[%s8680_s4 + $0xb00] sm:$0xff]  ;;  %v4372_v0 = vld [vmem:[%s8680_s4 + $0xc48] sm:$0xff]  ;;  %v4418_v20 = vld [vmem:[%s8680_s4 + $0xdb8] sm:$0xff] }
 0x1e9   : > { %2758 = vmatpush.msrb.mxu1 %v4382_v29  ;;  %2633 = vmatpush.msrb.mxu3 %v4339_v11  ;;  %v4440_v27 = vld [vmem:[%s8680_s4 + $0xe60] sm:$0xff]  ;;  %v4402_v29 = vld [vmem:[%s8680_s4 + $0xd38] sm:$0xff]  ;;  %v2599_v11 = vrot.slane %v6473_v14, 6 }
 0x1ea   : > { %2823 = vmatpush.msrb.mxu0 %v4425_v50  ;;  %2613 = vmatpush.msrb.mxu2 %v4323_v40  ;;  %v1802_v33 = vadd.f32 %v1800_v41, %v1661_v22  ;;  %v4371_v21 = vld [vmem:[%s8680_s4 + $0xc40] sm:$0xff]  ;;  %v4439_v50 = vld [vmem:[%s8680_s4 + $0xe58] sm:$0xff]  ;;  %v2745_v40 = vrot.slane %v6471_v60, 7  ;;  %v4400_v60 = vld [vmem:[%s8680_s4 + $0xd28] sm:$0xff] }
 0x1eb   : > { %2759 = vmatpush.msrb.mxu1 %v4381_v55  ;;  %2634 = vmatpush.msrb.mxu3 %v4338_v9  ;;  %v4401_v55 = vld [vmem:[%s8680_s4 + $0xd30] sm:$0xff]  ;;  %v4459_v41 = vld [vmem:[%s8680_s4 + $0xef8] sm:$0xff]  ;;  %v4433_v22 = vld [vmem:[%s8680_s4 + $0xe28] sm:$0xff] }
 0x1ec   : > { %2824 = vmatpush.msrb.mxu0 %v4424_v52  ;;  %2614 = vmatpush.msrb.mxu2 %v4322_v44  ;;  %v4417_v9 = vld [vmem:[%s8680_s4 + $0xdb0] sm:$0xff]  ;;  %v4416_v44 = vld [vmem:[%s8680_s4 + $0xda8] sm:$0xff] }
 0x1ed   : > { %2760 = vmatpush.msrb.mxu1 %v4380_v57  ;;  %2635 = vmatpush.msrb.mxu3 %v4337_v1  ;;  %v4438_v52 = vld [vmem:[%s8680_s4 + $0xe50] sm:$0xff]  ;;  %v4437_v1 = vld [vmem:[%s8680_s4 + $0xe48] sm:$0xff] }
 0x1ee   : > { %2825 = vmatpush.msrb.mxu0 %v4423_v38  ;;  %2615 = vmatpush.msrb.mxu2 %v4321_v4  ;;  %v1889_v48 = vpop.f32.mrf.mxu3  ;;  %v4458_v57 = vld [vmem:[%s8680_s4 + $0xef0] sm:$0xff]  ;;  %v4399_v38 = vld [vmem:[%s8680_s4 + $0xd20] sm:$0xff] }
 0x1ef   : > { %2761 = vmatpush.msrb.mxu1 %v4379_v53  ;;  %2636 = vmatpush.msrb.mxu3 %v4336_v59  ;;  %v1910_v62 = vadd.f32 %v1909_v58, %v1889_v48  ;;  %v1949_v26 = vpop.f32.mrf.mxu2  ;;  %v4415_v4 = vld [vmem:[%s8680_s4 + $0xda0] sm:$0xff]  ;;  %v4457_v53 = vld [vmem:[%s8680_s4 + $0xee8] sm:$0xff]  ;;  %v4413_v48 = vld [vmem:[%s8680_s4 + $0xd90] sm:$0xff] }
 0x1f0   : > { %2826 = vmatpush.msrb.mxu0 %v4422_v5  ;;  %2616 = vmatpush.msrb.mxu2 %v4320_v36  ;;  %v4436_v59 = vld [vmem:[%s8680_s4 + $0xe40] sm:$0xff]  ;;  %v4398_v5 = vld [vmem:[%s8680_s4 + $0xd18] sm:$0xff] }
 0x1f1   : > { %2762 = vmatpush.msrb.mxu1 %v4378_v43  ;;  %2637 = vmatpush.msrb.mxu3 %v4335_v28  ;;  %v1930_v15 = vadd.f32 %v1929_v10, %v1910_v62  ;;  %v4414_v36 = vld [vmem:[%s8680_s4 + $0xd98] sm:$0xff]  ;;  %v4456_v58 = vld [vmem:[%s8680_s4 + $0xee0] sm:$0xff]  ;;  %v4397_v28 = vld [vmem:[%s8680_s4 + $0xd10] sm:$0xff] }
 0x1f2   : > { %2827 = vmatpush.msrb.mxu0 %v4421_v51  ;;  %2617 = vmatpush.msrb.mxu2 %v4319_v46  ;;  %v4435_v43 = vld [vmem:[%s8680_s4 + $0xe38] sm:$0xff]  ;;  %v4434_v46 = vld [vmem:[%s8680_s4 + $0xe30] sm:$0xff]  ;;  %v4396_v62 = vld [vmem:[%s8680_s4 + $0xd08] sm:$0xff] }
 0x1f3   : > { %2763 = vmatpush.msrb.mxu1 %v4377_v13  ;;  %2638 = vmatpush.msrb.mxu3 %v4334_v24  ;;  %v1950_v7 = vadd.f32 %v1949_v26, %v1930_v15  ;;  %v4455_v51 = vld [vmem:[%s8680_s4 + $0xed8] sm:$0xff]  ;;  %v4412_v10 = vld [vmem:[%s8680_s4 + $0xd88] sm:$0xff]  ;;  %v4454_v24 = vld [vmem:[%s8680_s4 + $0xed0] sm:$0xff] }
 0x1f4   : > { %2828 = vmatpush.msrb.mxu0 %v4420_v23  ;;  %2618 = vmatpush.msrb.mxu2 %v4318_v8  ;;  %v4395_v8 = vld [vmem:[%s8680_s4 + $0xd00] sm:$0xff]  ;;  %v4453_v26 = vld [vmem:[%s8680_s4 + $0xec8] sm:$0xff] }
 0x1f5   : > { %2764 = vmatpush.msrb.mxu1 %v4376_v25  ;;  %2639 = vmatpush.msrb.mxu3 %v4333_v16  ;;  %v7459_v12 = vadd.f32 %v1950_v7, %v1802_v33  ;;  %v4411_v15 = vld [vmem:[%s8680_s4 + $0xd80] sm:$0xff]  ;;  %v2076_v16 = vpop.f32.mrf.mxu0 }
 0x1f6   : > { %2829 = vmatpush.msrb.mxu0 %v4419_v34  ;;  %2619 = vmatpush.msrb.mxu2 %v4317_v54  ;;  %v4432_v33 = vld [vmem:[%s8680_s4 + $0xe20] sm:$0xff]  ;;  %v4394_v34 = vld [vmem:[%s8680_s4 + $0xcf8] sm:$0xff] }
 0x1f7   : > { %2765 = vmatpush.msrb.mxu1 %v4375_v31  ;;  %4427 = vmatmul.msk.f32.vlgmr.msrb.gmra.mxu0 %vm1718_vm3, %v2748_v42  ;;  %v4410_v54 = vld [vmem:[%s8680_s4 + $0xd78] sm:$0xff]  ;;  %v2096_v31 = vpop.f32.mrf.mxu1  ;;  %v4452_v42 = vld [vmem:[%s8680_s4 + $0xec0] sm:$0xff] }
 0x1f8   : > { %2895 = vmatpush.msra.mxu0 %v4443_v49  ;;  %2620 = vmatpush.msrb.mxu2 %v4316_v19  ;;  %v4431_v49 = vld [vmem:[%s8680_s4 + $0xe18] sm:$0xff]  ;;  %v4393_v19 = vld [vmem:[%s8680_s4 + $0xcf0] sm:$0xff] }
 0x1f9   : > { %2640 = vmatpush.msrb.mxu3 %v4332_v30  ;;  %2766 = vmatpush.msrb.mxu1 %v4374_v3  ;;  %v4409_v30 = vld [vmem:[%s8680_s4 + $0xd70] sm:$0xff] }
 0x1fa   : > { %2896 = vmatpush.msra.mxu0 %v4442_v39  ;;  %2621 = vmatpush.msrb.mxu2 %v4315_v32  ;;  %v4451_v39 = vld [vmem:[%s8680_s4 + $0xeb8] sm:$0xff]  ;;  %v4430_v32 = vld [vmem:[%s8680_s4 + $0xe10] sm:$0xff] }
 0x1fb   : > { %2641 = vmatpush.msrb.mxu3 %v4331_v45  ;;  %2767 = vmatpush.msrb.mxu1 %v4373_v17  ;;  %v4392_v45 = vld [vmem:[%s8680_s4 + $0xce8] sm:$0xff] }
 0x1fc   : > { %2897 = vmatpush.msra.mxu0 %v4441_v18  ;;  %2622 = vmatpush.msrb.mxu2 %v4314_v61  ;;  %v4408_v17 = vld [vmem:[%s8680_s4 + $0xd68] sm:$0xff]  ;;  %v4450_v61 = vld [vmem:[%s8680_s4 + $0xeb0] sm:$0xff] }
 0x1fd   : > { %2642 = vmatpush.msrb.mxu3 %v4330_v2  ;;  %2768 = vmatpush.msrb.mxu1 %v4372_v0  ;;  %v4429_v2 = vld [vmem:[%s8680_s4 + $0xe08] sm:$0xff]  ;;  %v4391_v0 = vld [vmem:[%s8680_s4 + $0xce0] sm:$0xff] }
 0x1fe   : > { %2898 = vmatpush.msra.mxu0 %v4440_v27  ;;  %2623 = vmatmul.f32.vlgmr.msrb.gmra.mxu2 %v2598_v6  ;;  %v4449_v27 = vld [vmem:[%s8680_s4 + $0xea8] sm:$0xff]  ;;  %v4428_v6 = vld [vmem:[%s8680_s4 + $0xe00] sm:$0xff] }
 0x1ff   : > { %2643 = vmatmul.f32.vlgmr.msrb.gmra.mxu3 %v2599_v11  ;;  %2774 = vmatpush.msra.mxu2 %v4402_v29  ;;  %v4390_v29 = vld [vmem:[%s8680_s4 + $0xcd8] sm:$0xff] }
 0x200   : > { %2794 = vmatpush.msra.mxu3 %v4418_v20  ;;  %2769 = vmatpush.msrb.mxu1 %v4371_v21  ;;  %v4406_v11 = vld [vmem:[%s8680_s4 + $0xd58] sm:$0xff]  ;;  %v4448_v20 = vld [vmem:[%s8680_s4 + $0xea0] sm:$0xff]  ;;  %v7655_v21 = vmax.f32 %v6505_v35, 0.0 }
 0x201   : > { %2899 = vmatpush.msra.mxu0 %v4439_v50  ;;  %2770 = vmatmul.f32.vlgmr.msrb.gmra.mxu1 %v2745_v40  ;;  %v4516_v50 = vld [vmem:[%s8680_s4 + $0x10b8] sm:$0xff]  ;;  %v4389_v40 = vld [vmem:[%s8680_s4 + $0xcd0] sm:$0xff] }
 0x202   : > { %2775 = vmatpush.msra.mxu2 %v4401_v55  ;;  %2795 = vmatpush.msra.mxu3 %v4417_v9  ;;  %v4405_v55 = vld [vmem:[%s8680_s4 + $0xd50] sm:$0xff]  ;;  %v4447_v35 = vld [vmem:[%s8680_s4 + $0xe98] sm:$0xff] }
 0x203   : > { %2915 = vmatpush.msra.mxu1 %v4459_v41  ;;  %2900 = vmatpush.msra.mxu0 %v4438_v52  ;;  %v4515_v9 = vld [vmem:[%s8680_s4 + $0x10b0] sm:$0xff]  ;;  %v4388_v41 = vld [vmem:[%s8680_s4 + $0xcc8] sm:$0xff] }
 0x204   : > { %2776 = vmatpush.msra.mxu2 %v4400_v60  ;;  %2796 = vmatpush.msra.mxu3 %v4416_v44  ;;  %v4404_v52 = vld [vmem:[%s8680_s4 + $0xd48] sm:$0xff]  ;;  %v4446_v60 = vld [vmem:[%s8680_s4 + $0xe90] sm:$0xff] }
 0x205   : > { %2916 = vmatpush.msra.mxu1 %v4458_v57  ;;  %2901 = vmatpush.msra.mxu0 %v4437_v1  ;;  %v4514_v44 = vld [vmem:[%s8680_s4 + $0x10a8] sm:$0xff]  ;;  %v4387_v57 = vld [vmem:[%s8680_s4 + $0xcc0] sm:$0xff] }
 0x206   : > { %2777 = vmatpush.msra.mxu2 %v4399_v38  ;;  %2797 = vmatpush.msra.mxu3 %v4415_v4  ;;  %v4403_v1 = vld [vmem:[%s8680_s4 + $0xd40] sm:$0xff]  ;;  %v4445_v38 = vld [vmem:[%s8680_s4 + $0xe88] sm:$0xff] }
 0x207   : > { %2917 = vmatpush.msra.mxu1 %v4457_v53  ;;  %2902 = vmatpush.msra.mxu0 %v4436_v59  ;;  %v4513_v4 = vld [vmem:[%s8680_s4 + $0x10a0] sm:$0xff]  ;;  %v2746_v53 = vrot.slane %v6473_v14, 7  ;;  %v4475_v59 = vld [vmem:[%s8680_s4 + $0xf78] sm:$0xff] }
 0x208   : > { %2778 = vmatpush.msra.mxu2 %v4398_v5  ;;  %2798 = vmatpush.msra.mxu3 %v4414_v36  ;;  %v2747_v5 = vrot.slane %v6579_v37, 7  ;;  %v4483_v36 = vld [vmem:[%s8680_s4 + $0xfb8] sm:$0xff]  ;;  %v4474_v37 = vld [vmem:[%s8680_s4 + $0xf70] sm:$0xff] }
 0x209   : > { %2918 = vmatpush.msra.mxu1 %v4456_v58  ;;  %2903 = vmatpush.msra.mxu0 %v4435_v43  ;;  %v2036_v13 = vpop.f32.mrf.mxu2  ;;  %v4444_v58 = vld [vmem:[%s8680_s4 + $0xe80] sm:$0xff]  ;;  %v4512_v14 = vld [vmem:[%s8680_s4 + $0x1098] sm:$0xff]  ;;  %v7712_v43 = vmax.f32 %v6507_v56, 0.0  ;;  %v4511_v56 = vld [vmem:[%s8680_s4 + $0x1090] sm:$0xff] }
 0x20a   : > { %2779 = vmatpush.msra.mxu2 %v4397_v28  ;;  %2799 = vmatpush.msra.mxu3 %v4413_v48  ;;  %v2056_v23 = vpop.f32.mrf.mxu3  ;;  %v4482_v28 = vld [vmem:[%s8680_s4 + $0xfb0] sm:$0xff]  ;;  %v4532_v48 = vld [vmem:[%s8680_s4 + $0x1138] sm:$0xff] }
 0x20b   : > { %2919 = vmatpush.msra.mxu1 %v4455_v51  ;;  %2904 = vmatpush.msra.mxu0 %v4434_v46  ;;  %v2057_v25 = vadd.f32 %v2056_v23, %v2036_v13  ;;  %v4473_v51 = vld [vmem:[%s8680_s4 + $0xf68] sm:$0xff]  ;;  %v4472_v13 = vld [vmem:[%s8680_s4 + $0xf60] sm:$0xff] }
 0x20c   : > { %2780 = vmatpush.msra.mxu2 %v4396_v62  ;;  %2800 = vmatpush.msra.mxu3 %v4412_v10  ;;  %v4481_v46 = vld [vmem:[%s8680_s4 + $0xfa8] sm:$0xff]  ;;  %v4531_v62 = vld [vmem:[%s8680_s4 + $0x1130] sm:$0xff]  ;;  %v4509_v23 = vld [vmem:[%s8680_s4 + $0x1080] sm:$0xff] }
 0x20d   : > { %2920 = vmatpush.msra.mxu1 %v4454_v24  ;;  %2905 = vmatpush.msra.mxu0 %v4433_v22  ;;  %v2077_v7 = vadd.f32 %v2076_v16, %v2057_v25  ;;  %v4510_v10 = vld [vmem:[%s8680_s4 + $0x1088] sm:$0xff]  ;;  %v4480_v24 = vld [vmem:[%s8680_s4 + $0xfa0] sm:$0xff]  ;;  %v4508_v16 = vld [vmem:[%s8680_s4 + $0x1078] sm:$0xff] }
 0x20e   : > { %2781 = vmatpush.msra.mxu2 %v4395_v8  ;;  %2801 = vmatpush.msra.mxu3 %v4411_v15  ;;  %v4530_v22 = vld [vmem:[%s8680_s4 + $0x1128] sm:$0xff]  ;;  %v4471_v8 = vld [vmem:[%s8680_s4 + $0xf58] sm:$0xff]  ;;  %v4529_v25 = vld [vmem:[%s8680_s4 + $0x1120] sm:$0xff] }
 0x20f   : > { %2921 = vmatpush.msra.mxu1 %v4453_v26  ;;  %2906 = vmatpush.msra.mxu0 %v4432_v33  ;;  %v2097_v3 = vadd.f32 %v2096_v31, %v2077_v7  ;;  %v4479_v15 = vld [vmem:[%s8680_s4 + $0xf98] sm:$0xff]  ;;  %v4470_v26 = vld [vmem:[%s8680_s4 + $0xf50] sm:$0xff]  ;;  %v2183_v7 = vpop.f32.mrf.mxu1  ;;  %v4469_v31 = vld [vmem:[%s8680_s4 + $0xf48] sm:$0xff] }
 0x210   : > { %2782 = vmatpush.msra.mxu2 %v4394_v34  ;;  %2802 = vmatpush.msra.mxu3 %v4410_v54  ;;  %v4478_v33 = vld [vmem:[%s8680_s4 + $0xf90] sm:$0xff]  ;;  %v4528_v34 = vld [vmem:[%s8680_s4 + $0x1118] sm:$0xff] }
 0x211   : > { %2922 = vmatpush.msra.mxu1 %v4452_v42  ;;  %2907 = vmatpush.msra.mxu0 %v4431_v49  ;;  %v7625_v18 = vadd.f32 %v2097_v3, %v7459_v12  ;;  %v4407_v12 = vld [vmem:[%s8680_s4 + $0xd60] sm:$0xff]  ;;  %v4507_v54 = vld [vmem:[%s8680_s4 + $0x1070] sm:$0xff]  ;;  %v4477_v42 = vld [vmem:[%s8680_s4 + $0xf88] sm:$0xff] }
 0x212   : > { %2783 = vmatpush.msra.mxu2 %v4393_v19  ;;  %2803 = vmatpush.msra.mxu3 %v4409_v30  ;;  %v4527_v19 = vld [vmem:[%s8680_s4 + $0x1110] sm:$0xff]  ;;  %v4506_v30 = vld [vmem:[%s8680_s4 + $0x1068] sm:$0xff] }
 0x213   : > { %2923 = vmatpush.msra.mxu1 %v4451_v39  ;;  %2908 = vmatpush.msra.mxu0 %v4430_v32  ;;  %v4468_v39 = vld [vmem:[%s8680_s4 + $0xf40] sm:$0xff] }
 0x214   : > { %2784 = vmatpush.msra.mxu2 %v4392_v45  ;;  %2804 = vmatpush.msra.mxu3 %v4408_v17  ;;  %v4476_v32 = vld [vmem:[%s8680_s4 + $0xf80] sm:$0xff]  ;;  %v4526_v17 = vld [vmem:[%s8680_s4 + $0x1108] sm:$0xff] }
 0x215   : > { %2924 = vmatpush.msra.mxu1 %v4450_v61  ;;  %2909 = vmatpush.msra.mxu0 %v4429_v2  ;;  %v7797_v2 = vmax.f32 %v6623_v63, 0.0  ;;  %v4525_v63 = vld [vmem:[%s8680_s4 + $0x1100] sm:$0xff] }
 0x216   : > { %2785 = vmatpush.msra.mxu2 %v4391_v0  ;;  %2805 = vmatpush.msra.mxu3 %v4407_v12  ;;  %v2243_v0 = vpop.f32.mrf.mxu0  ;;  %v4500_v12 = vld [vmem:[%s8680_s4 + $0x1038] sm:$0xff] }
 0x217   : > { %2925 = vmatpush.msra.mxu1 %v4449_v27  ;;  %2910 = vmatpush.msra.mxu0 %v4428_v6  ;;  %v4505_v27 = vld [vmem:[%s8680_s4 + $0x1060] sm:$0xff]  ;;  %v4467_v6 = vld [vmem:[%s8680_s4 + $0xf38] sm:$0xff] }
 0x218   : > { %2786 = vmatpush.msra.mxu2 %v4390_v29  ;;  %2806 = vmatpush.msra.mxu3 %v4406_v11  ;;  %v4499_v11 = vld [vmem:[%s8680_s4 + $0x1030] sm:$0xff] }
 0x219   : > { %2911 = vmatmul.f32.vlgmr.msra.gmra.mxu0 %v7655_v21  ;;  %2926 = vmatpush.msra.mxu1 %v4448_v20  ;;  %v4504_v20 = vld [vmem:[%s8680_s4 + $0x1058] sm:$0xff] }
 0x21a   : > { %3065 = vmatpush.msrb.mxu0 %v4516_v50  ;;  %2787 = vmatpush.msra.mxu2 %v4389_v40  ;;  %v4466_v50 = vld [vmem:[%s8680_s4 + $0xf30] sm:$0xff]  ;;  %v4524_v40 = vld [vmem:[%s8680_s4 + $0x10f8] sm:$0xff] }
 0x21b   : > { %2807 = vmatpush.msra.mxu3 %v4405_v55  ;;  %2927 = vmatpush.msra.mxu1 %v4447_v35  ;;  %v4498_v35 = vld [vmem:[%s8680_s4 + $0x1028] sm:$0xff] }
 0x21c   : > { %3066 = vmatpush.msrb.mxu0 %v4515_v9  ;;  %2788 = vmatpush.msra.mxu2 %v4388_v41  ;;  %v4503_v9 = vld [vmem:[%s8680_s4 + $0x1050] sm:$0xff]  ;;  %v4465_v41 = vld [vmem:[%s8680_s4 + $0xf28] sm:$0xff] }
 0x21d   : > { %2808 = vmatpush.msra.mxu3 %v4404_v52  ;;  %2928 = vmatpush.msra.mxu1 %v4446_v60  ;;  %v4497_v52 = vld [vmem:[%s8680_s4 + $0x1020] sm:$0xff]  ;;  %v4502_v60 = vld [vmem:[%s8680_s4 + $0x1048] sm:$0xff] }
 0x21e   : > { %3067 = vmatpush.msrb.mxu0 %v4514_v44  ;;  %2789 = vmatpush.msra.mxu2 %v4387_v57  ;;  %v4464_v44 = vld [vmem:[%s8680_s4 + $0xf20] sm:$0xff]  ;;  %v4522_v57 = vld [vmem:[%s8680_s4 + $0x10e8] sm:$0xff] }
 0x21f   : > { %2809 = vmatpush.msra.mxu3 %v4403_v1  ;;  %2929 = vmatpush.msra.mxu1 %v4445_v38  ;;  %v4496_v1 = vld [vmem:[%s8680_s4 + $0x1018] sm:$0xff]  ;;  %v4501_v38 = vld [vmem:[%s8680_s4 + $0x1040] sm:$0xff] }
 0x220   : > { %3068 = vmatpush.msrb.mxu0 %v4513_v4  ;;  %2790 = vmatmul.f32.vlgmr.msra.gmra.mxu2 %v2746_v53  ;;  %v4463_v4 = vld [vmem:[%s8680_s4 + $0xf18] sm:$0xff]  ;;  %v3037_v53 = vrot.slane %v7712_v43, 1 }
 0x221   : > { %2810 = vmatmul.f32.vlgmr.msra.gmra.mxu3 %v2747_v5  ;;  %2935 = vmatpush.msrb.mxu2 %v4475_v59  ;;  %v4521_v59 = vld [vmem:[%s8680_s4 + $0x10e0] sm:$0xff]  ;;  %v4589_v5 = vld [vmem:[%s8680_s4 + $0x12f8] sm:$0xff] }
 0x222   : > { %2963 = vmatpush.msrb.mxu3 %v4483_v36  ;;  %2930 = vmatpush.msra.mxu1 %v4444_v58  ;;  %v4495_v36 = vld [vmem:[%s8680_s4 + $0x1010] sm:$0xff] }
 0x223   : > { %3069 = vmatpush.msrb.mxu0 %v4512_v14  ;;  %2931 = vmatmul.f32.vlgmr.msra.gmra.mxu1 %v7712_v43  ;;  %v4462_v58 = vld [vmem:[%s8680_s4 + $0xf10] sm:$0xff]  ;;  %v4520_v14 = vld [vmem:[%s8680_s4 + $0x10d8] sm:$0xff] }
 0x224   : > { %2936 = vmatpush.msrb.mxu2 %v4474_v37  ;;  %2964 = vmatpush.msrb.mxu3 %v4482_v28  ;;  %v4588_v37 = vld [vmem:[%s8680_s4 + $0x12f0] sm:$0xff]  ;;  %v4494_v28 = vld [vmem:[%s8680_s4 + $0x1008] sm:$0xff] }
 0x225   : > { %3085 = vmatpush.msrb.mxu1 %v4532_v48  ;;  %3070 = vmatpush.msrb.mxu0 %v4511_v56  ;;  %v4461_v48 = vld [vmem:[%s8680_s4 + $0xf08] sm:$0xff]  ;;  %v4519_v56 = vld [vmem:[%s8680_s4 + $0x10d0] sm:$0xff] }
 0x226   : > { %2937 = vmatpush.msrb.mxu2 %v4473_v51  ;;  %2965 = vmatpush.msrb.mxu3 %v4481_v46  ;;  %v4587_v51 = vld [vmem:[%s8680_s4 + $0x12e8] sm:$0xff]  ;;  %v4493_v46 = vld [vmem:[%s8680_s4 + $0x1000] sm:$0xff] }
 0x227   : > { %3086 = vmatpush.msrb.mxu1 %v4531_v62  ;;  %3071 = vmatpush.msrb.mxu0 %v4510_v10  ;;  %v4460_v62 = vld [vmem:[%s8680_s4 + $0xf00] sm:$0xff]  ;;  %v4518_v10 = vld [vmem:[%s8680_s4 + $0x10c8] sm:$0xff] }
 0x228   : > { %2938 = vmatpush.msrb.mxu2 %v4472_v13  ;;  %2966 = vmatpush.msrb.mxu3 %v4480_v24  ;;  %v4586_v13 = vld [vmem:[%s8680_s4 + $0x12e0] sm:$0xff]  ;;  %v7905_v24 = vmax.f32 %v6621_v47, 0.0  ;;  %v4585_v47 = vld [vmem:[%s8680_s4 + $0x12d8] sm:$0xff] }
 0x229   : > { %3087 = vmatpush.msrb.mxu1 %v4530_v22  ;;  %3072 = vmatpush.msrb.mxu0 %v4509_v23  ;;  %v4492_v22 = vld [vmem:[%s8680_s4 + $0xff8] sm:$0xff] }
 0x22a   : > { %2939 = vmatpush.msrb.mxu2 %v4471_v8  ;;  %2967 = vmatpush.msrb.mxu3 %v4479_v15  ;;  %v4540_v23 = vld [vmem:[%s8680_s4 + $0x1178] sm:$0xff]  ;;  %v4517_v8 = vld [vmem:[%s8680_s4 + $0x10c0] sm:$0xff]  ;;  %v4491_v15 = vld [vmem:[%s8680_s4 + $0xff0] sm:$0xff] }
 0x22b   : > { %3088 = vmatpush.msrb.mxu1 %v4529_v25  ;;  %3073 = vmatpush.msrb.mxu0 %v4508_v16  ;;  %v2203_v49 = vpop.f32.mrf.mxu2  ;;  %v4539_v25 = vld [vmem:[%s8680_s4 + $0x1170] sm:$0xff]  ;;  %v3038_v16 = vrot.slane %v7905_v24, 1 }
 0x22c   : > { %2940 = vmatpush.msrb.mxu2 %v4470_v26  ;;  %2968 = vmatpush.msrb.mxu3 %v4478_v33  ;;  %v2204_v3 = vadd.f32 %v2203_v49, %v2183_v7  ;;  %v2223_v45 = vpop.f32.mrf.mxu3  ;;  %v4597_v26 = vld [vmem:[%s8680_s4 + $0x1338] sm:$0xff]  ;;  %v4584_v33 = vld [vmem:[%s8680_s4 + $0x12d0] sm:$0xff]  ;;  %v4537_v49 = vld [vmem:[%s8680_s4 + $0x1160] sm:$0xff] }
 0x22d   : > { %3089 = vmatpush.msrb.mxu1 %v4528_v34  ;;  %3074 = vmatpush.msrb.mxu0 %v4507_v54  ;;  %v4490_v34 = vld [vmem:[%s8680_s4 + $0xfe8] sm:$0xff]  ;;  %v4596_v7 = vld [vmem:[%s8680_s4 + $0x1330] sm:$0xff] }
 0x22e   : > { %2941 = vmatpush.msrb.mxu2 %v4469_v31  ;;  %2969 = vmatpush.msrb.mxu3 %v4477_v42  ;;  %v2224_v61 = vadd.f32 %v2223_v45, %v2204_v3  ;;  %v4538_v54 = vld [vmem:[%s8680_s4 + $0x1168] sm:$0xff]  ;;  %v4489_v42 = vld [vmem:[%s8680_s4 + $0xfe0] sm:$0xff]  ;;  %v4488_v3 = vld [vmem:[%s8680_s4 + $0xfd8] sm:$0xff] }
 0x22f   : > { %3090 = vmatpush.msrb.mxu1 %v4527_v19  ;;  %3075 = vmatpush.msrb.mxu0 %v4506_v30  ;;  %v4583_v31 = vld [vmem:[%s8680_s4 + $0x12c8] sm:$0xff]  ;;  %v4582_v30 = vld [vmem:[%s8680_s4 + $0x12c0] sm:$0xff]  ;;  %v4581_v45 = vld [vmem:[%s8680_s4 + $0x12b8] sm:$0xff] }
 0x230   : > { %2942 = vmatpush.msrb.mxu2 %v4468_v39  ;;  %2970 = vmatpush.msrb.mxu3 %v4476_v32  ;;  %v2244_v29 = vadd.f32 %v2243_v0, %v2224_v61  ;;  %v4595_v19 = vld [vmem:[%s8680_s4 + $0x1328] sm:$0xff]  ;;  %v4536_v39 = vld [vmem:[%s8680_s4 + $0x1158] sm:$0xff]  ;;  %v4594_v32 = vld [vmem:[%s8680_s4 + $0x1320] sm:$0xff] }
 0x231   : > { %3091 = vmatpush.msrb.mxu1 %v4526_v17  ;;  %4484 = vmatmul.msk.f32.vlgmr.msrb.gmra.mxu3 %vm1718_vm3, %v7797_v2  ;;  %v4487_v17 = vld [vmem:[%s8680_s4 + $0xfd0] sm:$0xff]  ;;  %v4593_v0 = vld [vmem:[%s8680_s4 + $0x1318] sm:$0xff] }
 0x232   : > { %3045 = vmatpush.msra.mxu3 %v4500_v12  ;;  %3076 = vmatpush.msrb.mxu0 %v4505_v27  ;;  %v7826_v55 = vadd.f32 %v2244_v29, %v7625_v18  ;;  %v4523_v18 = vld [vmem:[%s8680_s4 + $0x10f0] sm:$0xff]  ;;  %v4486_v27 = vld [vmem:[%s8680_s4 + $0xfc8] sm:$0xff] }
 0x233   : > { %2943 = vmatpush.msrb.mxu2 %v4467_v6  ;;  %3092 = vmatpush.msrb.mxu1 %v4525_v63  ;;  %v4535_v61 = vld [vmem:[%s8680_s4 + $0x1150] sm:$0xff]  ;;  %v4534_v6 = vld [vmem:[%s8680_s4 + $0x1148] sm:$0xff] }
 0x234   : > { %3046 = vmatpush.msra.mxu3 %v4499_v11  ;;  %3077 = vmatpush.msrb.mxu0 %v4504_v20  ;;  %v4580_v12 = vld [vmem:[%s8680_s4 + $0x12b0] sm:$0xff]  ;;  %v4579_v29 = vld [vmem:[%s8680_s4 + $0x12a8] sm:$0xff]  ;;  %v4485_v11 = vld [vmem:[%s8680_s4 + $0xfc0] sm:$0xff] }
 0x235   : > { %2944 = vmatpush.msrb.mxu2 %v4466_v50  ;;  %3093 = vmatpush.msrb.mxu1 %v4524_v40  ;;  %v4592_v63 = vld [vmem:[%s8680_s4 + $0x1310] sm:$0xff]  ;;  %v4533_v20 = vld [vmem:[%s8680_s4 + $0x1140] sm:$0xff]  ;;  %v4591_v50 = vld [vmem:[%s8680_s4 + $0x1308] sm:$0xff]  ;;  %v3036_v40 = vrot.slane %v7655_v21, 1 }
 0x236   : > { %3047 = vmatpush.msra.mxu3 %v4498_v35  ;;  %3078 = vmatpush.msrb.mxu0 %v4503_v9  ;;  %v4573_v35 = vld [vmem:[%s8680_s4 + $0x1278] sm:$0xff]  ;;  %v3039_v9 = vrot.slane %v7797_v2, 1 }
 0x237   : > { %2945 = vmatpush.msrb.mxu2 %v4465_v41  ;;  %3094 = vmatpush.msrb.mxu1 %v4523_v18  ;;  %v4557_v41 = vld [vmem:[%s8680_s4 + $0x11f8] sm:$0xff]  ;;  %v4578_v18 = vld [vmem:[%s8680_s4 + $0x12a0] sm:$0xff] }
 0x238   : > { %3048 = vmatpush.msra.mxu3 %v4497_v52  ;;  %3079 = vmatpush.msrb.mxu0 %v4502_v60  ;;  %v4590_v52 = vld [vmem:[%s8680_s4 + $0x1300] sm:$0xff]  ;;  %v4572_v60 = vld [vmem:[%s8680_s4 + $0x1270] sm:$0xff] }
 0x239   : > { %2946 = vmatpush.msrb.mxu2 %v4464_v44  ;;  %3095 = vmatpush.msrb.mxu1 %v4522_v57  ;;  %v4556_v44 = vld [vmem:[%s8680_s4 + $0x11f0] sm:$0xff]  ;;  %v4577_v57 = vld [vmem:[%s8680_s4 + $0x1298] sm:$0xff] }
 0x23a   : > { %3049 = vmatpush.msra.mxu3 %v4496_v1  ;;  %3080 = vmatpush.msrb.mxu0 %v4501_v38  ;;  %v4571_v1 = vld [vmem:[%s8680_s4 + $0x1268] sm:$0xff]  ;;  %v3186_v38 = vrot.slane %v7797_v2, 2 }
 0x23b   : > { %2947 = vmatpush.msrb.mxu2 %v4463_v4  ;;  %3081 = vmatmul.f32.vlgmr.msrb.gmra.mxu0 %v3037_v53  ;;  %v4614_v4 = vld [vmem:[%s8680_s4 + $0x13b8] sm:$0xff]  ;;  %v4555_v53 = vld [vmem:[%s8680_s4 + $0x11e8] sm:$0xff] }
 0x23c   : > { %3096 = vmatpush.msrb.mxu1 %v4521_v59  ;;  %3232 = vmatpush.msra.mxu0 %v4589_v5  ;;  %v4576_v59 = vld [vmem:[%s8680_s4 + $0x1290] sm:$0xff]  ;;  %v4570_v5 = vld [vmem:[%s8680_s4 + $0x1260] sm:$0xff] }
 0x23d   : > { %3050 = vmatpush.msra.mxu3 %v4495_v36  ;;  %2948 = vmatpush.msrb.mxu2 %v4462_v58  ;;  %v4613_v36 = vld [vmem:[%s8680_s4 + $0x13b0] sm:$0xff]  ;;  %v4554_v58 = vld [vmem:[%s8680_s4 + $0x11e0] sm:$0xff] }
 0x23e   : > { %3097 = vmatpush.msrb.mxu1 %v4520_v14  ;;  %3233 = vmatpush.msra.mxu0 %v4588_v37  ;;  %v4575_v14 = vld [vmem:[%s8680_s4 + $0x1288] sm:$0xff]  ;;  %v4569_v37 = vld [vmem:[%s8680_s4 + $0x1258] sm:$0xff] }
 0x23f   : > { %3051 = vmatpush.msra.mxu3 %v4494_v28  ;;  %2949 = vmatpush.msrb.mxu2 %v4461_v48  ;;  %v4612_v28 = vld [vmem:[%s8680_s4 + $0x13a8] sm:$0xff]  ;;  %v4553_v48 = vld [vmem:[%s8680_s4 + $0x11d8] sm:$0xff] }
 0x240   : > { %3098 = vmatpush.msrb.mxu1 %v4519_v56  ;;  %3234 = vmatpush.msra.mxu0 %v4587_v51  ;;  %v4574_v56 = vld [vmem:[%s8680_s4 + $0x1280] sm:$0xff]  ;;  %v4568_v51 = vld [vmem:[%s8680_s4 + $0x1250] sm:$0xff] }
 0x241   : > { %3052 = vmatpush.msra.mxu3 %v4493_v46  ;;  %2950 = vmatpush.msrb.mxu2 %v4460_v62  ;;  %v4611_v46 = vld [vmem:[%s8680_s4 + $0x13a0] sm:$0xff]  ;;  %v3185_v62 = vrot.slane %v7905_v24, 2 }
 0x242   : > { %3099 = vmatpush.msrb.mxu1 %v4518_v10  ;;  %3235 = vmatpush.msra.mxu0 %v4586_v13  ;;  %v4654_v10 = vld [vmem:[%s8680_s4 + $0x14f8] sm:$0xff]  ;;  %v4552_v13 = vld [vmem:[%s8680_s4 + $0x11d0] sm:$0xff] }
 0x243   : > { %2951 = vmatmul.f32.vlgmr.msrb.gmra.mxu2 %v7905_v24  ;;  %3053 = vmatpush.msra.mxu3 %v4492_v22  ;;  %v4610_v22 = vld [vmem:[%s8680_s4 + $0x1398] sm:$0xff] }
 0x244   : > { %3113 = vmatpush.msra.mxu2 %v4540_v23  ;;  %3100 = vmatpush.msrb.mxu1 %v4517_v8  ;;  %v4567_v23 = vld [vmem:[%s8680_s4 + $0x1248] sm:$0xff]  ;;  %v4653_v8 = vld [vmem:[%s8680_s4 + $0x14f0] sm:$0xff] }
 0x245   : > { %3236 = vmatpush.msra.mxu0 %v4585_v47  ;;  %3054 = vmatpush.msra.mxu3 %v4491_v15  ;;  %v4551_v47 = vld [vmem:[%s8680_s4 + $0x11c8] sm:$0xff]  ;;  %v4609_v15 = vld [vmem:[%s8680_s4 + $0x1390] sm:$0xff] }
 0x246   : > { %3101 = vmatmul.f32.vlgmr.msrb.gmra.mxu1 %v3038_v16  ;;  %3114 = vmatpush.msra.mxu2 %v4539_v25  ;;  %v4566_v25 = vld [vmem:[%s8680_s4 + $0x1240] sm:$0xff]  ;;  %v4652_v16 = vld [vmem:[%s8680_s4 + $0x14e8] sm:$0xff] }
 0x247   : > { %3260 = vmatpush.msra.mxu1 %v4597_v26  ;;  %3237 = vmatpush.msra.mxu0 %v4584_v33  ;;  %v4550_v26 = vld [vmem:[%s8680_s4 + $0x11c0] sm:$0xff]  ;;  %v4608_v33 = vld [vmem:[%s8680_s4 + $0x1388] sm:$0xff] }
 0x248   : > { %3055 = vmatpush.msra.mxu3 %v4490_v34  ;;  %3115 = vmatpush.msra.mxu2 %v4538_v54  ;;  %v4565_v34 = vld [vmem:[%s8680_s4 + $0x1238] sm:$0xff]  ;;  %v4651_v54 = vld [vmem:[%s8680_s4 + $0x14e0] sm:$0xff] }
 0x249   : > { %3261 = vmatpush.msra.mxu1 %v4596_v7  ;;  %3238 = vmatpush.msra.mxu0 %v4583_v31  ;;  %v4549_v7 = vld [vmem:[%s8680_s4 + $0x11b8] sm:$0xff]  ;;  %v4607_v31 = vld [vmem:[%s8680_s4 + $0x1380] sm:$0xff] }
 0x24a   : > { %3056 = vmatpush.msra.mxu3 %v4489_v42  ;;  %3116 = vmatpush.msra.mxu2 %v4537_v49  ;;  %v4564_v42 = vld [vmem:[%s8680_s4 + $0x1230] sm:$0xff]  ;;  %v4650_v49 = vld [vmem:[%s8680_s4 + $0x14d8] sm:$0xff] }
 0x24b   : > { %3262 = vmatpush.msra.mxu1 %v4595_v19  ;;  %3239 = vmatpush.msra.mxu0 %v4582_v30  ;;  %v4548_v19 = vld [vmem:[%s8680_s4 + $0x11b0] sm:$0xff]  ;;  %v4606_v30 = vld [vmem:[%s8680_s4 + $0x1378] sm:$0xff] }
 0x24c   : > { %3057 = vmatpush.msra.mxu3 %v4488_v3  ;;  %3117 = vmatpush.msra.mxu2 %v4536_v39  ;;  %v4563_v3 = vld [vmem:[%s8680_s4 + $0x1228] sm:$0xff]  ;;  %v4649_v39 = vld [vmem:[%s8680_s4 + $0x14d0] sm:$0xff] }
 0x24d   : > { %3263 = vmatpush.msra.mxu1 %v4594_v32  ;;  %3240 = vmatpush.msra.mxu0 %v4581_v45  ;;  %v4547_v32 = vld [vmem:[%s8680_s4 + $0x11a8] sm:$0xff]  ;;  %v4605_v45 = vld [vmem:[%s8680_s4 + $0x1370] sm:$0xff] }
 0x24e   : > { %3058 = vmatpush.msra.mxu3 %v4487_v17  ;;  %3118 = vmatpush.msra.mxu2 %v4535_v61  ;;  %v4562_v17 = vld [vmem:[%s8680_s4 + $0x1220] sm:$0xff]  ;;  %v4648_v61 = vld [vmem:[%s8680_s4 + $0x14c8] sm:$0xff] }
 0x24f   : > { %3264 = vmatpush.msra.mxu1 %v4593_v0  ;;  %3241 = vmatpush.msra.mxu0 %v4580_v12  ;;  %v4546_v0 = vld [vmem:[%s8680_s4 + $0x11a0] sm:$0xff]  ;;  %v4604_v12 = vld [vmem:[%s8680_s4 + $0x1368] sm:$0xff] }
 0x250   : > { %3059 = vmatpush.msra.mxu3 %v4486_v27  ;;  %3119 = vmatpush.msra.mxu2 %v4534_v6  ;;  %v4561_v27 = vld [vmem:[%s8680_s4 + $0x1218] sm:$0xff]  ;;  %v4647_v6 = vld [vmem:[%s8680_s4 + $0x14c0] sm:$0xff] }
 0x251   : > { %3265 = vmatpush.msra.mxu1 %v4592_v63  ;;  %3242 = vmatpush.msra.mxu0 %v4579_v29  ;;  %v4545_v63 = vld [vmem:[%s8680_s4 + $0x1198] sm:$0xff]  ;;  %v4603_v29 = vld [vmem:[%s8680_s4 + $0x1360] sm:$0xff] }
 0x252   : > { %3060 = vmatpush.msra.mxu3 %v4485_v11  ;;  %3120 = vmatpush.msra.mxu2 %v4533_v20  ;;  %v3333_v11 = vrot.slane %v7797_v2, 3  ;;  %v4671_v20 = vld [vmem:[%s8680_s4 + $0x1578] sm:$0xff] }
 0x253   : > { %3266 = vmatpush.msra.mxu1 %v4591_v50  ;;  %3061 = vmatmul.f32.vlgmr.msra.gmra.mxu3 %v3036_v40  ;;  %v4544_v50 = vld [vmem:[%s8680_s4 + $0x1190] sm:$0xff] }
 0x254   : > { %4541 = vmatmul.msk.f32.vlgmr.msra.gmra.mxu2 %vm1718_vm3, %v3039_v9  ;;  %3212 = vmatpush.msrb.mxu3 %v4573_v35  ;;  %v4560_v40 = vld [vmem:[%s8680_s4 + $0x1210] sm:$0xff]  ;;  %v4602_v35 = vld [vmem:[%s8680_s4 + $0x1358] sm:$0xff] }
 0x255   : > { %3192 = vmatpush.msrb.mxu2 %v4557_v41  ;;  %3243 = vmatpush.msra.mxu0 %v4578_v18  ;;  %v4670_v9 = vld [vmem:[%s8680_s4 + $0x1570] sm:$0xff]  ;;  %v4543_v41 = vld [vmem:[%s8680_s4 + $0x1188] sm:$0xff] }
 0x256   : > { %3267 = vmatpush.msra.mxu1 %v4590_v52  ;;  %3213 = vmatpush.msrb.mxu3 %v4572_v60  ;;  %v4559_v18 = vld [vmem:[%s8680_s4 + $0x1208] sm:$0xff]  ;;  %v4601_v52 = vld [vmem:[%s8680_s4 + $0x1350] sm:$0xff] }
 0x257   : > { %3193 = vmatpush.msrb.mxu2 %v4556_v44  ;;  %3244 = vmatpush.msra.mxu0 %v4577_v57  ;;  %v4669_v60 = vld [vmem:[%s8680_s4 + $0x1568] sm:$0xff]  ;;  %v4542_v44 = vld [vmem:[%s8680_s4 + $0x1180] sm:$0xff] }
 0x258   : > { %4598 = vmatmul.msk.f32.vlgmr.msra.gmra.mxu1 %vm1718_vm3, %v3186_v38  ;;  %3214 = vmatpush.msrb.mxu3 %v4571_v1  ;;  %v4558_v57 = vld [vmem:[%s8680_s4 + $0x1200] sm:$0xff]  ;;  %v4600_v1 = vld [vmem:[%s8680_s4 + $0x1348] sm:$0xff] }
 0x259   : > { %3339 = vmatpush.msrb.mxu1 %v4614_v4  ;;  %3194 = vmatpush.msrb.mxu2 %v4555_v53  ;;  %v4668_v38 = vld [vmem:[%s8680_s4 + $0x1560] sm:$0xff]  ;;  %v3183_v4 = vrot.slane %v7655_v21, 2  ;;  %v4630_v53 = vld [vmem:[%s8680_s4 + $0x1438] sm:$0xff] }
 0x25a   : > { %3245 = vmatpush.msra.mxu0 %v4576_v59  ;;  %3215 = vmatpush.msrb.mxu3 %v4570_v5  ;;  %v3184_v59 = vrot.slane %v7712_v43, 2  ;;  %v4646_v5 = vld [vmem:[%s8680_s4 + $0x14b8] sm:$0xff] }
 0x25b   : > { %3340 = vmatpush.msrb.mxu1 %v4613_v36  ;;  %3195 = vmatpush.msrb.mxu2 %v4554_v58  ;;  %v4599_v36 = vld [vmem:[%s8680_s4 + $0x1340] sm:$0xff]  ;;  %v4667_v58 = vld [vmem:[%s8680_s4 + $0x1558] sm:$0xff] }
 0x25c   : > { %3246 = vmatpush.msra.mxu0 %v4575_v14  ;;  %3216 = vmatpush.msrb.mxu3 %v4569_v37  ;;  %v3330_v14 = vrot.slane %v7655_v21, 3  ;;  %v4629_v37 = vld [vmem:[%s8680_s4 + $0x1430] sm:$0xff] }
 0x25d   : > { %3341 = vmatpush.msrb.mxu1 %v4612_v28  ;;  %3196 = vmatpush.msrb.mxu2 %v4553_v48  ;;  %v4645_v28 = vld [vmem:[%s8680_s4 + $0x14b0] sm:$0xff]  ;;  %v4687_v48 = vld [vmem:[%s8680_s4 + $0x15f8] sm:$0xff] }
 0x25e   : > { %3247 = vmatpush.msra.mxu0 %v4574_v56  ;;  %3217 = vmatpush.msrb.mxu3 %v4568_v51  ;;  %v4666_v56 = vld [vmem:[%s8680_s4 + $0x1550] sm:$0xff]  ;;  %v4628_v51 = vld [vmem:[%s8680_s4 + $0x1428] sm:$0xff] }
 0x25f   : > { %3342 = vmatpush.msrb.mxu1 %v4611_v46  ;;  %3248 = vmatmul.f32.vlgmr.msra.gmra.mxu0 %v3185_v62  ;;  %v4644_v46 = vld [vmem:[%s8680_s4 + $0x14a8] sm:$0xff]  ;;  %v4686_v62 = vld [vmem:[%s8680_s4 + $0x15f0] sm:$0xff] }
 0x260   : > { %3407 = vmatpush.msrb.mxu0 %v4654_v10  ;;  %3197 = vmatpush.msrb.mxu2 %v4552_v13  ;;  %v4665_v10 = vld [vmem:[%s8680_s4 + $0x1548] sm:$0xff]  ;;  %v4627_v13 = vld [vmem:[%s8680_s4 + $0x1420] sm:$0xff] }
 0x261   : > { %3343 = vmatpush.msrb.mxu1 %v4610_v22  ;;  %3218 = vmatpush.msrb.mxu3 %v4567_v23  ;;  %v4643_v22 = vld [vmem:[%s8680_s4 + $0x14a0] sm:$0xff]  ;;  %v4685_v23 = vld [vmem:[%s8680_s4 + $0x15e8] sm:$0xff] }
 0x262   : > { %3408 = vmatpush.msrb.mxu0 %v4653_v8  ;;  %3198 = vmatpush.msrb.mxu2 %v4551_v47  ;;  %v4664_v8 = vld [vmem:[%s8680_s4 + $0x1540] sm:$0xff]  ;;  %v4626_v47 = vld [vmem:[%s8680_s4 + $0x1418] sm:$0xff] }
 0x263   : > { %3344 = vmatpush.msrb.mxu1 %v4609_v15  ;;  %3219 = vmatpush.msrb.mxu3 %v4566_v25  ;;  %v4642_v15 = vld [vmem:[%s8680_s4 + $0x1498] sm:$0xff]  ;;  %v4684_v25 = vld [vmem:[%s8680_s4 + $0x15e0] sm:$0xff] }
 0x264   : > { %3409 = vmatpush.msrb.mxu0 %v4652_v16  ;;  %3199 = vmatpush.msrb.mxu2 %v4550_v26  ;;  %v4663_v16 = vld [vmem:[%s8680_s4 + $0x1538] sm:$0xff]  ;;  %v4625_v26 = vld [vmem:[%s8680_s4 + $0x1410] sm:$0xff] }
 0x265   : > { %3345 = vmatpush.msrb.mxu1 %v4608_v33  ;;  %3220 = vmatpush.msrb.mxu3 %v4565_v34  ;;  %v4641_v33 = vld [vmem:[%s8680_s4 + $0x1490] sm:$0xff]  ;;  %v4683_v34 = vld [vmem:[%s8680_s4 + $0x15d8] sm:$0xff] }
 0x266   : > { %3410 = vmatpush.msrb.mxu0 %v4651_v54  ;;  %3200 = vmatpush.msrb.mxu2 %v4549_v7  ;;  %v4662_v54 = vld [vmem:[%s8680_s4 + $0x1530] sm:$0xff]  ;;  %v4624_v7 = vld [vmem:[%s8680_s4 + $0x1408] sm:$0xff] }
 0x267   : > { %3346 = vmatpush.msrb.mxu1 %v4607_v31  ;;  %3221 = vmatpush.msrb.mxu3 %v4564_v42  ;;  %v4640_v31 = vld [vmem:[%s8680_s4 + $0x1488] sm:$0xff]  ;;  %v4682_v42 = vld [vmem:[%s8680_s4 + $0x15d0] sm:$0xff] }
 0x268   : > { %3411 = vmatpush.msrb.mxu0 %v4650_v49  ;;  %3201 = vmatpush.msrb.mxu2 %v4548_v19  ;;  %v4661_v49 = vld [vmem:[%s8680_s4 + $0x1528] sm:$0xff]  ;;  %v4623_v19 = vld [vmem:[%s8680_s4 + $0x1400] sm:$0xff] }
 0x269   : > { %3347 = vmatpush.msrb.mxu1 %v4606_v30  ;;  %3222 = vmatpush.msrb.mxu3 %v4563_v3  ;;  %v4639_v30 = vld [vmem:[%s8680_s4 + $0x1480] sm:$0xff]  ;;  %v4681_v3 = vld [vmem:[%s8680_s4 + $0x15c8] sm:$0xff] }
 0x26a   : > { %3412 = vmatpush.msrb.mxu0 %v4649_v39  ;;  %3202 = vmatpush.msrb.mxu2 %v4547_v32  ;;  %v4660_v39 = vld [vmem:[%s8680_s4 + $0x1520] sm:$0xff]  ;;  %v4622_v32 = vld [vmem:[%s8680_s4 + $0x13f8] sm:$0xff] }
 0x26b   : > { %3348 = vmatpush.msrb.mxu1 %v4605_v45  ;;  %3223 = vmatpush.msrb.mxu3 %v4562_v17  ;;  %v4638_v45 = vld [vmem:[%s8680_s4 + $0x1478] sm:$0xff]  ;;  %v4680_v17 = vld [vmem:[%s8680_s4 + $0x15c0] sm:$0xff] }
 0x26c   : > { %3413 = vmatpush.msrb.mxu0 %v4648_v61  ;;  %3203 = vmatpush.msrb.mxu2 %v4546_v0  ;;  %v4659_v61 = vld [vmem:[%s8680_s4 + $0x1518] sm:$0xff]  ;;  %v4621_v0 = vld [vmem:[%s8680_s4 + $0x13f0] sm:$0xff] }
 0x26d   : > { %3349 = vmatpush.msrb.mxu1 %v4604_v12  ;;  %3224 = vmatpush.msrb.mxu3 %v4561_v27  ;;  %v4637_v12 = vld [vmem:[%s8680_s4 + $0x1470] sm:$0xff]  ;;  %v4679_v27 = vld [vmem:[%s8680_s4 + $0x15b8] sm:$0xff] }
 0x26e   : > { %3414 = vmatpush.msrb.mxu0 %v4647_v6  ;;  %3204 = vmatpush.msrb.mxu2 %v4545_v63  ;;  %v4658_v6 = vld [vmem:[%s8680_s4 + $0x1510] sm:$0xff]  ;;  %v4620_v63 = vld [vmem:[%s8680_s4 + $0x13e8] sm:$0xff] }
 0x26f   : > { %3350 = vmatpush.msrb.mxu1 %v4603_v29  ;;  %4655 = vmatmul.msk.f32.vlgmr.msrb.gmra.mxu0 %vm1718_vm3, %v3333_v11  ;;  %v4636_v29 = vld [vmem:[%s8680_s4 + $0x1468] sm:$0xff]  ;;  %v4678_v11 = vld [vmem:[%s8680_s4 + $0x15b0] sm:$0xff] }
 0x270   : > { %3486 = vmatpush.msra.mxu0 %v4671_v20  ;;  %3205 = vmatpush.msrb.mxu2 %v4544_v50  ;;  %v4657_v20 = vld [vmem:[%s8680_s4 + $0x1508] sm:$0xff]  ;;  %v4619_v50 = vld [vmem:[%s8680_s4 + $0x13e0] sm:$0xff] }
 0x271   : > { %3225 = vmatpush.msrb.mxu3 %v4560_v40  ;;  %3351 = vmatpush.msrb.mxu1 %v4602_v35  ;;  %v4635_v40 = vld [vmem:[%s8680_s4 + $0x1460] sm:$0xff]  ;;  %v4677_v35 = vld [vmem:[%s8680_s4 + $0x15a8] sm:$0xff] }
 0x272   : > { %3487 = vmatpush.msra.mxu0 %v4670_v9  ;;  %3206 = vmatpush.msrb.mxu2 %v4543_v41  ;;  %v4656_v9 = vld [vmem:[%s8680_s4 + $0x1500] sm:$0xff]  ;;  %v4618_v41 = vld [vmem:[%s8680_s4 + $0x13d8] sm:$0xff] }
 0x273   : > { %3226 = vmatpush.msrb.mxu3 %v4559_v18  ;;  %3352 = vmatpush.msrb.mxu1 %v4601_v52  ;;  %v4634_v18 = vld [vmem:[%s8680_s4 + $0x1458] sm:$0xff]  ;;  %v4676_v52 = vld [vmem:[%s8680_s4 + $0x15a0] sm:$0xff] }
 0x274   : > { %3488 = vmatpush.msra.mxu0 %v4669_v60  ;;  %3207 = vmatpush.msrb.mxu2 %v4542_v44  ;;  %v3477_v60 = vrot.slane %v7655_v21, 4  ;;  %v4744_v44 = vld [vmem:[%s8680_s4 + $0x17b8] sm:$0xff] }
 0x275   : > { %3227 = vmatpush.msrb.mxu3 %v4558_v57  ;;  %3353 = vmatpush.msrb.mxu1 %v4600_v1  ;;  %v4617_v57 = vld [vmem:[%s8680_s4 + $0x13d0] sm:$0xff] }
 0x276   : > { %3489 = vmatpush.msra.mxu0 %v4668_v38  ;;  %3208 = vmatmul.f32.vlgmr.msrb.gmra.mxu2 %v3183_v4  ;;  %v4633_v1 = vld [vmem:[%s8680_s4 + $0x1450] sm:$0xff]  ;;  %v4675_v38 = vld [vmem:[%s8680_s4 + $0x1598] sm:$0xff] }
 0x277   : > { %3228 = vmatmul.f32.vlgmr.msrb.gmra.mxu3 %v3184_v59  ;;  %3359 = vmatpush.msra.mxu2 %v4630_v53  ;;  %v4743_v4 = vld [vmem:[%s8680_s4 + $0x17b0] sm:$0xff]  ;;  %v4616_v53 = vld [vmem:[%s8680_s4 + $0x13c8] sm:$0xff] }
 0x278   : > { %3379 = vmatpush.msra.mxu3 %v4646_v5  ;;  %3354 = vmatpush.msrb.mxu1 %v4599_v36  ;;  %v4632_v59 = vld [vmem:[%s8680_s4 + $0x1448] sm:$0xff]  ;;  %v4674_v5 = vld [vmem:[%s8680_s4 + $0x1590] sm:$0xff] }
 0x279   : > { %3490 = vmatpush.msra.mxu0 %v4667_v58  ;;  %3355 = vmatmul.f32.vlgmr.msrb.gmra.mxu1 %v3330_v14  ;;  %v4742_v36 = vld [vmem:[%s8680_s4 + $0x17a8] sm:$0xff]  ;;  %v4615_v58 = vld [vmem:[%s8680_s4 + $0x13c0] sm:$0xff] }
 0x27a   : > { %3360 = vmatpush.msra.mxu2 %v4629_v37  ;;  %3380 = vmatpush.msra.mxu3 %v4645_v28  ;;  %v4631_v14 = vld [vmem:[%s8680_s4 + $0x1440] sm:$0xff]  ;;  %v4673_v37 = vld [vmem:[%s8680_s4 + $0x1588] sm:$0xff] }
 0x27b   : > { %3506 = vmatpush.msra.mxu1 %v4687_v48  ;;  %3491 = vmatpush.msra.mxu0 %v4666_v56  ;;  %v4741_v28 = vld [vmem:[%s8680_s4 + $0x17a0] sm:$0xff]  ;;  %v3331_v48 = vrot.slane %v7712_v43, 3  ;;  %v4703_v56 = vld [vmem:[%s8680_s4 + $0x1678] sm:$0xff] }
 0x27c   : > { %3361 = vmatpush.msra.mxu2 %v4628_v51  ;;  %3381 = vmatpush.msra.mxu3 %v4644_v46  ;;  %v3332_v51 = vrot.slane %v7905_v24, 3  ;;  %v4711_v46 = vld [vmem:[%s8680_s4 + $0x16b8] sm:$0xff] }
 0x27d   : > { %3507 = vmatpush.msra.mxu1 %v4686_v62  ;;  %3492 = vmatpush.msra.mxu0 %v4665_v10  ;;  %v4672_v62 = vld [vmem:[%s8680_s4 + $0x1580] sm:$0xff]  ;;  %v4740_v10 = vld [vmem:[%s8680_s4 + $0x1798] sm:$0xff] }
 0x27e   : > { %3362 = vmatpush.msra.mxu2 %v4627_v13  ;;  %3382 = vmatpush.msra.mxu3 %v4643_v22  ;;  %v3478_v13 = vrot.slane %v7712_v43, 4  ;;  %v4702_v22 = vld [vmem:[%s8680_s4 + $0x1670] sm:$0xff] }
 0x27f   : > { %3508 = vmatpush.msra.mxu1 %v4685_v23  ;;  %3493 = vmatpush.msra.mxu0 %v4664_v8  ;;  %v4710_v23 = vld [vmem:[%s8680_s4 + $0x16b0] sm:$0xff]  ;;  %v4760_v8 = vld [vmem:[%s8680_s4 + $0x1838] sm:$0xff] }
 0x280   : > { %3363 = vmatpush.msra.mxu2 %v4626_v47  ;;  %3383 = vmatpush.msra.mxu3 %v4642_v15  ;;  %v4739_v47 = vld [vmem:[%s8680_s4 + $0x1790] sm:$0xff]  ;;  %v4701_v15 = vld [vmem:[%s8680_s4 + $0x1668] sm:$0xff] }
 0x281   : > { %3509 = vmatpush.msra.mxu1 %v4684_v25  ;;  %3494 = vmatpush.msra.mxu0 %v4663_v16  ;;  %v4709_v25 = vld [vmem:[%s8680_s4 + $0x16a8] sm:$0xff]  ;;  %v4759_v16 = vld [vmem:[%s8680_s4 + $0x1830] sm:$0xff] }
 0x282   : > { %3364 = vmatpush.msra.mxu2 %v4625_v26  ;;  %3384 = vmatpush.msra.mxu3 %v4641_v33  ;;  %v4738_v26 = vld [vmem:[%s8680_s4 + $0x1788] sm:$0xff]  ;;  %v4700_v33 = vld [vmem:[%s8680_s4 + $0x1660] sm:$0xff] }
 0x283   : > { %3510 = vmatpush.msra.mxu1 %v4683_v34  ;;  %3495 = vmatpush.msra.mxu0 %v4662_v54  ;;  %v4708_v34 = vld [vmem:[%s8680_s4 + $0x16a0] sm:$0xff]  ;;  %v4758_v54 = vld [vmem:[%s8680_s4 + $0x1828] sm:$0xff] }
 0x284   : > { %3365 = vmatpush.msra.mxu2 %v4624_v7  ;;  %3385 = vmatpush.msra.mxu3 %v4640_v31  ;;  %v4737_v7 = vld [vmem:[%s8680_s4 + $0x1780] sm:$0xff]  ;;  %v4699_v31 = vld [vmem:[%s8680_s4 + $0x1658] sm:$0xff] }
 0x285   : > { %3511 = vmatpush.msra.mxu1 %v4682_v42  ;;  %3496 = vmatpush.msra.mxu0 %v4661_v49  ;;  %v4707_v42 = vld [vmem:[%s8680_s4 + $0x1698] sm:$0xff]  ;;  %v4757_v49 = vld [vmem:[%s8680_s4 + $0x1820] sm:$0xff] }
 0x286   : > { %3366 = vmatpush.msra.mxu2 %v4623_v19  ;;  %3386 = vmatpush.msra.mxu3 %v4639_v30  ;;  %v4736_v19 = vld [vmem:[%s8680_s4 + $0x1778] sm:$0xff]  ;;  %v4698_v30 = vld [vmem:[%s8680_s4 + $0x1650] sm:$0xff] }
 0x287   : > { %3512 = vmatpush.msra.mxu1 %v4681_v3  ;;  %3497 = vmatpush.msra.mxu0 %v4660_v39  ;;  %v4706_v3 = vld [vmem:[%s8680_s4 + $0x1690] sm:$0xff]  ;;  %v4756_v39 = vld [vmem:[%s8680_s4 + $0x1818] sm:$0xff] }
 0x288   : > { %3367 = vmatpush.msra.mxu2 %v4622_v32  ;;  %3387 = vmatpush.msra.mxu3 %v4638_v45  ;;  %v4735_v32 = vld [vmem:[%s8680_s4 + $0x1770] sm:$0xff]  ;;  %v4697_v45 = vld [vmem:[%s8680_s4 + $0x1648] sm:$0xff] }
 0x289   : > { %3513 = vmatpush.msra.mxu1 %v4680_v17  ;;  %3498 = vmatpush.msra.mxu0 %v4659_v61  ;;  %v4705_v17 = vld [vmem:[%s8680_s4 + $0x1688] sm:$0xff]  ;;  %v4755_v61 = vld [vmem:[%s8680_s4 + $0x1810] sm:$0xff] }
 0x28a   : > { %3368 = vmatpush.msra.mxu2 %v4621_v0  ;;  %3388 = vmatpush.msra.mxu3 %v4637_v12  ;;  %v4734_v0 = vld [vmem:[%s8680_s4 + $0x1768] sm:$0xff]  ;;  %v4696_v12 = vld [vmem:[%s8680_s4 + $0x1640] sm:$0xff] }
 0x28b   : > { %3514 = vmatpush.msra.mxu1 %v4679_v27  ;;  %3499 = vmatpush.msra.mxu0 %v4658_v6  ;;  %v4704_v27 = vld [vmem:[%s8680_s4 + $0x1680] sm:$0xff]  ;;  %v4754_v6 = vld [vmem:[%s8680_s4 + $0x1808] sm:$0xff] }
 0x28c   : > { %3369 = vmatpush.msra.mxu2 %v4620_v63  ;;  %3389 = vmatpush.msra.mxu3 %v4636_v29  ;;  %v3480_v63 = vrot.slane %v7797_v2, 4  ;;  %v4728_v29 = vld [vmem:[%s8680_s4 + $0x1738] sm:$0xff] }
 0x28d   : > { %3515 = vmatpush.msra.mxu1 %v4678_v11  ;;  %3500 = vmatpush.msra.mxu0 %v4657_v20  ;;  %v4733_v11 = vld [vmem:[%s8680_s4 + $0x1760] sm:$0xff]  ;;  %v4695_v20 = vld [vmem:[%s8680_s4 + $0x1638] sm:$0xff] }
 0x28e   : > { %3370 = vmatpush.msra.mxu2 %v4619_v50  ;;  %3390 = vmatpush.msra.mxu3 %v4635_v40  ;;  %v4753_v50 = vld [vmem:[%s8680_s4 + $0x1800] sm:$0xff]  ;;  %v4727_v40 = vld [vmem:[%s8680_s4 + $0x1730] sm:$0xff] }
 0x28f   : > { %3516 = vmatpush.msra.mxu1 %v4677_v35  ;;  %3501 = vmatpush.msra.mxu0 %v4656_v9  ;;  %v4732_v35 = vld [vmem:[%s8680_s4 + $0x1758] sm:$0xff]  ;;  %v4694_v9 = vld [vmem:[%s8680_s4 + $0x1630] sm:$0xff] }
 0x290   : > { %3371 = vmatpush.msra.mxu2 %v4618_v41  ;;  %3391 = vmatpush.msra.mxu3 %v4634_v18  ;;  %v4752_v41 = vld [vmem:[%s8680_s4 + $0x17f8] sm:$0xff]  ;;  %v4726_v18 = vld [vmem:[%s8680_s4 + $0x1728] sm:$0xff] }
 0x291   : > { %3502 = vmatmul.f32.vlgmr.msra.gmra.mxu0 %v3477_v60  ;;  %3517 = vmatpush.msra.mxu1 %v4676_v52  ;;  %v4731_v52 = vld [vmem:[%s8680_s4 + $0x1750] sm:$0xff]  ;;  %v4693_v60 = vld [vmem:[%s8680_s4 + $0x1628] sm:$0xff] }
 0x292   : > { %3653 = vmatpush.msrb.mxu0 %v4744_v44  ;;  %3372 = vmatpush.msra.mxu2 %v4617_v57  ;;  %v4751_v44 = vld [vmem:[%s8680_s4 + $0x17f0] sm:$0xff]  ;;  %v4725_v57 = vld [vmem:[%s8680_s4 + $0x1720] sm:$0xff] }
 0x293   : > { %3392 = vmatpush.msra.mxu3 %v4633_v1  ;;  %3518 = vmatpush.msra.mxu1 %v4675_v38  ;;  %v4730_v1 = vld [vmem:[%s8680_s4 + $0x1748] sm:$0xff]  ;;  %v4692_v38 = vld [vmem:[%s8680_s4 + $0x1620] sm:$0xff] }
 0x294   : > { %3654 = vmatpush.msrb.mxu0 %v4743_v4  ;;  %3373 = vmatpush.msra.mxu2 %v4616_v53  ;;  %v4750_v4 = vld [vmem:[%s8680_s4 + $0x17e8] sm:$0xff]  ;;  %v4724_v53 = vld [vmem:[%s8680_s4 + $0x1718] sm:$0xff] }
 0x295   : > { %3393 = vmatpush.msra.mxu3 %v4632_v59  ;;  %3519 = vmatpush.msra.mxu1 %v4674_v5  ;;  %v4729_v59 = vld [vmem:[%s8680_s4 + $0x1740] sm:$0xff]  ;;  %v4691_v5 = vld [vmem:[%s8680_s4 + $0x1618] sm:$0xff] }
 0x296   : > { %3655 = vmatpush.msrb.mxu0 %v4742_v36  ;;  %3374 = vmatpush.msra.mxu2 %v4615_v58  ;;  %v3625_v36 = vrot.slane %v7712_v43, 5  ;;  %v4749_v58 = vld [vmem:[%s8680_s4 + $0x17e0] sm:$0xff]  ;;  %v4748_v43 = vld [vmem:[%s8680_s4 + $0x17d8] sm:$0xff] }
 0x297   : > { %3394 = vmatpush.msra.mxu3 %v4631_v14  ;;  %3520 = vmatpush.msra.mxu1 %v4673_v37  ;;  %v4723_v14 = vld [vmem:[%s8680_s4 + $0x1710] sm:$0xff] }
 0x298   : > { %3656 = vmatpush.msrb.mxu0 %v4741_v28  ;;  %3375 = vmatmul.f32.vlgmr.msra.gmra.mxu2 %v3331_v48  ;;  %v4690_v37 = vld [vmem:[%s8680_s4 + $0x1610] sm:$0xff]  ;;  %v4722_v28 = vld [vmem:[%s8680_s4 + $0x1708] sm:$0xff] }
 0x299   : > { %3395 = vmatmul.f32.vlgmr.msra.gmra.mxu3 %v3332_v51  ;;  %3526 = vmatpush.msrb.mxu2 %v4703_v56  ;;  %v4689_v48 = vld [vmem:[%s8680_s4 + $0x1608] sm:$0xff]  ;;  %v4747_v56 = vld [vmem:[%s8680_s4 + $0x17d0] sm:$0xff]  ;;  %v4721_v51 = vld [vmem:[%s8680_s4 + $0x1700] sm:$0xff] }
 0x29a   : > { %3554 = vmatpush.msrb.mxu3 %v4711_v46  ;;  %3521 = vmatpush.msra.mxu1 %v4672_v62  ;;  %v4688_v46 = vld [vmem:[%s8680_s4 + $0x1600] sm:$0xff]  ;;  %v4746_v62 = vld [vmem:[%s8680_s4 + $0x17c8] sm:$0xff] }
 0x29b   : > { %3657 = vmatpush.msrb.mxu0 %v4740_v10  ;;  %3522 = vmatmul.f32.vlgmr.msra.gmra.mxu1 %v3478_v13  ;;  %v3479_v10 = vrot.slane %v7905_v24, 4  ;;  %v4720_v13 = vld [vmem:[%s8680_s4 + $0x16f8] sm:$0xff] }
 0x29c   : > { %3527 = vmatpush.msrb.mxu2 %v4702_v22  ;;  %3555 = vmatpush.msrb.mxu3 %v4710_v23  ;;  %v4768_v22 = vld [vmem:[%s8680_s4 + $0x1878] sm:$0xff]  ;;  %v4745_v23 = vld [vmem:[%s8680_s4 + $0x17c0] sm:$0xff] }
 0x29d   : > { %3673 = vmatpush.msrb.mxu1 %v4760_v8  ;;  %3658 = vmatpush.msrb.mxu0 %v4739_v47  ;;  %v4719_v8 = vld [vmem:[%s8680_s4 + $0x16f0] sm:$0xff]  ;;  %v3626_v47 = vrot.slane %v7905_v24, 5  ;;  %v4717_v24 = vld [vmem:[%s8680_s4 + $0x16e0] sm:$0xff] }
 0x29e   : > { %3528 = vmatpush.msrb.mxu2 %v4701_v15  ;;  %3556 = vmatpush.msrb.mxu3 %v4709_v25  ;;  %v4767_v15 = vld [vmem:[%s8680_s4 + $0x1870] sm:$0xff]  ;;  %v4718_v25 = vld [vmem:[%s8680_s4 + $0x16e8] sm:$0xff] }
 0x29f   : > { %3674 = vmatpush.msrb.mxu1 %v4759_v16  ;;  %3659 = vmatpush.msrb.mxu0 %v4738_v26  ;;  %v4766_v16 = vld [vmem:[%s8680_s4 + $0x1868] sm:$0xff]  ;;  %v4765_v26 = vld [vmem:[%s8680_s4 + $0x1860] sm:$0xff] }
 0x2a0   : > { %3529 = vmatpush.msrb.mxu2 %v4700_v33  ;;  %3557 = vmatpush.msrb.mxu3 %v4708_v34  ;;  %v4716_v33 = vld [vmem:[%s8680_s4 + $0x16d8] sm:$0xff] }
 0x2a1   : > { %3675 = vmatpush.msrb.mxu1 %v4758_v54  ;;  %3660 = vmatpush.msrb.mxu0 %v4737_v7  ;;  %v4764_v34 = vld [vmem:[%s8680_s4 + $0x1858] sm:$0xff]  ;;  %v4715_v54 = vld [vmem:[%s8680_s4 + $0x16d0] sm:$0xff] }
 0x2a2   : > { %3530 = vmatpush.msrb.mxu2 %v4699_v31  ;;  %3558 = vmatpush.msrb.mxu3 %v4707_v42  ;;  %v4763_v7 = vld [vmem:[%s8680_s4 + $0x1850] sm:$0xff]  ;;  %v4714_v31 = vld [vmem:[%s8680_s4 + $0x16c8] sm:$0xff] }
 0x2a3   : > { %3676 = vmatpush.msrb.mxu1 %v4757_v49  ;;  %3661 = vmatpush.msrb.mxu0 %v4736_v19  ;;  %v4762_v42 = vld [vmem:[%s8680_s4 + $0x1848] sm:$0xff]  ;;  %v4713_v49 = vld [vmem:[%s8680_s4 + $0x16c0] sm:$0xff] }
 0x2a4   : > { %3531 = vmatpush.msrb.mxu2 %v4698_v30  ;;  %3559 = vmatpush.msrb.mxu3 %v4706_v3  ;;  %v4761_v19 = vld [vmem:[%s8680_s4 + $0x1840] sm:$0xff]  ;;  %v3624_v30 = vrot.slane %v7655_v21, 5  ;;  %v3627_v3 = vrot.slane %v7797_v2, 5 }
 0x2a5   : > { %3677 = vmatpush.msrb.mxu1 %v4756_v39  ;;  %3662 = vmatpush.msrb.mxu0 %v4735_v32  ;;  %v2330_v39 = vpop.f32.mrf.mxu0  ;;  %v2350_v32 = vpop.f32.mrf.mxu1 }
 0x2a6   : > { %3532 = vmatpush.msrb.mxu2 %v4697_v45  ;;  %3560 = vmatpush.msrb.mxu3 %v4705_v17  ;;  %v2390_v45 = vpop.f32.mrf.mxu3  ;;  %v2370_v17 = vpop.f32.mrf.mxu2 }
 0x2a7   : > { %3678 = vmatpush.msrb.mxu1 %v4755_v61  ;;  %3663 = vmatpush.msrb.mxu0 %v4734_v0 }
 0x2a8   : > { %3533 = vmatpush.msrb.mxu2 %v4696_v12  ;;  %3561 = vmatpush.msrb.mxu3 %v4704_v27 }
 0x2a9   : > { %3679 = vmatpush.msrb.mxu1 %v4754_v6  ;;  %4712 = vmatmul.msk.f32.vlgmr.msrb.gmra.mxu3 %vm1718_vm3, %v3480_v63 }
 0x2aa   : > { %3633 = vmatpush.msra.mxu3 %v4728_v29  ;;  %3664 = vmatpush.msrb.mxu0 %v4733_v11 }
 0x2ab   : > { %3534 = vmatpush.msrb.mxu2 %v4695_v20  ;;  %3680 = vmatpush.msrb.mxu1 %v4753_v50 }
 0x2ac   : > { %3634 = vmatpush.msra.mxu3 %v4727_v40  ;;  %3665 = vmatpush.msrb.mxu0 %v4732_v35 }
 0x2ad   : > { %3535 = vmatpush.msrb.mxu2 %v4694_v9  ;;  %3681 = vmatpush.msrb.mxu1 %v4752_v41  ;;  %v2497_v61 = vpop.f32.mrf.mxu0  ;;  %v2517_v0 = vpop.f32.mrf.mxu1 }
 0x2ae   : > { %3635 = vmatpush.msra.mxu3 %v4726_v18  ;;  %3666 = vmatpush.msrb.mxu0 %v4731_v52  ;;  %v2477_v12 = vpop.f32.mrf.mxu3  ;;  %v2537_v27 = vpop.f32.mrf.mxu2 }
 0x2af   : > { %3536 = vmatpush.msrb.mxu2 %v4693_v60  ;;  %3682 = vmatpush.msrb.mxu1 %v4751_v44 }
 0x2b0   : > { %3636 = vmatpush.msra.mxu3 %v4725_v57  ;;  %3667 = vmatpush.msrb.mxu0 %v4730_v1 }
 0x2b1   : > { %3537 = vmatpush.msrb.mxu2 %v4692_v38  ;;  %3683 = vmatpush.msrb.mxu1 %v4750_v4 }
 0x2b2   : > { %3637 = vmatpush.msra.mxu3 %v4724_v53  ;;  %3668 = vmatpush.msrb.mxu0 %v4729_v59  ;;  %v2351_v53 = vadd.f32 %v2350_v32, %v2330_v39  ;;  %v2498_v59 = vadd.f32 %v2497_v61, %v2477_v12 }
 0x2b3   : > { %3538 = vmatpush.msrb.mxu2 %v4691_v5  ;;  %3669 = vmatmul.f32.vlgmr.msrb.gmra.mxu0 %v3625_v36 }
 0x2b4   : > { %3684 = vmatpush.msrb.mxu1 %v4749_v58  ;;  %3638 = vmatpush.msra.mxu3 %v4723_v14  ;;  %v2371_v5 = vadd.f32 %v2370_v17, %v2351_v53  ;;  %v2518_v58 = vadd.f32 %v2517_v0, %v2498_v59 }
 0x2b5   : > { %3539 = vmatpush.msrb.mxu2 %v4690_v37  ;;  %v2664_v6 = vpop.f32.mrf.mxu0  ;;  %v2684_v63 = vpop.f32.mrf.mxu1 }
 0x2b6   : > { %3685 = vmatpush.msrb.mxu1 %v4748_v43  ;;  %3639 = vmatpush.msra.mxu3 %v4722_v28  ;;  %v2644_v29 = vpop.f32.mrf.mxu3  ;;  %v2624_v11 = vpop.f32.mrf.mxu2 }
 0x2b7   : > { %3540 = vmatpush.msrb.mxu2 %v4689_v48  ;;  %v2645_v36 = vadd.f32 %v2644_v29, %v2624_v11  ;;  %v2391_v48 = vadd.f32 %v2390_v45, %v2371_v5 }
 0x2b8   : > { %3686 = vmatpush.msrb.mxu1 %v4747_v56  ;;  %3640 = vmatpush.msra.mxu3 %v4721_v51 }
 0x2b9   : > { %3541 = vmatpush.msrb.mxu2 %v4688_v46  ;;  %v2665_v56 = vadd.f32 %v2664_v6, %v2645_v36  ;;  %v2538_v46 = vadd.f32 %v2537_v27, %v2518_v58 }
 0x2ba   : > { %3687 = vmatpush.msrb.mxu1 %v4746_v62  ;;  %3542 = vmatmul.f32.vlgmr.msrb.gmra.mxu2 %v3479_v10 }
 0x2bb   : > { %3641 = vmatpush.msra.mxu3 %v4720_v13  ;;  %3701 = vmatpush.msra.mxu2 %v4768_v22  ;;  %v2393_v22 = vadd.f32 %v2391_v48, %v7826_v55 }
 0x2bc   : > { %3688 = vmatpush.msrb.mxu1 %v4745_v23  ;;  %v2685_v23 = vadd.f32 %v2684_v63, %v2665_v56 }
 0x2bd   : > { %3642 = vmatpush.msra.mxu3 %v4719_v8  ;;  %3689 = vmatmul.f32.vlgmr.msrb.gmra.mxu1 %v3626_v47  ;;  %v2831_v21 = vpop.f32.mrf.mxu0  ;;  %v2771_v20 = vpop.f32.mrf.mxu1 }
 0x2be   : > { %3702 = vmatpush.msra.mxu2 %v4767_v15  ;;  %v2811_v50 = vpop.f32.mrf.mxu3  ;;  %v2791_v2 = vpop.f32.mrf.mxu2  ;;  %v2540_v15 = vadd.f32 %v2538_v46, %v2393_v22 }
 0x2bf   : > { %3643 = vmatpush.msra.mxu3 %v4718_v25  ;;  %v2792_v14 = vadd.f32 %v2791_v2, %v2771_v20 }
 0x2c0   : > { %3703 = vmatpush.msra.mxu2 %v4766_v16 }
 0x2c1   : > { %3644 = vmatpush.msra.mxu3 %v4717_v24  ;;  %v2812_v10 = vadd.f32 %v2811_v50, %v2792_v14 }
 0x2c2   : > { %3704 = vmatpush.msra.mxu2 %v4765_v26 }
 0x2c3   : > { %3645 = vmatpush.msra.mxu3 %v4716_v33  ;;  %v2832_v25 = vadd.f32 %v2831_v21, %v2812_v10 }
 0x2c4   : > { %3705 = vmatpush.msra.mxu2 %v4764_v34 }
 0x2c5   : > { %3646 = vmatpush.msra.mxu3 %v4715_v54  ;;  %v2912_v40 = vpop.f32.mrf.mxu0  ;;  %v2932_v35 = vpop.f32.mrf.mxu1  ;;  %v2687_v54 = vadd.f32 %v2685_v23, %v2540_v15 }
 0x2c6   : > { %3706 = vmatpush.msra.mxu2 %v4763_v7  ;;  %v2972_v9 = vpop.f32.mrf.mxu3  ;;  %v2952_v41 = vpop.f32.mrf.mxu2  ;;  %v2933_v62 = vadd.f32 %v2932_v35, %v2912_v40 }
 0x2c7   : > { %3647 = vmatpush.msra.mxu3 %v4714_v31 }
 0x2c8   : > { %3707 = vmatpush.msra.mxu2 %v4762_v42  ;;  %v2953_v8 = vadd.f32 %v2952_v41, %v2933_v62 }
 0x2c9   : > { %3648 = vmatpush.msra.mxu3 %v4713_v49  ;;  %v2834_v49 = vadd.f32 %v2832_v25, %v2687_v54 }
 0x2ca   : > { %3708 = vmatpush.msra.mxu2 %v4761_v19  ;;  %3649 = vmatmul.f32.vlgmr.msra.gmra.mxu3 %v3624_v30  ;;  %v2973_v7 = vadd.f32 %v2972_v9, %v2953_v8 }
 0x2cb   : > { %4769 = vmatmul.msk.f32.vlgmr.msra.gmra.mxu2 %vm1718_vm3, %v3627_v3 }
 0x2cc   : > { %v2975_v3 = vadd.f32 %v2973_v7, %v2834_v49 }
 0x2cd   : > { %v3082_v18 = vpop.f32.mrf.mxu0  ;;  %v3102_v52 = vpop.f32.mrf.mxu1 }
 0x2d5   : > { %v3269_v1 = vpop.f32.mrf.mxu1 }
 0x2d6   : > { %v3062_v60 = vpop.f32.mrf.mxu3 }
 0x2d7   : > { %v3122_v44 = vpop.f32.mrf.mxu2  ;;  %v3083_v13 = vadd.f32 %v3082_v18, %v3062_v60 }
 0x2d9   : > { %v3103_v16 = vadd.f32 %v3102_v52, %v3083_v13 }
 0x2db   : > { %v3123_v19 = vadd.f32 %v3122_v44, %v3103_v16 }
 0x2dc   : > { %v3249_v57 = vpop.f32.mrf.mxu0 }
 0x2dd   : > { %v3125_v45 = vadd.f32 %v3123_v19, %v2975_v3 }
 0x2ec   : > { %v3416_v37 = vpop.f32.mrf.mxu0 }
 0x2f6   : > { %v3356_v43 = vpop.f32.mrf.mxu1 }
 0x2f9   : > { %v3209_v4 = vpop.f32.mrf.mxu2 }
 0x2fa   : > { %v3229_v38 = vpop.f32.mrf.mxu3 }
 0x2fb   : > { %v3230_v47 = vadd.f32 %v3229_v38, %v3209_v4 }
 0x2fd   : > { %v3250_v31 = vadd.f32 %v3249_v57, %v3230_v47 }
 0x2ff   : > { %v3270_v39 = vadd.f32 %v3269_v1, %v3250_v31 }
 0x301   : > { %v3272_v12 = vadd.f32 %v3270_v39, %v3125_v45 }
 0x30e   : > { %v3503_v24 = vpop.f32.mrf.mxu0 }
 0x318   : > { %v3523_v33 = vpop.f32.mrf.mxu1 }
 0x319   : > { %v3524_v30 = vadd.f32 %v3523_v33, %v3503_v24 }
 0x31b   : > { %v3376_v51 = vpop.f32.mrf.mxu2 }
 0x31c   : > { %v3396_v28 = vpop.f32.mrf.mxu3  ;;  %v3377_v26 = vadd.f32 %v3376_v51, %v3356_v43 }
 0x31e   : > { %v3397_v55 = vadd.f32 %v3396_v28, %v3377_v26 }
 0x320   : > { %v3417_v17 = vadd.f32 %v3416_v37, %v3397_v55 }
 0x322   : > { %v3419_v29 = vadd.f32 %v3417_v17, %v3272_v12 }
 0x32c   : > { %v3563_v34 = vpop.f32.mrf.mxu3 }
 0x330   : > { %v3670_v61 = vpop.f32.mrf.mxu0 }
 0x33a   : > { %v3690_v63 = vpop.f32.mrf.mxu1 }
 0x33d   : > { %v3543_v42 = vpop.f32.mrf.mxu2 }
 0x33e   : > { %v3544_v32 = vadd.f32 %v3543_v42, %v3524_v30 }
 0x340   : > { %v3564_v27 = vadd.f32 %v3563_v34, %v3544_v32 }
 0x342   : > { %v3566_v20 = vadd.f32 %v3564_v27, %v3419_v29 }
 0x34d   : > { %v3650_v0 = vpop.f32.mrf.mxu3 }
 0x34e   : > { %v3671_v6 = vadd.f32 %v3670_v61, %v3650_v0  ;;  %v3710_v21 = vpop.f32.mrf.mxu2 }
 0x350   : > { %v3691_v11 = vadd.f32 %v3690_v63, %v3671_v6 }
 0x352   : > { %v3711_v50 = vadd.f32 %v3710_v21, %v3691_v11 }
 0x354   : > { %v3713_v2 = vadd.f32 %v3711_v50, %v3566_v20 }
 0x356   : > { %3715 = vst.msk [vmem:[%s258_s28] sm:$0x1] %vm3714_vm4, %v3713_v2 }
 0x357   : > { %4848 = shalt.err (!%p4845_p3)
}
 0x358   : > { %4782 = dma.vmem_to_hbm [thread:$0]  (%p4958_p5), %s3728_s29, 16, %s3730_s9, %s3717_s19  }
 0x359 PF: > { %p4788_p4 = scmp.ge.s32.totalorder %s4883_s24, 2  ;;  %s3741_s15 = sand.u32 1, %s4871_s21  }
 0x35a   : > { %s3742_s16 = scalar_lea.sflag [#allocation3], %s3741_s15 }
 0x35b   : > { %p4785_p7 = pnand %p4788_p4, %p4962_p6 }
 0x35d   : > { %p4786_p8 = pneg %p4785_p7 }
 0x35f   : > { %4866 = dma.done.wait (%p4786_p8), %s3742_s16, 16  }
 0x360   : > { %4868 = vsyncadd (%p4786_p8), %s3742_s16, 4294967280  ;;  %p16_p9 = scmp.ge.s32.totalorder %s4945_s27, 4   ;;  %s8809_s21 = smov %s4875_s22 }
 0x361   : > { %s8810_s22 = smov %s4879_s23  ;;  %s8811_s23 = smov %s4956_s30 }
 0x362   : > { %s8812_s24 = smov %s4945_s27  ;;  %18 = sbr.rel (!%p16_p9) target bundleno = 3 (0x3), region = 100 }
 0x367   :  { %3747 = vsyncpa [#allocation3], 1 }
 0x368   :  { %3749 = vsyncpa [#allocation3 + $0x1], 1 }

</bundles_post_ra>
